<compile_context>
chip_gen: v7x
topology: tpu7x:2x2x1
jax: 0.10.0
libtpu: 0.0.40
codegen_flags: <defaults>
</compile_context>

<pallas_src>
import functools

import jax
import jax.numpy as jnp
from jax import lax
from jax.experimental import pallas as pl
from jax.experimental.pallas import tpu as pltpu


# VMEM planning: budget per-step buffers conservatively so the same tiling
# fits v7x (64 MiB physical) as well as v5e/v6e (128 MiB), and raise the
# scoped limit above the 16 MiB (v5e) / 32 MiB (v6e/v7x) defaults.
_VMEM_BUDGET_BYTES = 28 * 1024 * 1024
_VMEM_LIMIT_BYTES = 48 * 1024 * 1024


def _round_up(n, m):
    return ((n + m - 1) // m) * m


def _tile_bytes(rows, cols, itemsize):
    # padded VMEM footprint of one [rows, cols] tile
    return _round_up(max(rows, 1), 8) * _round_up(max(cols, 1), 128) * itemsize


def _largest_divisor_leq(n, cap):
    cap = max(1, min(int(cap), n))
    for d in range(cap, 0, -1):
        if n % d == 0:
            return d
    return 1


def _choose_batch_block(B, target):
    bb = _largest_divisor_leq(B, target)
    # keep >= 2 grid steps so the batch axis can shard across v7x's 2 TCs
    if bb == B and B >= 2:
        bb = _largest_divisor_leq(B, B // 2)
    return bb


def _train_vmem_bytes(bb, F, C, nd, x_isize, w_isize, weight_bufs):
    dbl = 2 * (_tile_bytes(bb, F, x_isize)       # x (double-buffered)
               + _tile_bytes(bb, F, x_isize)     # out
               + _tile_bytes(bb, C, 4)           # prev_output
               + _tile_bytes(bb, C, x_isize)     # y one-hot
               + _tile_bytes(bb, nd, 4))         # rand
    wbytes = weight_bufs * _tile_bytes(C, F, w_isize)
    scratch = 6 * _tile_bytes(bb, F, 4)          # scores / mask / wy / temps
    return dbl + wbytes + scratch


def _row_argmax(vals, col_ids):
    """First index of the row-wise maximum (ties -> smallest index)."""
    m = jnp.max(vals, axis=1, keepdims=True)
    big = jnp.int32(2 ** 30)
    return jnp.min(jnp.where(vals == m, col_ids, big), axis=1, keepdims=True)


def _train_kernel(x_ref, prev_ref, w_ref, yoh_ref, rand_ref, out_ref, *,
                  num_top, num_dropped, drop_certianty, unroll_drop):
    xf = x_ref[...].astype(jnp.float32)        # [bB, F]
    prev = prev_ref[...].astype(jnp.float32)   # [bB, C]
    w = w_ref[...]                             # [C, F]  (native dtype -> MXU)
    yoh = yoh_ref[...]                         # [bB, C] (native dtype)

    # W[y] via one-hot matmul: exact gather on the MXU, f32 accumulation.
    wy = jnp.dot(yoh, w, preferred_element_type=jnp.float32)   # [bB, F]

    col_c = lax.broadcasted_iota(jnp.int32, prev.shape, 1)
    col_f = lax.broadcasted_iota(jnp.int32, xf.shape, 1)
    neg_inf = jnp.float32(-jnp.inf)

    # scores = mean_k | x * (W[top_k(prev_output)] - W[y]) |
    scores = jnp.zeros_like(xf)
    prev_cur = prev
    for _ in range(num_top):                   # num_top is tiny & static
        idx = _row_argmax(prev_cur, col_c)                        # [bB, 1]
        onehot = (col_c == idx).astype(w.dtype)                   # [bB, C]
        wk = jnp.dot(onehot, w, preferred_element_type=jnp.float32)
        scores = scores + jnp.abs(xf * (wk - wy))
        prev_cur = jnp.where(col_c == idx, neg_inf, prev_cur)
    scores = scores / jnp.float32(num_top)

    # Drop the `num_dropped` highest-scoring channels; the d-th highest keeps
    # its value with probability (1 - drop_certianty), decided by rand[:, d].
    certainty = jnp.float32(drop_certianty)

    if unroll_drop:
        # Fully unrolled: rand columns are static lane slices (no per-step
        # masked reduce) and the serial argmax chain is visible to the LLO
        # scheduler for cross-iteration overlap.
        keep_all = (rand_ref[...] > certainty).astype(jnp.float32)  # [bB, nd]
        mask = jnp.ones_like(xf)
        scores_cur = scores
        for d in range(num_dropped):
            idx = _row_argmax(scores_cur, col_f)                  # [bB, 1]
            is_drop = col_f == idx                                # [bB, F]
            mask = jnp.where(is_drop, keep_all[:, d:d + 1], mask)
            scores_cur = jnp.where(is_drop, neg_inf, scores_cur)
    else:
        # Large num_dropped: rolled (partially unrolled) loop with a direct
        # dynamic slice of the rand column -- still no masked reduce.
        def drop_body(d, carry):
            scores_cur, mask = carry
            idx = _row_argmax(scores_cur, col_f)
            is_drop = col_f == idx
            keep_d = (rand_ref[:, pl.ds(d, 1)] > certainty).astype(jnp.float32)
            mask = jnp.where(is_drop, keep_d, mask)
            scores_cur = jnp.where(is_drop, neg_inf, scores_cur)
            return scores_cur, mask

        _, mask = lax.fori_loop(0, num_dropped, drop_body,
                                (scores, jnp.ones_like(xf)), unroll=4)

    out_ref[...] = (xf * mask).astype(out_ref.dtype)


def _eval_kernel(x_ref, out_ref, *, scale):
    out_ref[...] = x_ref[...] * jnp.asarray(scale, dtype=out_ref.dtype)


def _make_train_call(B, F, C, num_dropped, bb, x_dtype, num_top,
                     drop_certianty, unroll_drop, single_buffer_weight):
    kernel = functools.partial(_train_kernel,
                               num_top=num_top,
                               num_dropped=num_dropped,
                               drop_certianty=drop_certianty,
                               unroll_drop=unroll_drop)

    if single_buffer_weight:
        # Weights never change across grid steps: single-buffer them so VMEM
        # holds one [C, F] copy instead of two.
        w_spec = pl.BlockSpec((C, F), lambda i: (0, 0),
                              pipeline_mode=pl.Buffered(1))
    else:
        w_spec = pl.BlockSpec((C, F), lambda i: (0, 0))

    return pl.pallas_call(
        kernel,
        out_shape=jax.ShapeDtypeStruct((B, F), x_dtype),
        grid_spec=pltpu.PrefetchScalarGridSpec(
            num_scalar_prefetch=0,
            grid=(B // bb,),
            in_specs=[
                pl.BlockSpec((bb, F), lambda i: (i, 0)),            # x
                pl.BlockSpec((bb, C), lambda i: (i, 0)),            # prev_output
                w_spec,                                             # weight_matrix
                pl.BlockSpec((bb, C), lambda i: (i, 0)),            # y one-hot
                pl.BlockSpec((bb, num_dropped), lambda i: (i, 0)),  # rand
            ],
            out_specs=pl.BlockSpec((bb, F), lambda i: (i, 0)),
        ),
        compiler_params=pltpu.CompilerParams(
            dimension_semantics=("parallel",),
            vmem_limit_bytes=_VMEM_LIMIT_BYTES),
    )


def confusion_dropout_train(x, prev_output, weight_matrix, y, rand, *,
                            drop_percent, num_top_channels, drop_certianty,
                            batch_block=None):
    B, F = x.shape
    C = weight_matrix.shape[0]
    num_dropped = int(F * drop_percent)
    if num_dropped == 0:
        return x                      # nothing to drop; mask is all ones
    assert rand.shape == (B, num_dropped)

    y_onehot = jax.nn.one_hot(y, C, dtype=x.dtype)     # glue (plain JAX)

    # Pick the batch tile: big (target 256 rows) for MXU fill and to amortize
    # the ~0.35 us/step pipeline overhead, a divisor of B, >= 2 grid steps
    # where possible (v7x megacore), and shrunk until the double-buffered
    # working set fits the VMEM budget (v7x: 64 MiB physical).
    x_isize = jnp.dtype(x.dtype).itemsize
    w_isize = jnp.dtype(weight_matrix.dtype).itemsize
    if batch_block is None:
        bb = _choose_batch_block(B, 256)
    else:
        bb = _largest_divisor_leq(B, batch_block)
    while bb > 1 and _train_vmem_bytes(bb, F, C, num_dropped, x_isize,
                                       w_isize, 2) > _VMEM_BUDGET_BYTES:
        bb = _largest_divisor_leq(B, bb // 2)

    unroll_drop = num_dropped <= 128

    args = (x, prev_output, weight_matrix, y_onehot, rand)
    try:
        call = _make_train_call(B, F, C, num_dropped, bb, x.dtype,
                                num_top_channels, drop_certianty,
                                unroll_drop, single_buffer_weight=True)
        return call(*args)
    except Exception:
        # pl.Buffered(1) not honored by this jax/Mosaic build: fall back to
        # the default double-buffered weight block.
        call = _make_train_call(B, F, C, num_dropped, bb, x.dtype,
                                num_top_channels, drop_certianty,
                                unroll_drop, single_buffer_weight=False)
        return call(*args)


def confusion_dropout_eval(x, *, drop_percent, drop_certianty,
                           batch_block=None):
    B, F = x.shape
    scale = 1.0 - drop_percent * drop_certianty
    x_isize = jnp.dtype(x.dtype).itemsize
    if batch_block is None:
        bb = _choose_batch_block(B, 512)
    else:
        bb = _largest_divisor_leq(B, batch_block)
    while bb > 1 and 4 * _tile_bytes(bb, F, x_isize) > _VMEM_BUDGET_BYTES:
        bb = _largest_divisor_leq(B, bb // 2)
    return pl.pallas_call(
        functools.partial(_eval_kernel, scale=scale),
        out_shape=jax.ShapeDtypeStruct((B, F), x.dtype),
        grid_spec=pltpu.PrefetchScalarGridSpec(
            num_scalar_prefetch=0,
            grid=(B // bb,),
            in_specs=[pl.BlockSpec((bb, F), lambda i: (i, 0))],
            out_specs=pl.BlockSpec((bb, F), lambda i: (i, 0)),
        ),
        compiler_params=pltpu.CompilerParams(
            dimension_semantics=("parallel",),
            vmem_limit_bytes=_VMEM_LIMIT_BYTES),
    )(x)


def reference_train(x, prev, w, y, rand, *, drop_percent, num_top_channels,
                    drop_certianty):
    """Pure-JAX port of ConfusionDropout.get_mask + forward (training)."""
    F = x.shape[1]
    num_dropped = int(F * drop_percent)
    top_ind = lax.top_k(prev, num_top_channels)[1]               # [B, K]
    sel = w[top_ind]                                             # [B, K, F]
    diffs = sel - w[y][:, None, :]
    scores = jnp.mean(jnp.abs(x[:, None, :] * diffs), axis=1)    # [B, F]
    dropped = lax.top_k(scores, num_dropped)[1]                  # [B, nd]
    keep = rand > drop_certianty
    mask = jnp.ones_like(x, dtype=bool)
    bidx = jnp.arange(x.shape[0])[:, None]
    mask = mask.at[bidx, dropped].set(keep)
    return x * mask


if __name__ == "__main__":
    # module hyper-params
    drop_percent = 0.25
    num_top_channels = 2
    drop_certianty = 0.8
    # TODO(synk): drop_handler.store_forwardpass is host-side logging with no
    # Pallas equivalent; it is omitted.

    # shapes: x [B, F], prev_output [B, C] (logits), weight_matrix [C, F]
    B, F, C = 16, 128, 16
    num_dropped = int(F * drop_percent)

    key = jax.random.PRNGKey(0)
    kx, kp, kw, ky, kr = jax.random.split(key, 5)
    x = jax.random.normal(kx, (B, F), dtype=jnp.float32)
    prev_output = jax.random.normal(kp, (B, C), dtype=jnp.float32)
    weight_matrix = jax.random.normal(kw, (C, F), dtype=jnp.float32) * 0.1
    y = jax.random.randint(ky, (B,), 0, C, dtype=jnp.int32)
    rand = jax.random.uniform(kr, (B, num_dropped), dtype=jnp.float32)

    # training-mode forward (the interesting path)
    out = confusion_dropout_train(
        x, prev_output, weight_matrix, y, rand,
        drop_percent=drop_percent,
        num_top_channels=num_top_channels,
        drop_certianty=drop_certianty)
    out = jax.block_until_ready(out)

    ref = reference_train(
        x, prev_output, weight_matrix, y, rand,
        drop_percent=drop_percent,
        num_top_channels=num_top_channels,
        drop_certianty=drop_certianty)
    assert jnp.allclose(out, ref, atol=1e-5, rtol=1e-5), "mismatch vs reference"

    # eval-mode forward (simple rescale)
    out_eval = confusion_dropout_eval(
        x, drop_percent=drop_percent, drop_certianty=drop_certianty)
    out_eval = jax.block_until_ready(out_eval)
    assert jnp.allclose(out_eval, x * (1.0 - drop_percent * drop_certianty),
                        atol=1e-6)

    print("KERNEL_OK")
</pallas_src>

<mosaic_0001>
module attributes {stable_mosaic.version = 11 : i64} {
  func.func @_train_kernel(%arg0: i32, %arg1: memref<8x128xf32, #tpu.memory_space<vmem>>, %arg2: memref<8x16xf32, #tpu.memory_space<vmem>>, %arg3: memref<16x128xf32, #tpu.memory_space<vmem>>, %arg4: memref<8x16xf32, #tpu.memory_space<vmem>>, %arg5: memref<8x32xf32, #tpu.memory_space<vmem>>, %arg6: memref<8x128xf32, #tpu.memory_space<vmem>>) attributes {dimension_semantics = [#tpu.dimension_semantics<parallel>], iteration_bounds = array<i64: 2>, scalar_prefetch = 0 : i64, scratch_operands = 0 : i64, tpu.core_type = #tpu.core_type<tc>, window_params = [{transform_indices = @transform_0, window_bounds = array<i64: 8, 128>}, {transform_indices = @transform_1, window_bounds = array<i64: 8, 16>}, {pipeline_mode = #tpu.pipeline_mode<synchronous>, transform_indices = @transform_2, window_bounds = array<i64: 16, 128>}, {transform_indices = @transform_3, window_bounds = array<i64: 8, 16>}, {transform_indices = @transform_4, window_bounds = array<i64: 8, 32>}, {transform_indices = @transform_5, window_bounds = array<i64: 8, 128>}]} {
    %c0 = arith.constant 0 : index
    %c0_0 = arith.constant 0 : index
    %0 = vector.load %arg1[%c0, %c0_0] : memref<8x128xf32, #tpu.memory_space<vmem>>, vector<8x128xf32>
    %c0_1 = arith.constant 0 : index
    %c0_2 = arith.constant 0 : index
    %1 = vector.load %arg2[%c0_1, %c0_2] : memref<8x16xf32, #tpu.memory_space<vmem>>, vector<8x16xf32>
    %c0_3 = arith.constant 0 : index
    %c0_4 = arith.constant 0 : index
    %2 = vector.load %arg3[%c0_3, %c0_4] : memref<16x128xf32, #tpu.memory_space<vmem>>, vector<16x128xf32>
    %c0_5 = arith.constant 0 : index
    %c0_6 = arith.constant 0 : index
    %3 = vector.load %arg4[%c0_5, %c0_6] : memref<8x16xf32, #tpu.memory_space<vmem>>, vector<8x16xf32>
    %cst = arith.constant dense<0.000000e+00> : vector<8x128xf32>
    %4 = tpu.matmul %3, %2, %cst {dimension_numbers = #tpu.dot_dimension_numbers<[1], [0], [0], [1], [0, 0, 1, 1], [], []>} : vector<8x16xf32>, vector<16x128xf32>, vector<8x128xf32> -> vector<8x128xf32>
    %5 = tpu.iota {dimensions = array<i32: 1>} : vector<8x16xi32>
    %6 = tpu.iota {dimensions = array<i32: 1>} : vector<8x128xi32>
    %cst_7 = arith.constant 0.000000e+00 : f32
    %7 = vector.broadcast %cst_7 : f32 to vector<8x128xf32>
    %cst_8 = arith.constant dense<0xFF800000> : vector<8xf32>
    %8 = vector.multi_reduction <maximumf>, %1, %cst_8 [1] : vector<8x16xf32> to vector<8xf32>
    %9 = vector.shape_cast %8 : vector<8xf32> to vector<8x1xf32>
    %10 = vector.broadcast %9 : vector<8x1xf32> to vector<8x16xf32>
    %11 = arith.cmpf oeq, %1, %10 : vector<8x16xf32>
    %c1073741824_i32 = arith.constant 1073741824 : i32
    %12 = vector.broadcast %c1073741824_i32 : i32 to vector<8x16xi32>
    %13 = arith.select %11, %5, %12 : vector<8x16xi1>, vector<8x16xi32>
    %cst_9 = arith.constant dense<2147483647> : vector<8xi32>
    %14 = vector.multi_reduction <minsi>, %13, %cst_9 [1] : vector<8x16xi32> to vector<8xi32>
    %15 = vector.shape_cast %14 : vector<8xi32> to vector<8x1xi32>
    %16 = vector.broadcast %15 : vector<8x1xi32> to vector<8x16xi32>
    %17 = arith.cmpi eq, %5, %16 : vector<8x16xi32>
    %18 = arith.extui %17 : vector<8x16xi1> to vector<8x16xi32>
    %19 = arith.sitofp %18 : vector<8x16xi32> to vector<8x16xf32>
    %cst_10 = arith.constant dense<0.000000e+00> : vector<8x128xf32>
    %20 = tpu.matmul %19, %2, %cst_10 {dimension_numbers = #tpu.dot_dimension_numbers<[1], [0], [0], [1], [0, 0, 1, 1], [], []>} : vector<8x16xf32>, vector<16x128xf32>, vector<8x128xf32> -> vector<8x128xf32>
    %21 = arith.subf %20, %4 : vector<8x128xf32>
    %22 = arith.mulf %0, %21 : vector<8x128xf32>
    %23 = math.absf %22 : vector<8x128xf32>
    %24 = arith.addf %7, %23 : vector<8x128xf32>
    %25 = vector.broadcast %15 : vector<8x1xi32> to vector<8x16xi32>
    %26 = arith.cmpi eq, %5, %25 : vector<8x16xi32>
    %cst_11 = arith.constant 0xFF800000 : f32
    %27 = vector.broadcast %cst_11 : f32 to vector<8x16xf32>
    %28 = arith.select %26, %27, %1 : vector<8x16xi1>, vector<8x16xf32>
    %cst_12 = arith.constant dense<0xFF800000> : vector<8xf32>
    %29 = vector.multi_reduction <maximumf>, %28, %cst_12 [1] : vector<8x16xf32> to vector<8xf32>
    %30 = vector.shape_cast %29 : vector<8xf32> to vector<8x1xf32>
    %31 = vector.broadcast %30 : vector<8x1xf32> to vector<8x16xf32>
    %32 = arith.cmpf oeq, %28, %31 : vector<8x16xf32>
    %c1073741824_i32_13 = arith.constant 1073741824 : i32
    %33 = vector.broadcast %c1073741824_i32_13 : i32 to vector<8x16xi32>
    %34 = arith.select %32, %5, %33 : vector<8x16xi1>, vector<8x16xi32>
    %cst_14 = arith.constant dense<2147483647> : vector<8xi32>
    %35 = vector.multi_reduction <minsi>, %34, %cst_14 [1] : vector<8x16xi32> to vector<8xi32>
    %36 = vector.shape_cast %35 : vector<8xi32> to vector<8x1xi32>
    %37 = vector.broadcast %36 : vector<8x1xi32> to vector<8x16xi32>
    %38 = arith.cmpi eq, %5, %37 : vector<8x16xi32>
    %39 = arith.extui %38 : vector<8x16xi1> to vector<8x16xi32>
    %40 = arith.sitofp %39 : vector<8x16xi32> to vector<8x16xf32>
    %cst_15 = arith.constant dense<0.000000e+00> : vector<8x128xf32>
    %41 = tpu.matmul %40, %2, %cst_15 {dimension_numbers = #tpu.dot_dimension_numbers<[1], [0], [0], [1], [0, 0, 1, 1], [], []>} : vector<8x16xf32>, vector<16x128xf32>, vector<8x128xf32> -> vector<8x128xf32>
    %42 = arith.subf %41, %4 : vector<8x128xf32>
    %43 = arith.mulf %0, %42 : vector<8x128xf32>
    %44 = math.absf %43 : vector<8x128xf32>
    %45 = arith.addf %24, %44 : vector<8x128xf32>
    %cst_16 = arith.constant 2.000000e+00 : f32
    %46 = vector.broadcast %cst_16 : f32 to vector<8x128xf32>
    %47 = arith.divf %45, %46 : vector<8x128xf32>
    %c0_17 = arith.constant 0 : index
    %c0_18 = arith.constant 0 : index
    %48 = vector.load %arg5[%c0_17, %c0_18] : memref<8x32xf32, #tpu.memory_space<vmem>>, vector<8x32xf32>
    %cst_19 = arith.constant 8.000000e-01 : f32
    %49 = vector.broadcast %cst_19 : f32 to vector<8x32xf32>
    %50 = arith.cmpf ogt, %48, %49 : vector<8x32xf32>
    %51 = arith.extui %50 : vector<8x32xi1> to vector<8x32xi32>
    %52 = arith.sitofp %51 : vector<8x32xi32> to vector<8x32xf32>
    %cst_20 = arith.constant 1.000000e+00 : f32
    %53 = vector.broadcast %cst_20 : f32 to vector<8x128xf32>
    %cst_21 = arith.constant dense<0xFF800000> : vector<8xf32>
    %54 = vector.multi_reduction <maximumf>, %47, %cst_21 [1] : vector<8x128xf32> to vector<8xf32>
    %55 = vector.shape_cast %54 : vector<8xf32> to vector<8x1xf32>
    %56 = vector.broadcast %55 : vector<8x1xf32> to vector<8x128xf32>
    %57 = arith.cmpf oeq, %47, %56 : vector<8x128xf32>
    %c1073741824_i32_22 = arith.constant 1073741824 : i32
    %58 = vector.broadcast %c1073741824_i32_22 : i32 to vector<8x128xi32>
    %59 = arith.select %57, %6, %58 : vector<8x128xi1>, vector<8x128xi32>
    %cst_23 = arith.constant dense<2147483647> : vector<8xi32>
    %60 = vector.multi_reduction <minsi>, %59, %cst_23 [1] : vector<8x128xi32> to vector<8xi32>
    %61 = vector.shape_cast %60 : vector<8xi32> to vector<8x1xi32>
    %62 = vector.broadcast %61 : vector<8x1xi32> to vector<8x128xi32>
    %63 = arith.cmpi eq, %6, %62 : vector<8x128xi32>
    %64 = vector.extract_strided_slice %52 {offsets = [0, 0], sizes = [8, 1], strides = [1, 1]} : vector<8x32xf32> to vector<8x1xf32>
    %65 = vector.shape_cast %64 : vector<8x1xf32> to vector<8x1xf32>
    %66 = vector.broadcast %65 : vector<8x1xf32> to vector<8x128xf32>
    %67 = arith.select %63, %66, %53 : vector<8x128xi1>, vector<8x128xf32>
    %cst_24 = arith.constant 0xFF800000 : f32
    %68 = vector.broadcast %cst_24 : f32 to vector<8x128xf32>
    %69 = arith.select %63, %68, %47 : vector<8x128xi1>, vector<8x128xf32>
    %cst_25 = arith.constant dense<0xFF800000> : vector<8xf32>
    %70 = vector.multi_reduction <maximumf>, %69, %cst_25 [1] : vector<8x128xf32> to vector<8xf32>
    %71 = vector.shape_cast %70 : vector<8xf32> to vector<8x1xf32>
    %72 = vector.broadcast %71 : vector<8x1xf32> to vector<8x128xf32>
    %73 = arith.cmpf oeq, %69, %72 : vector<8x128xf32>
    %c1073741824_i32_26 = arith.constant 1073741824 : i32
    %74 = vector.broadcast %c1073741824_i32_26 : i32 to vector<8x128xi32>
    %75 = arith.select %73, %6, %74 : vector<8x128xi1>, vector<8x128xi32>
    %cst_27 = arith.constant dense<2147483647> : vector<8xi32>
    %76 = vector.multi_reduction <minsi>, %75, %cst_27 [1] : vector<8x128xi32> to vector<8xi32>
    %77 = vector.shape_cast %76 : vector<8xi32> to vector<8x1xi32>
    %78 = vector.broadcast %77 : vector<8x1xi32> to vector<8x128xi32>
    %79 = arith.cmpi eq, %6, %78 : vector<8x128xi32>
    %80 = vector.extract_strided_slice %52 {offsets = [0, 1], sizes = [8, 1], strides = [1, 1]} : vector<8x32xf32> to vector<8x1xf32>
    %81 = vector.shape_cast %80 : vector<8x1xf32> to vector<8x1xf32>
    %82 = vector.broadcast %81 : vector<8x1xf32> to vector<8x128xf32>
    %83 = arith.select %79, %82, %67 : vector<8x128xi1>, vector<8x128xf32>
    %cst_28 = arith.constant 0xFF800000 : f32
    %84 = vector.broadcast %cst_28 : f32 to vector<8x128xf32>
    %85 = arith.select %79, %84, %69 : vector<8x128xi1>, vector<8x128xf32>
    %cst_29 = arith.constant dense<0xFF800000> : vector<8xf32>
    %86 = vector.multi_reduction <maximumf>, %85, %cst_29 [1] : vector<8x128xf32> to vector<8xf32>
    %87 = vector.shape_cast %86 : vector<8xf32> to vector<8x1xf32>
    %88 = vector.broadcast %87 : vector<8x1xf32> to vector<8x128xf32>
    %89 = arith.cmpf oeq, %85, %88 : vector<8x128xf32>
    %c1073741824_i32_30 = arith.constant 1073741824 : i32
    %90 = vector.broadcast %c1073741824_i32_30 : i32 to vector<8x128xi32>
    %91 = arith.select %89, %6, %90 : vector<8x128xi1>, vector<8x128xi32>
    %cst_31 = arith.constant dense<2147483647> : vector<8xi32>
    %92 = vector.multi_reduction <minsi>, %91, %cst_31 [1] : vector<8x128xi32> to vector<8xi32>
    %93 = vector.shape_cast %92 : vector<8xi32> to vector<8x1xi32>
    %94 = vector.broadcast %93 : vector<8x1xi32> to vector<8x128xi32>
    %95 = arith.cmpi eq, %6, %94 : vector<8x128xi32>
    %96 = vector.extract_strided_slice %52 {offsets = [0, 2], sizes = [8, 1], strides = [1, 1]} : vector<8x32xf32> to vector<8x1xf32>
    %97 = vector.shape_cast %96 : vector<8x1xf32> to vector<8x1xf32>
    %98 = vector.broadcast %97 : vector<8x1xf32> to vector<8x128xf32>
    %99 = arith.select %95, %98, %83 : vector<8x128xi1>, vector<8x128xf32>
    %cst_32 = arith.constant 0xFF800000 : f32
    %100 = vector.broadcast %cst_32 : f32 to vector<8x128xf32>
    %101 = arith.select %95, %100, %85 : vector<8x128xi1>, vector<8x128xf32>
    %cst_33 = arith.constant dense<0xFF800000> : vector<8xf32>
    %102 = vector.multi_reduction <maximumf>, %101, %cst_33 [1] : vector<8x128xf32> to vector<8xf32>
    %103 = vector.shape_cast %102 : vector<8xf32> to vector<8x1xf32>
    %104 = vector.broadcast %103 : vector<8x1xf32> to vector<8x128xf32>
    %105 = arith.cmpf oeq, %101, %104 : vector<8x128xf32>
    %c1073741824_i32_34 = arith.constant 1073741824 : i32
    %106 = vector.broadcast %c1073741824_i32_34 : i32 to vector<8x128xi32>
    %107 = arith.select %105, %6, %106 : vector<8x128xi1>, vector<8x128xi32>
    %cst_35 = arith.constant dense<2147483647> : vector<8xi32>
    %108 = vector.multi_reduction <minsi>, %107, %cst_35 [1] : vector<8x128xi32> to vector<8xi32>
    %109 = vector.shape_cast %108 : vector<8xi32> to vector<8x1xi32>
    %110 = vector.broadcast %109 : vector<8x1xi32> to vector<8x128xi32>
    %111 = arith.cmpi eq, %6, %110 : vector<8x128xi32>
    %112 = vector.extract_strided_slice %52 {offsets = [0, 3], sizes = [8, 1], strides = [1, 1]} : vector<8x32xf32> to vector<8x1xf32>
    %113 = vector.shape_cast %112 : vector<8x1xf32> to vector<8x1xf32>
    %114 = vector.broadcast %113 : vector<8x1xf32> to vector<8x128xf32>
    %115 = arith.select %111, %114, %99 : vector<8x128xi1>, vector<8x128xf32>
    %cst_36 = arith.constant 0xFF800000 : f32
    %116 = vector.broadcast %cst_36 : f32 to vector<8x128xf32>
    %117 = arith.select %111, %116, %101 : vector<8x128xi1>, vector<8x128xf32>
    %cst_37 = arith.constant dense<0xFF800000> : vector<8xf32>
    %118 = vector.multi_reduction <maximumf>, %117, %cst_37 [1] : vector<8x128xf32> to vector<8xf32>
    %119 = vector.shape_cast %118 : vector<8xf32> to vector<8x1xf32>
    %120 = vector.broadcast %119 : vector<8x1xf32> to vector<8x128xf32>
    %121 = arith.cmpf oeq, %117, %120 : vector<8x128xf32>
    %c1073741824_i32_38 = arith.constant 1073741824 : i32
    %122 = vector.broadcast %c1073741824_i32_38 : i32 to vector<8x128xi32>
    %123 = arith.select %121, %6, %122 : vector<8x128xi1>, vector<8x128xi32>
    %cst_39 = arith.constant dense<2147483647> : vector<8xi32>
    %124 = vector.multi_reduction <minsi>, %123, %cst_39 [1] : vector<8x128xi32> to vector<8xi32>
    %125 = vector.shape_cast %124 : vector<8xi32> to vector<8x1xi32>
    %126 = vector.broadcast %125 : vector<8x1xi32> to vector<8x128xi32>
    %127 = arith.cmpi eq, %6, %126 : vector<8x128xi32>
    %128 = vector.extract_strided_slice %52 {offsets = [0, 4], sizes = [8, 1], strides = [1, 1]} : vector<8x32xf32> to vector<8x1xf32>
    %129 = vector.shape_cast %128 : vector<8x1xf32> to vector<8x1xf32>
    %130 = vector.broadcast %129 : vector<8x1xf32> to vector<8x128xf32>
    %131 = arith.select %127, %130, %115 : vector<8x128xi1>, vector<8x128xf32>
    %cst_40 = arith.constant 0xFF800000 : f32
    %132 = vector.broadcast %cst_40 : f32 to vector<8x128xf32>
    %133 = arith.select %127, %132, %117 : vector<8x128xi1>, vector<8x128xf32>
    %cst_41 = arith.constant dense<0xFF800000> : vector<8xf32>
    %134 = vector.multi_reduction <maximumf>, %133, %cst_41 [1] : vector<8x128xf32> to vector<8xf32>
    %135 = vector.shape_cast %134 : vector<8xf32> to vector<8x1xf32>
    %136 = vector.broadcast %135 : vector<8x1xf32> to vector<8x128xf32>
    %137 = arith.cmpf oeq, %133, %136 : vector<8x128xf32>
    %c1073741824_i32_42 = arith.constant 1073741824 : i32
    %138 = vector.broadcast %c1073741824_i32_42 : i32 to vector<8x128xi32>
    %139 = arith.select %137, %6, %138 : vector<8x128xi1>, vector<8x128xi32>
    %cst_43 = arith.constant dense<2147483647> : vector<8xi32>
    %140 = vector.multi_reduction <minsi>, %139, %cst_43 [1] : vector<8x128xi32> to vector<8xi32>
    %141 = vector.shape_cast %140 : vector<8xi32> to vector<8x1xi32>
    %142 = vector.broadcast %141 : vector<8x1xi32> to vector<8x128xi32>
    %143 = arith.cmpi eq, %6, %142 : vector<8x128xi32>
    %144 = vector.extract_strided_slice %52 {offsets = [0, 5], sizes = [8, 1], strides = [1, 1]} : vector<8x32xf32> to vector<8x1xf32>
    %145 = vector.shape_cast %144 : vector<8x1xf32> to vector<8x1xf32>
    %146 = vector.broadcast %145 : vector<8x1xf32> to vector<8x128xf32>
    %147 = arith.select %143, %146, %131 : vector<8x128xi1>, vector<8x128xf32>
    %cst_44 = arith.constant 0xFF800000 : f32
    %148 = vector.broadcast %cst_44 : f32 to vector<8x128xf32>
    %149 = arith.select %143, %148, %133 : vector<8x128xi1>, vector<8x128xf32>
    %cst_45 = arith.constant dense<0xFF800000> : vector<8xf32>
    %150 = vector.multi_reduction <maximumf>, %149, %cst_45 [1] : vector<8x128xf32> to vector<8xf32>
    %151 = vector.shape_cast %150 : vector<8xf32> to vector<8x1xf32>
    %152 = vector.broadcast %151 : vector<8x1xf32> to vector<8x128xf32>
    %153 = arith.cmpf oeq, %149, %152 : vector<8x128xf32>
    %c1073741824_i32_46 = arith.constant 1073741824 : i32
    %154 = vector.broadcast %c1073741824_i32_46 : i32 to vector<8x128xi32>
    %155 = arith.select %153, %6, %154 : vector<8x128xi1>, vector<8x128xi32>
    %cst_47 = arith.constant dense<2147483647> : vector<8xi32>
    %156 = vector.multi_reduction <minsi>, %155, %cst_47 [1] : vector<8x128xi32> to vector<8xi32>
    %157 = vector.shape_cast %156 : vector<8xi32> to vector<8x1xi32>
    %158 = vector.broadcast %157 : vector<8x1xi32> to vector<8x128xi32>
    %159 = arith.cmpi eq, %6, %158 : vector<8x128xi32>
    %160 = vector.extract_strided_slice %52 {offsets = [0, 6], sizes = [8, 1], strides = [1, 1]} : vector<8x32xf32> to vector<8x1xf32>
    %161 = vector.shape_cast %160 : vector<8x1xf32> to vector<8x1xf32>
    %162 = vector.broadcast %161 : vector<8x1xf32> to vector<8x128xf32>
    %163 = arith.select %159, %162, %147 : vector<8x128xi1>, vector<8x128xf32>
    %cst_48 = arith.constant 0xFF800000 : f32
    %164 = vector.broadcast %cst_48 : f32 to vector<8x128xf32>
    %165 = arith.select %159, %164, %149 : vector<8x128xi1>, vector<8x128xf32>
    %cst_49 = arith.constant dense<0xFF800000> : vector<8xf32>
    %166 = vector.multi_reduction <maximumf>, %165, %cst_49 [1] : vector<8x128xf32> to vector<8xf32>
    %167 = vector.shape_cast %166 : vector<8xf32> to vector<8x1xf32>
    %168 = vector.broadcast %167 : vector<8x1xf32> to vector<8x128xf32>
    %169 = arith.cmpf oeq, %165, %168 : vector<8x128xf32>
    %c1073741824_i32_50 = arith.constant 1073741824 : i32
    %170 = vector.broadcast %c1073741824_i32_50 : i32 to vector<8x128xi32>
    %171 = arith.select %169, %6, %170 : vector<8x128xi1>, vector<8x128xi32>
    %cst_51 = arith.constant dense<2147483647> : vector<8xi32>
    %172 = vector.multi_reduction <minsi>, %171, %cst_51 [1] : vector<8x128xi32> to vector<8xi32>
    %173 = vector.shape_cast %172 : vector<8xi32> to vector<8x1xi32>
    %174 = vector.broadcast %173 : vector<8x1xi32> to vector<8x128xi32>
    %175 = arith.cmpi eq, %6, %174 : vector<8x128xi32>
    %176 = vector.extract_strided_slice %52 {offsets = [0, 7], sizes = [8, 1], strides = [1, 1]} : vector<8x32xf32> to vector<8x1xf32>
    %177 = vector.shape_cast %176 : vector<8x1xf32> to vector<8x1xf32>
    %178 = vector.broadcast %177 : vector<8x1xf32> to vector<8x128xf32>
    %179 = arith.select %175, %178, %163 : vector<8x128xi1>, vector<8x128xf32>
    %cst_52 = arith.constant 0xFF800000 : f32
    %180 = vector.broadcast %cst_52 : f32 to vector<8x128xf32>
    %181 = arith.select %175, %180, %165 : vector<8x128xi1>, vector<8x128xf32>
    %cst_53 = arith.constant dense<0xFF800000> : vector<8xf32>
    %182 = vector.multi_reduction <maximumf>, %181, %cst_53 [1] : vector<8x128xf32> to vector<8xf32>
    %183 = vector.shape_cast %182 : vector<8xf32> to vector<8x1xf32>
    %184 = vector.broadcast %183 : vector<8x1xf32> to vector<8x128xf32>
    %185 = arith.cmpf oeq, %181, %184 : vector<8x128xf32>
    %c1073741824_i32_54 = arith.constant 1073741824 : i32
    %186 = vector.broadcast %c1073741824_i32_54 : i32 to vector<8x128xi32>
    %187 = arith.select %185, %6, %186 : vector<8x128xi1>, vector<8x128xi32>
    %cst_55 = arith.constant dense<2147483647> : vector<8xi32>
    %188 = vector.multi_reduction <minsi>, %187, %cst_55 [1] : vector<8x128xi32> to vector<8xi32>
    %189 = vector.shape_cast %188 : vector<8xi32> to vector<8x1xi32>
    %190 = vector.broadcast %189 : vector<8x1xi32> to vector<8x128xi32>
    %191 = arith.cmpi eq, %6, %190 : vector<8x128xi32>
    %192 = vector.extract_strided_slice %52 {offsets = [0, 8], sizes = [8, 1], strides = [1, 1]} : vector<8x32xf32> to vector<8x1xf32>
    %193 = vector.shape_cast %192 : vector<8x1xf32> to vector<8x1xf32>
    %194 = vector.broadcast %193 : vector<8x1xf32> to vector<8x128xf32>
    %195 = arith.select %191, %194, %179 : vector<8x128xi1>, vector<8x128xf32>
    %cst_56 = arith.constant 0xFF800000 : f32
    %196 = vector.broadcast %cst_56 : f32 to vector<8x128xf32>
    %197 = arith.select %191, %196, %181 : vector<8x128xi1>, vector<8x128xf32>
    %cst_57 = arith.constant dense<0xFF800000> : vector<8xf32>
    %198 = vector.multi_reduction <maximumf>, %197, %cst_57 [1] : vector<8x128xf32> to vector<8xf32>
    %199 = vector.shape_cast %198 : vector<8xf32> to vector<8x1xf32>
    %200 = vector.broadcast %199 : vector<8x1xf32> to vector<8x128xf32>
    %201 = arith.cmpf oeq, %197, %200 : vector<8x128xf32>
    %c1073741824_i32_58 = arith.constant 1073741824 : i32
    %202 = vector.broadcast %c1073741824_i32_58 : i32 to vector<8x128xi32>
    %203 = arith.select %201, %6, %202 : vector<8x128xi1>, vector<8x128xi32>
    %cst_59 = arith.constant dense<2147483647> : vector<8xi32>
    %204 = vector.multi_reduction <minsi>, %203, %cst_59 [1] : vector<8x128xi32> to vector<8xi32>
    %205 = vector.shape_cast %204 : vector<8xi32> to vector<8x1xi32>
    %206 = vector.broadcast %205 : vector<8x1xi32> to vector<8x128xi32>
    %207 = arith.cmpi eq, %6, %206 : vector<8x128xi32>
    %208 = vector.extract_strided_slice %52 {offsets = [0, 9], sizes = [8, 1], strides = [1, 1]} : vector<8x32xf32> to vector<8x1xf32>
    %209 = vector.shape_cast %208 : vector<8x1xf32> to vector<8x1xf32>
    %210 = vector.broadcast %209 : vector<8x1xf32> to vector<8x128xf32>
    %211 = arith.select %207, %210, %195 : vector<8x128xi1>, vector<8x128xf32>
    %cst_60 = arith.constant 0xFF800000 : f32
    %212 = vector.broadcast %cst_60 : f32 to vector<8x128xf32>
    %213 = arith.select %207, %212, %197 : vector<8x128xi1>, vector<8x128xf32>
    %cst_61 = arith.constant dense<0xFF800000> : vector<8xf32>
    %214 = vector.multi_reduction <maximumf>, %213, %cst_61 [1] : vector<8x128xf32> to vector<8xf32>
    %215 = vector.shape_cast %214 : vector<8xf32> to vector<8x1xf32>
    %216 = vector.broadcast %215 : vector<8x1xf32> to vector<8x128xf32>
    %217 = arith.cmpf oeq, %213, %216 : vector<8x128xf32>
    %c1073741824_i32_62 = arith.constant 1073741824 : i32
    %218 = vector.broadcast %c1073741824_i32_62 : i32 to vector<8x128xi32>
    %219 = arith.select %217, %6, %218 : vector<8x128xi1>, vector<8x128xi32>
    %cst_63 = arith.constant dense<2147483647> : vector<8xi32>
    %220 = vector.multi_reduction <minsi>, %219, %cst_63 [1] : vector<8x128xi32> to vector<8xi32>
    %221 = vector.shape_cast %220 : vector<8xi32> to vector<8x1xi32>
    %222 = vector.broadcast %221 : vector<8x1xi32> to vector<8x128xi32>
    %223 = arith.cmpi eq, %6, %222 : vector<8x128xi32>
    %224 = vector.extract_strided_slice %52 {offsets = [0, 10], sizes = [8, 1], strides = [1, 1]} : vector<8x32xf32> to vector<8x1xf32>
    %225 = vector.shape_cast %224 : vector<8x1xf32> to vector<8x1xf32>
    %226 = vector.broadcast %225 : vector<8x1xf32> to vector<8x128xf32>
    %227 = arith.select %223, %226, %211 : vector<8x128xi1>, vector<8x128xf32>
    %cst_64 = arith.constant 0xFF800000 : f32
    %228 = vector.broadcast %cst_64 : f32 to vector<8x128xf32>
    %229 = arith.select %223, %228, %213 : vector<8x128xi1>, vector<8x128xf32>
    %cst_65 = arith.constant dense<0xFF800000> : vector<8xf32>
    %230 = vector.multi_reduction <maximumf>, %229, %cst_65 [1] : vector<8x128xf32> to vector<8xf32>
    %231 = vector.shape_cast %230 : vector<8xf32> to vector<8x1xf32>
    %232 = vector.broadcast %231 : vector<8x1xf32> to vector<8x128xf32>
    %233 = arith.cmpf oeq, %229, %232 : vector<8x128xf32>
    %c1073741824_i32_66 = arith.constant 1073741824 : i32
    %234 = vector.broadcast %c1073741824_i32_66 : i32 to vector<8x128xi32>
    %235 = arith.select %233, %6, %234 : vector<8x128xi1>, vector<8x128xi32>
    %cst_67 = arith.constant dense<2147483647> : vector<8xi32>
    %236 = vector.multi_reduction <minsi>, %235, %cst_67 [1] : vector<8x128xi32> to vector<8xi32>
    %237 = vector.shape_cast %236 : vector<8xi32> to vector<8x1xi32>
    %238 = vector.broadcast %237 : vector<8x1xi32> to vector<8x128xi32>
    %239 = arith.cmpi eq, %6, %238 : vector<8x128xi32>
    %240 = vector.extract_strided_slice %52 {offsets = [0, 11], sizes = [8, 1], strides = [1, 1]} : vector<8x32xf32> to vector<8x1xf32>
    %241 = vector.shape_cast %240 : vector<8x1xf32> to vector<8x1xf32>
    %242 = vector.broadcast %241 : vector<8x1xf32> to vector<8x128xf32>
    %243 = arith.select %239, %242, %227 : vector<8x128xi1>, vector<8x128xf32>
    %cst_68 = arith.constant 0xFF800000 : f32
    %244 = vector.broadcast %cst_68 : f32 to vector<8x128xf32>
    %245 = arith.select %239, %244, %229 : vector<8x128xi1>, vector<8x128xf32>
    %cst_69 = arith.constant dense<0xFF800000> : vector<8xf32>
    %246 = vector.multi_reduction <maximumf>, %245, %cst_69 [1] : vector<8x128xf32> to vector<8xf32>
    %247 = vector.shape_cast %246 : vector<8xf32> to vector<8x1xf32>
    %248 = vector.broadcast %247 : vector<8x1xf32> to vector<8x128xf32>
    %249 = arith.cmpf oeq, %245, %248 : vector<8x128xf32>
    %c1073741824_i32_70 = arith.constant 1073741824 : i32
    %250 = vector.broadcast %c1073741824_i32_70 : i32 to vector<8x128xi32>
    %251 = arith.select %249, %6, %250 : vector<8x128xi1>, vector<8x128xi32>
    %cst_71 = arith.constant dense<2147483647> : vector<8xi32>
    %252 = vector.multi_reduction <minsi>, %251, %cst_71 [1] : vector<8x128xi32> to vector<8xi32>
    %253 = vector.shape_cast %252 : vector<8xi32> to vector<8x1xi32>
    %254 = vector.broadcast %253 : vector<8x1xi32> to vector<8x128xi32>
    %255 = arith.cmpi eq, %6, %254 : vector<8x128xi32>
    %256 = vector.extract_strided_slice %52 {offsets = [0, 12], sizes = [8, 1], strides = [1, 1]} : vector<8x32xf32> to vector<8x1xf32>
    %257 = vector.shape_cast %256 : vector<8x1xf32> to vector<8x1xf32>
    %258 = vector.broadcast %257 : vector<8x1xf32> to vector<8x128xf32>
    %259 = arith.select %255, %258, %243 : vector<8x128xi1>, vector<8x128xf32>
    %cst_72 = arith.constant 0xFF800000 : f32
    %260 = vector.broadcast %cst_72 : f32 to vector<8x128xf32>
    %261 = arith.select %255, %260, %245 : vector<8x128xi1>, vector<8x128xf32>
    %cst_73 = arith.constant dense<0xFF800000> : vector<8xf32>
    %262 = vector.multi_reduction <maximumf>, %261, %cst_73 [1] : vector<8x128xf32> to vector<8xf32>
    %263 = vector.shape_cast %262 : vector<8xf32> to vector<8x1xf32>
    %264 = vector.broadcast %263 : vector<8x1xf32> to vector<8x128xf32>
    %265 = arith.cmpf oeq, %261, %264 : vector<8x128xf32>
    %c1073741824_i32_74 = arith.constant 1073741824 : i32
    %266 = vector.broadcast %c1073741824_i32_74 : i32 to vector<8x128xi32>
    %267 = arith.select %265, %6, %266 : vector<8x128xi1>, vector<8x128xi32>
    %cst_75 = arith.constant dense<2147483647> : vector<8xi32>
    %268 = vector.multi_reduction <minsi>, %267, %cst_75 [1] : vector<8x128xi32> to vector<8xi32>
    %269 = vector.shape_cast %268 : vector<8xi32> to vector<8x1xi32>
    %270 = vector.broadcast %269 : vector<8x1xi32> to vector<8x128xi32>
    %271 = arith.cmpi eq, %6, %270 : vector<8x128xi32>
    %272 = vector.extract_strided_slice %52 {offsets = [0, 13], sizes = [8, 1], strides = [1, 1]} : vector<8x32xf32> to vector<8x1xf32>
    %273 = vector.shape_cast %272 : vector<8x1xf32> to vector<8x1xf32>
    %274 = vector.broadcast %273 : vector<8x1xf32> to vector<8x128xf32>
    %275 = arith.select %271, %274, %259 : vector<8x128xi1>, vector<8x128xf32>
    %cst_76 = arith.constant 0xFF800000 : f32
    %276 = vector.broadcast %cst_76 : f32 to vector<8x128xf32>
    %277 = arith.select %271, %276, %261 : vector<8x128xi1>, vector<8x128xf32>
    %cst_77 = arith.constant dense<0xFF800000> : vector<8xf32>
    %278 = vector.multi_reduction <maximumf>, %277, %cst_77 [1] : vector<8x128xf32> to vector<8xf32>
    %279 = vector.shape_cast %278 : vector<8xf32> to vector<8x1xf32>
    %280 = vector.broadcast %279 : vector<8x1xf32> to vector<8x128xf32>
    %281 = arith.cmpf oeq, %277, %280 : vector<8x128xf32>
    %c1073741824_i32_78 = arith.constant 1073741824 : i32
    %282 = vector.broadcast %c1073741824_i32_78 : i32 to vector<8x128xi32>
    %283 = arith.select %281, %6, %282 : vector<8x128xi1>, vector<8x128xi32>
    %cst_79 = arith.constant dense<2147483647> : vector<8xi32>
    %284 = vector.multi_reduction <minsi>, %283, %cst_79 [1] : vector<8x128xi32> to vector<8xi32>
    %285 = vector.shape_cast %284 : vector<8xi32> to vector<8x1xi32>
    %286 = vector.broadcast %285 : vector<8x1xi32> to vector<8x128xi32>
    %287 = arith.cmpi eq, %6, %286 : vector<8x128xi32>
    %288 = vector.extract_strided_slice %52 {offsets = [0, 14], sizes = [8, 1], strides = [1, 1]} : vector<8x32xf32> to vector<8x1xf32>
    %289 = vector.shape_cast %288 : vector<8x1xf32> to vector<8x1xf32>
    %290 = vector.broadcast %289 : vector<8x1xf32> to vector<8x128xf32>
    %291 = arith.select %287, %290, %275 : vector<8x128xi1>, vector<8x128xf32>
    %cst_80 = arith.constant 0xFF800000 : f32
    %292 = vector.broadcast %cst_80 : f32 to vector<8x128xf32>
    %293 = arith.select %287, %292, %277 : vector<8x128xi1>, vector<8x128xf32>
    %cst_81 = arith.constant dense<0xFF800000> : vector<8xf32>
    %294 = vector.multi_reduction <maximumf>, %293, %cst_81 [1] : vector<8x128xf32> to vector<8xf32>
    %295 = vector.shape_cast %294 : vector<8xf32> to vector<8x1xf32>
    %296 = vector.broadcast %295 : vector<8x1xf32> to vector<8x128xf32>
    %297 = arith.cmpf oeq, %293, %296 : vector<8x128xf32>
    %c1073741824_i32_82 = arith.constant 1073741824 : i32
    %298 = vector.broadcast %c1073741824_i32_82 : i32 to vector<8x128xi32>
    %299 = arith.select %297, %6, %298 : vector<8x128xi1>, vector<8x128xi32>
    %cst_83 = arith.constant dense<2147483647> : vector<8xi32>
    %300 = vector.multi_reduction <minsi>, %299, %cst_83 [1] : vector<8x128xi32> to vector<8xi32>
    %301 = vector.shape_cast %300 : vector<8xi32> to vector<8x1xi32>
    %302 = vector.broadcast %301 : vector<8x1xi32> to vector<8x128xi32>
    %303 = arith.cmpi eq, %6, %302 : vector<8x128xi32>
    %304 = vector.extract_strided_slice %52 {offsets = [0, 15], sizes = [8, 1], strides = [1, 1]} : vector<8x32xf32> to vector<8x1xf32>
    %305 = vector.shape_cast %304 : vector<8x1xf32> to vector<8x1xf32>
    %306 = vector.broadcast %305 : vector<8x1xf32> to vector<8x128xf32>
    %307 = arith.select %303, %306, %291 : vector<8x128xi1>, vector<8x128xf32>
    %cst_84 = arith.constant 0xFF800000 : f32
    %308 = vector.broadcast %cst_84 : f32 to vector<8x128xf32>
    %309 = arith.select %303, %308, %293 : vector<8x128xi1>, vector<8x128xf32>
    %cst_85 = arith.constant dense<0xFF800000> : vector<8xf32>
    %310 = vector.multi_reduction <maximumf>, %309, %cst_85 [1] : vector<8x128xf32> to vector<8xf32>
    %311 = vector.shape_cast %310 : vector<8xf32> to vector<8x1xf32>
    %312 = vector.broadcast %311 : vector<8x1xf32> to vector<8x128xf32>
    %313 = arith.cmpf oeq, %309, %312 : vector<8x128xf32>
    %c1073741824_i32_86 = arith.constant 1073741824 : i32
    %314 = vector.broadcast %c1073741824_i32_86 : i32 to vector<8x128xi32>
    %315 = arith.select %313, %6, %314 : vector<8x128xi1>, vector<8x128xi32>
    %cst_87 = arith.constant dense<2147483647> : vector<8xi32>
    %316 = vector.multi_reduction <minsi>, %315, %cst_87 [1] : vector<8x128xi32> to vector<8xi32>
    %317 = vector.shape_cast %316 : vector<8xi32> to vector<8x1xi32>
    %318 = vector.broadcast %317 : vector<8x1xi32> to vector<8x128xi32>
    %319 = arith.cmpi eq, %6, %318 : vector<8x128xi32>
    %320 = vector.extract_strided_slice %52 {offsets = [0, 16], sizes = [8, 1], strides = [1, 1]} : vector<8x32xf32> to vector<8x1xf32>
    %321 = vector.shape_cast %320 : vector<8x1xf32> to vector<8x1xf32>
    %322 = vector.broadcast %321 : vector<8x1xf32> to vector<8x128xf32>
    %323 = arith.select %319, %322, %307 : vector<8x128xi1>, vector<8x128xf32>
    %cst_88 = arith.constant 0xFF800000 : f32
    %324 = vector.broadcast %cst_88 : f32 to vector<8x128xf32>
    %325 = arith.select %319, %324, %309 : vector<8x128xi1>, vector<8x128xf32>
    %cst_89 = arith.constant dense<0xFF800000> : vector<8xf32>
    %326 = vector.multi_reduction <maximumf>, %325, %cst_89 [1] : vector<8x128xf32> to vector<8xf32>
    %327 = vector.shape_cast %326 : vector<8xf32> to vector<8x1xf32>
    %328 = vector.broadcast %327 : vector<8x1xf32> to vector<8x128xf32>
    %329 = arith.cmpf oeq, %325, %328 : vector<8x128xf32>
    %c1073741824_i32_90 = arith.constant 1073741824 : i32
    %330 = vector.broadcast %c1073741824_i32_90 : i32 to vector<8x128xi32>
    %331 = arith.select %329, %6, %330 : vector<8x128xi1>, vector<8x128xi32>
    %cst_91 = arith.constant dense<2147483647> : vector<8xi32>
    %332 = vector.multi_reduction <minsi>, %331, %cst_91 [1] : vector<8x128xi32> to vector<8xi32>
    %333 = vector.shape_cast %332 : vector<8xi32> to vector<8x1xi32>
    %334 = vector.broadcast %333 : vector<8x1xi32> to vector<8x128xi32>
    %335 = arith.cmpi eq, %6, %334 : vector<8x128xi32>
    %336 = vector.extract_strided_slice %52 {offsets = [0, 17], sizes = [8, 1], strides = [1, 1]} : vector<8x32xf32> to vector<8x1xf32>
    %337 = vector.shape_cast %336 : vector<8x1xf32> to vector<8x1xf32>
    %338 = vector.broadcast %337 : vector<8x1xf32> to vector<8x128xf32>
    %339 = arith.select %335, %338, %323 : vector<8x128xi1>, vector<8x128xf32>
    %cst_92 = arith.constant 0xFF800000 : f32
    %340 = vector.broadcast %cst_92 : f32 to vector<8x128xf32>
    %341 = arith.select %335, %340, %325 : vector<8x128xi1>, vector<8x128xf32>
    %cst_93 = arith.constant dense<0xFF800000> : vector<8xf32>
    %342 = vector.multi_reduction <maximumf>, %341, %cst_93 [1] : vector<8x128xf32> to vector<8xf32>
    %343 = vector.shape_cast %342 : vector<8xf32> to vector<8x1xf32>
    %344 = vector.broadcast %343 : vector<8x1xf32> to vector<8x128xf32>
    %345 = arith.cmpf oeq, %341, %344 : vector<8x128xf32>
    %c1073741824_i32_94 = arith.constant 1073741824 : i32
    %346 = vector.broadcast %c1073741824_i32_94 : i32 to vector<8x128xi32>
    %347 = arith.select %345, %6, %346 : vector<8x128xi1>, vector<8x128xi32>
    %cst_95 = arith.constant dense<2147483647> : vector<8xi32>
    %348 = vector.multi_reduction <minsi>, %347, %cst_95 [1] : vector<8x128xi32> to vector<8xi32>
    %349 = vector.shape_cast %348 : vector<8xi32> to vector<8x1xi32>
    %350 = vector.broadcast %349 : vector<8x1xi32> to vector<8x128xi32>
    %351 = arith.cmpi eq, %6, %350 : vector<8x128xi32>
    %352 = vector.extract_strided_slice %52 {offsets = [0, 18], sizes = [8, 1], strides = [1, 1]} : vector<8x32xf32> to vector<8x1xf32>
    %353 = vector.shape_cast %352 : vector<8x1xf32> to vector<8x1xf32>
    %354 = vector.broadcast %353 : vector<8x1xf32> to vector<8x128xf32>
    %355 = arith.select %351, %354, %339 : vector<8x128xi1>, vector<8x128xf32>
    %cst_96 = arith.constant 0xFF800000 : f32
    %356 = vector.broadcast %cst_96 : f32 to vector<8x128xf32>
    %357 = arith.select %351, %356, %341 : vector<8x128xi1>, vector<8x128xf32>
    %cst_97 = arith.constant dense<0xFF800000> : vector<8xf32>
    %358 = vector.multi_reduction <maximumf>, %357, %cst_97 [1] : vector<8x128xf32> to vector<8xf32>
    %359 = vector.shape_cast %358 : vector<8xf32> to vector<8x1xf32>
    %360 = vector.broadcast %359 : vector<8x1xf32> to vector<8x128xf32>
    %361 = arith.cmpf oeq, %357, %360 : vector<8x128xf32>
    %c1073741824_i32_98 = arith.constant 1073741824 : i32
    %362 = vector.broadcast %c1073741824_i32_98 : i32 to vector<8x128xi32>
    %363 = arith.select %361, %6, %362 : vector<8x128xi1>, vector<8x128xi32>
    %cst_99 = arith.constant dense<2147483647> : vector<8xi32>
    %364 = vector.multi_reduction <minsi>, %363, %cst_99 [1] : vector<8x128xi32> to vector<8xi32>
    %365 = vector.shape_cast %364 : vector<8xi32> to vector<8x1xi32>
    %366 = vector.broadcast %365 : vector<8x1xi32> to vector<8x128xi32>
    %367 = arith.cmpi eq, %6, %366 : vector<8x128xi32>
    %368 = vector.extract_strided_slice %52 {offsets = [0, 19], sizes = [8, 1], strides = [1, 1]} : vector<8x32xf32> to vector<8x1xf32>
    %369 = vector.shape_cast %368 : vector<8x1xf32> to vector<8x1xf32>
    %370 = vector.broadcast %369 : vector<8x1xf32> to vector<8x128xf32>
    %371 = arith.select %367, %370, %355 : vector<8x128xi1>, vector<8x128xf32>
    %cst_100 = arith.constant 0xFF800000 : f32
    %372 = vector.broadcast %cst_100 : f32 to vector<8x128xf32>
    %373 = arith.select %367, %372, %357 : vector<8x128xi1>, vector<8x128xf32>
    %cst_101 = arith.constant dense<0xFF800000> : vector<8xf32>
    %374 = vector.multi_reduction <maximumf>, %373, %cst_101 [1] : vector<8x128xf32> to vector<8xf32>
    %375 = vector.shape_cast %374 : vector<8xf32> to vector<8x1xf32>
    %376 = vector.broadcast %375 : vector<8x1xf32> to vector<8x128xf32>
    %377 = arith.cmpf oeq, %373, %376 : vector<8x128xf32>
    %c1073741824_i32_102 = arith.constant 1073741824 : i32
    %378 = vector.broadcast %c1073741824_i32_102 : i32 to vector<8x128xi32>
    %379 = arith.select %377, %6, %378 : vector<8x128xi1>, vector<8x128xi32>
    %cst_103 = arith.constant dense<2147483647> : vector<8xi32>
    %380 = vector.multi_reduction <minsi>, %379, %cst_103 [1] : vector<8x128xi32> to vector<8xi32>
    %381 = vector.shape_cast %380 : vector<8xi32> to vector<8x1xi32>
    %382 = vector.broadcast %381 : vector<8x1xi32> to vector<8x128xi32>
    %383 = arith.cmpi eq, %6, %382 : vector<8x128xi32>
    %384 = vector.extract_strided_slice %52 {offsets = [0, 20], sizes = [8, 1], strides = [1, 1]} : vector<8x32xf32> to vector<8x1xf32>
    %385 = vector.shape_cast %384 : vector<8x1xf32> to vector<8x1xf32>
    %386 = vector.broadcast %385 : vector<8x1xf32> to vector<8x128xf32>
    %387 = arith.select %383, %386, %371 : vector<8x128xi1>, vector<8x128xf32>
    %cst_104 = arith.constant 0xFF800000 : f32
    %388 = vector.broadcast %cst_104 : f32 to vector<8x128xf32>
    %389 = arith.select %383, %388, %373 : vector<8x128xi1>, vector<8x128xf32>
    %cst_105 = arith.constant dense<0xFF800000> : vector<8xf32>
    %390 = vector.multi_reduction <maximumf>, %389, %cst_105 [1] : vector<8x128xf32> to vector<8xf32>
    %391 = vector.shape_cast %390 : vector<8xf32> to vector<8x1xf32>
    %392 = vector.broadcast %391 : vector<8x1xf32> to vector<8x128xf32>
    %393 = arith.cmpf oeq, %389, %392 : vector<8x128xf32>
    %c1073741824_i32_106 = arith.constant 1073741824 : i32
    %394 = vector.broadcast %c1073741824_i32_106 : i32 to vector<8x128xi32>
    %395 = arith.select %393, %6, %394 : vector<8x128xi1>, vector<8x128xi32>
    %cst_107 = arith.constant dense<2147483647> : vector<8xi32>
    %396 = vector.multi_reduction <minsi>, %395, %cst_107 [1] : vector<8x128xi32> to vector<8xi32>
    %397 = vector.shape_cast %396 : vector<8xi32> to vector<8x1xi32>
    %398 = vector.broadcast %397 : vector<8x1xi32> to vector<8x128xi32>
    %399 = arith.cmpi eq, %6, %398 : vector<8x128xi32>
    %400 = vector.extract_strided_slice %52 {offsets = [0, 21], sizes = [8, 1], strides = [1, 1]} : vector<8x32xf32> to vector<8x1xf32>
    %401 = vector.shape_cast %400 : vector<8x1xf32> to vector<8x1xf32>
    %402 = vector.broadcast %401 : vector<8x1xf32> to vector<8x128xf32>
    %403 = arith.select %399, %402, %387 : vector<8x128xi1>, vector<8x128xf32>
    %cst_108 = arith.constant 0xFF800000 : f32
    %404 = vector.broadcast %cst_108 : f32 to vector<8x128xf32>
    %405 = arith.select %399, %404, %389 : vector<8x128xi1>, vector<8x128xf32>
    %cst_109 = arith.constant dense<0xFF800000> : vector<8xf32>
    %406 = vector.multi_reduction <maximumf>, %405, %cst_109 [1] : vector<8x128xf32> to vector<8xf32>
    %407 = vector.shape_cast %406 : vector<8xf32> to vector<8x1xf32>
    %408 = vector.broadcast %407 : vector<8x1xf32> to vector<8x128xf32>
    %409 = arith.cmpf oeq, %405, %408 : vector<8x128xf32>
    %c1073741824_i32_110 = arith.constant 1073741824 : i32
    %410 = vector.broadcast %c1073741824_i32_110 : i32 to vector<8x128xi32>
    %411 = arith.select %409, %6, %410 : vector<8x128xi1>, vector<8x128xi32>
    %cst_111 = arith.constant dense<2147483647> : vector<8xi32>
    %412 = vector.multi_reduction <minsi>, %411, %cst_111 [1] : vector<8x128xi32> to vector<8xi32>
    %413 = vector.shape_cast %412 : vector<8xi32> to vector<8x1xi32>
    %414 = vector.broadcast %413 : vector<8x1xi32> to vector<8x128xi32>
    %415 = arith.cmpi eq, %6, %414 : vector<8x128xi32>
    %416 = vector.extract_strided_slice %52 {offsets = [0, 22], sizes = [8, 1], strides = [1, 1]} : vector<8x32xf32> to vector<8x1xf32>
    %417 = vector.shape_cast %416 : vector<8x1xf32> to vector<8x1xf32>
    %418 = vector.broadcast %417 : vector<8x1xf32> to vector<8x128xf32>
    %419 = arith.select %415, %418, %403 : vector<8x128xi1>, vector<8x128xf32>
    %cst_112 = arith.constant 0xFF800000 : f32
    %420 = vector.broadcast %cst_112 : f32 to vector<8x128xf32>
    %421 = arith.select %415, %420, %405 : vector<8x128xi1>, vector<8x128xf32>
    %cst_113 = arith.constant dense<0xFF800000> : vector<8xf32>
    %422 = vector.multi_reduction <maximumf>, %421, %cst_113 [1] : vector<8x128xf32> to vector<8xf32>
    %423 = vector.shape_cast %422 : vector<8xf32> to vector<8x1xf32>
    %424 = vector.broadcast %423 : vector<8x1xf32> to vector<8x128xf32>
    %425 = arith.cmpf oeq, %421, %424 : vector<8x128xf32>
    %c1073741824_i32_114 = arith.constant 1073741824 : i32
    %426 = vector.broadcast %c1073741824_i32_114 : i32 to vector<8x128xi32>
    %427 = arith.select %425, %6, %426 : vector<8x128xi1>, vector<8x128xi32>
    %cst_115 = arith.constant dense<2147483647> : vector<8xi32>
    %428 = vector.multi_reduction <minsi>, %427, %cst_115 [1] : vector<8x128xi32> to vector<8xi32>
    %429 = vector.shape_cast %428 : vector<8xi32> to vector<8x1xi32>
    %430 = vector.broadcast %429 : vector<8x1xi32> to vector<8x128xi32>
    %431 = arith.cmpi eq, %6, %430 : vector<8x128xi32>
    %432 = vector.extract_strided_slice %52 {offsets = [0, 23], sizes = [8, 1], strides = [1, 1]} : vector<8x32xf32> to vector<8x1xf32>
    %433 = vector.shape_cast %432 : vector<8x1xf32> to vector<8x1xf32>
    %434 = vector.broadcast %433 : vector<8x1xf32> to vector<8x128xf32>
    %435 = arith.select %431, %434, %419 : vector<8x128xi1>, vector<8x128xf32>
    %cst_116 = arith.constant 0xFF800000 : f32
    %436 = vector.broadcast %cst_116 : f32 to vector<8x128xf32>
    %437 = arith.select %431, %436, %421 : vector<8x128xi1>, vector<8x128xf32>
    %cst_117 = arith.constant dense<0xFF800000> : vector<8xf32>
    %438 = vector.multi_reduction <maximumf>, %437, %cst_117 [1] : vector<8x128xf32> to vector<8xf32>
    %439 = vector.shape_cast %438 : vector<8xf32> to vector<8x1xf32>
    %440 = vector.broadcast %439 : vector<8x1xf32> to vector<8x128xf32>
    %441 = arith.cmpf oeq, %437, %440 : vector<8x128xf32>
    %c1073741824_i32_118 = arith.constant 1073741824 : i32
    %442 = vector.broadcast %c1073741824_i32_118 : i32 to vector<8x128xi32>
    %443 = arith.select %441, %6, %442 : vector<8x128xi1>, vector<8x128xi32>
    %cst_119 = arith.constant dense<2147483647> : vector<8xi32>
    %444 = vector.multi_reduction <minsi>, %443, %cst_119 [1] : vector<8x128xi32> to vector<8xi32>
    %445 = vector.shape_cast %444 : vector<8xi32> to vector<8x1xi32>
    %446 = vector.broadcast %445 : vector<8x1xi32> to vector<8x128xi32>
    %447 = arith.cmpi eq, %6, %446 : vector<8x128xi32>
    %448 = vector.extract_strided_slice %52 {offsets = [0, 24], sizes = [8, 1], strides = [1, 1]} : vector<8x32xf32> to vector<8x1xf32>
    %449 = vector.shape_cast %448 : vector<8x1xf32> to vector<8x1xf32>
    %450 = vector.broadcast %449 : vector<8x1xf32> to vector<8x128xf32>
    %451 = arith.select %447, %450, %435 : vector<8x128xi1>, vector<8x128xf32>
    %cst_120 = arith.constant 0xFF800000 : f32
    %452 = vector.broadcast %cst_120 : f32 to vector<8x128xf32>
    %453 = arith.select %447, %452, %437 : vector<8x128xi1>, vector<8x128xf32>
    %cst_121 = arith.constant dense<0xFF800000> : vector<8xf32>
    %454 = vector.multi_reduction <maximumf>, %453, %cst_121 [1] : vector<8x128xf32> to vector<8xf32>
    %455 = vector.shape_cast %454 : vector<8xf32> to vector<8x1xf32>
    %456 = vector.broadcast %455 : vector<8x1xf32> to vector<8x128xf32>
    %457 = arith.cmpf oeq, %453, %456 : vector<8x128xf32>
    %c1073741824_i32_122 = arith.constant 1073741824 : i32
    %458 = vector.broadcast %c1073741824_i32_122 : i32 to vector<8x128xi32>
    %459 = arith.select %457, %6, %458 : vector<8x128xi1>, vector<8x128xi32>
    %cst_123 = arith.constant dense<2147483647> : vector<8xi32>
    %460 = vector.multi_reduction <minsi>, %459, %cst_123 [1] : vector<8x128xi32> to vector<8xi32>
    %461 = vector.shape_cast %460 : vector<8xi32> to vector<8x1xi32>
    %462 = vector.broadcast %461 : vector<8x1xi32> to vector<8x128xi32>
    %463 = arith.cmpi eq, %6, %462 : vector<8x128xi32>
    %464 = vector.extract_strided_slice %52 {offsets = [0, 25], sizes = [8, 1], strides = [1, 1]} : vector<8x32xf32> to vector<8x1xf32>
    %465 = vector.shape_cast %464 : vector<8x1xf32> to vector<8x1xf32>
    %466 = vector.broadcast %465 : vector<8x1xf32> to vector<8x128xf32>
    %467 = arith.select %463, %466, %451 : vector<8x128xi1>, vector<8x128xf32>
    %cst_124 = arith.constant 0xFF800000 : f32
    %468 = vector.broadcast %cst_124 : f32 to vector<8x128xf32>
    %469 = arith.select %463, %468, %453 : vector<8x128xi1>, vector<8x128xf32>
    %cst_125 = arith.constant dense<0xFF800000> : vector<8xf32>
    %470 = vector.multi_reduction <maximumf>, %469, %cst_125 [1] : vector<8x128xf32> to vector<8xf32>
    %471 = vector.shape_cast %470 : vector<8xf32> to vector<8x1xf32>
    %472 = vector.broadcast %471 : vector<8x1xf32> to vector<8x128xf32>
    %473 = arith.cmpf oeq, %469, %472 : vector<8x128xf32>
    %c1073741824_i32_126 = arith.constant 1073741824 : i32
    %474 = vector.broadcast %c1073741824_i32_126 : i32 to vector<8x128xi32>
    %475 = arith.select %473, %6, %474 : vector<8x128xi1>, vector<8x128xi32>
    %cst_127 = arith.constant dense<2147483647> : vector<8xi32>
    %476 = vector.multi_reduction <minsi>, %475, %cst_127 [1] : vector<8x128xi32> to vector<8xi32>
    %477 = vector.shape_cast %476 : vector<8xi32> to vector<8x1xi32>
    %478 = vector.broadcast %477 : vector<8x1xi32> to vector<8x128xi32>
    %479 = arith.cmpi eq, %6, %478 : vector<8x128xi32>
    %480 = vector.extract_strided_slice %52 {offsets = [0, 26], sizes = [8, 1], strides = [1, 1]} : vector<8x32xf32> to vector<8x1xf32>
    %481 = vector.shape_cast %480 : vector<8x1xf32> to vector<8x1xf32>
    %482 = vector.broadcast %481 : vector<8x1xf32> to vector<8x128xf32>
    %483 = arith.select %479, %482, %467 : vector<8x128xi1>, vector<8x128xf32>
    %cst_128 = arith.constant 0xFF800000 : f32
    %484 = vector.broadcast %cst_128 : f32 to vector<8x128xf32>
    %485 = arith.select %479, %484, %469 : vector<8x128xi1>, vector<8x128xf32>
    %cst_129 = arith.constant dense<0xFF800000> : vector<8xf32>
    %486 = vector.multi_reduction <maximumf>, %485, %cst_129 [1] : vector<8x128xf32> to vector<8xf32>
    %487 = vector.shape_cast %486 : vector<8xf32> to vector<8x1xf32>
    %488 = vector.broadcast %487 : vector<8x1xf32> to vector<8x128xf32>
    %489 = arith.cmpf oeq, %485, %488 : vector<8x128xf32>
    %c1073741824_i32_130 = arith.constant 1073741824 : i32
    %490 = vector.broadcast %c1073741824_i32_130 : i32 to vector<8x128xi32>
    %491 = arith.select %489, %6, %490 : vector<8x128xi1>, vector<8x128xi32>
    %cst_131 = arith.constant dense<2147483647> : vector<8xi32>
    %492 = vector.multi_reduction <minsi>, %491, %cst_131 [1] : vector<8x128xi32> to vector<8xi32>
    %493 = vector.shape_cast %492 : vector<8xi32> to vector<8x1xi32>
    %494 = vector.broadcast %493 : vector<8x1xi32> to vector<8x128xi32>
    %495 = arith.cmpi eq, %6, %494 : vector<8x128xi32>
    %496 = vector.extract_strided_slice %52 {offsets = [0, 27], sizes = [8, 1], strides = [1, 1]} : vector<8x32xf32> to vector<8x1xf32>
    %497 = vector.shape_cast %496 : vector<8x1xf32> to vector<8x1xf32>
    %498 = vector.broadcast %497 : vector<8x1xf32> to vector<8x128xf32>
    %499 = arith.select %495, %498, %483 : vector<8x128xi1>, vector<8x128xf32>
    %cst_132 = arith.constant 0xFF800000 : f32
    %500 = vector.broadcast %cst_132 : f32 to vector<8x128xf32>
    %501 = arith.select %495, %500, %485 : vector<8x128xi1>, vector<8x128xf32>
    %cst_133 = arith.constant dense<0xFF800000> : vector<8xf32>
    %502 = vector.multi_reduction <maximumf>, %501, %cst_133 [1] : vector<8x128xf32> to vector<8xf32>
    %503 = vector.shape_cast %502 : vector<8xf32> to vector<8x1xf32>
    %504 = vector.broadcast %503 : vector<8x1xf32> to vector<8x128xf32>
    %505 = arith.cmpf oeq, %501, %504 : vector<8x128xf32>
    %c1073741824_i32_134 = arith.constant 1073741824 : i32
    %506 = vector.broadcast %c1073741824_i32_134 : i32 to vector<8x128xi32>
    %507 = arith.select %505, %6, %506 : vector<8x128xi1>, vector<8x128xi32>
    %cst_135 = arith.constant dense<2147483647> : vector<8xi32>
    %508 = vector.multi_reduction <minsi>, %507, %cst_135 [1] : vector<8x128xi32> to vector<8xi32>
    %509 = vector.shape_cast %508 : vector<8xi32> to vector<8x1xi32>
    %510 = vector.broadcast %509 : vector<8x1xi32> to vector<8x128xi32>
    %511 = arith.cmpi eq, %6, %510 : vector<8x128xi32>
    %512 = vector.extract_strided_slice %52 {offsets = [0, 28], sizes = [8, 1], strides = [1, 1]} : vector<8x32xf32> to vector<8x1xf32>
    %513 = vector.shape_cast %512 : vector<8x1xf32> to vector<8x1xf32>
    %514 = vector.broadcast %513 : vector<8x1xf32> to vector<8x128xf32>
    %515 = arith.select %511, %514, %499 : vector<8x128xi1>, vector<8x128xf32>
    %cst_136 = arith.constant 0xFF800000 : f32
    %516 = vector.broadcast %cst_136 : f32 to vector<8x128xf32>
    %517 = arith.select %511, %516, %501 : vector<8x128xi1>, vector<8x128xf32>
    %cst_137 = arith.constant dense<0xFF800000> : vector<8xf32>
    %518 = vector.multi_reduction <maximumf>, %517, %cst_137 [1] : vector<8x128xf32> to vector<8xf32>
    %519 = vector.shape_cast %518 : vector<8xf32> to vector<8x1xf32>
    %520 = vector.broadcast %519 : vector<8x1xf32> to vector<8x128xf32>
    %521 = arith.cmpf oeq, %517, %520 : vector<8x128xf32>
    %c1073741824_i32_138 = arith.constant 1073741824 : i32
    %522 = vector.broadcast %c1073741824_i32_138 : i32 to vector<8x128xi32>
    %523 = arith.select %521, %6, %522 : vector<8x128xi1>, vector<8x128xi32>
    %cst_139 = arith.constant dense<2147483647> : vector<8xi32>
    %524 = vector.multi_reduction <minsi>, %523, %cst_139 [1] : vector<8x128xi32> to vector<8xi32>
    %525 = vector.shape_cast %524 : vector<8xi32> to vector<8x1xi32>
    %526 = vector.broadcast %525 : vector<8x1xi32> to vector<8x128xi32>
    %527 = arith.cmpi eq, %6, %526 : vector<8x128xi32>
    %528 = vector.extract_strided_slice %52 {offsets = [0, 29], sizes = [8, 1], strides = [1, 1]} : vector<8x32xf32> to vector<8x1xf32>
    %529 = vector.shape_cast %528 : vector<8x1xf32> to vector<8x1xf32>
    %530 = vector.broadcast %529 : vector<8x1xf32> to vector<8x128xf32>
    %531 = arith.select %527, %530, %515 : vector<8x128xi1>, vector<8x128xf32>
    %cst_140 = arith.constant 0xFF800000 : f32
    %532 = vector.broadcast %cst_140 : f32 to vector<8x128xf32>
    %533 = arith.select %527, %532, %517 : vector<8x128xi1>, vector<8x128xf32>
    %cst_141 = arith.constant dense<0xFF800000> : vector<8xf32>
    %534 = vector.multi_reduction <maximumf>, %533, %cst_141 [1] : vector<8x128xf32> to vector<8xf32>
    %535 = vector.shape_cast %534 : vector<8xf32> to vector<8x1xf32>
    %536 = vector.broadcast %535 : vector<8x1xf32> to vector<8x128xf32>
    %537 = arith.cmpf oeq, %533, %536 : vector<8x128xf32>
    %c1073741824_i32_142 = arith.constant 1073741824 : i32
    %538 = vector.broadcast %c1073741824_i32_142 : i32 to vector<8x128xi32>
    %539 = arith.select %537, %6, %538 : vector<8x128xi1>, vector<8x128xi32>
    %cst_143 = arith.constant dense<2147483647> : vector<8xi32>
    %540 = vector.multi_reduction <minsi>, %539, %cst_143 [1] : vector<8x128xi32> to vector<8xi32>
    %541 = vector.shape_cast %540 : vector<8xi32> to vector<8x1xi32>
    %542 = vector.broadcast %541 : vector<8x1xi32> to vector<8x128xi32>
    %543 = arith.cmpi eq, %6, %542 : vector<8x128xi32>
    %544 = vector.extract_strided_slice %52 {offsets = [0, 30], sizes = [8, 1], strides = [1, 1]} : vector<8x32xf32> to vector<8x1xf32>
    %545 = vector.shape_cast %544 : vector<8x1xf32> to vector<8x1xf32>
    %546 = vector.broadcast %545 : vector<8x1xf32> to vector<8x128xf32>
    %547 = arith.select %543, %546, %531 : vector<8x128xi1>, vector<8x128xf32>
    %cst_144 = arith.constant 0xFF800000 : f32
    %548 = vector.broadcast %cst_144 : f32 to vector<8x128xf32>
    %549 = arith.select %543, %548, %533 : vector<8x128xi1>, vector<8x128xf32>
    %cst_145 = arith.constant dense<0xFF800000> : vector<8xf32>
    %550 = vector.multi_reduction <maximumf>, %549, %cst_145 [1] : vector<8x128xf32> to vector<8xf32>
    %551 = vector.shape_cast %550 : vector<8xf32> to vector<8x1xf32>
    %552 = vector.broadcast %551 : vector<8x1xf32> to vector<8x128xf32>
    %553 = arith.cmpf oeq, %549, %552 : vector<8x128xf32>
    %c1073741824_i32_146 = arith.constant 1073741824 : i32
    %554 = vector.broadcast %c1073741824_i32_146 : i32 to vector<8x128xi32>
    %555 = arith.select %553, %6, %554 : vector<8x128xi1>, vector<8x128xi32>
    %cst_147 = arith.constant dense<2147483647> : vector<8xi32>
    %556 = vector.multi_reduction <minsi>, %555, %cst_147 [1] : vector<8x128xi32> to vector<8xi32>
    %557 = vector.shape_cast %556 : vector<8xi32> to vector<8x1xi32>
    %558 = vector.broadcast %557 : vector<8x1xi32> to vector<8x128xi32>
    %559 = arith.cmpi eq, %6, %558 : vector<8x128xi32>
    %560 = vector.extract_strided_slice %52 {offsets = [0, 31], sizes = [8, 1], strides = [1, 1]} : vector<8x32xf32> to vector<8x1xf32>
    %561 = vector.shape_cast %560 : vector<8x1xf32> to vector<8x1xf32>
    %562 = vector.broadcast %561 : vector<8x1xf32> to vector<8x128xf32>
    %563 = arith.select %559, %562, %547 : vector<8x128xi1>, vector<8x128xf32>
    %564 = arith.mulf %0, %563 : vector<8x128xf32>
    %c0_148 = arith.constant 0 : index
    %c0_149 = arith.constant 0 : index
    %565 = vector.load %arg6[%c0_148, %c0_149] : memref<8x128xf32, #tpu.memory_space<vmem>>, vector<8x128xf32>
    tpu.vector_store %arg6[%c0_148, %c0_149], %564 {strides = array<i32>} : memref<8x128xf32, #tpu.memory_space<vmem>>, vector<8x128xf32>,
    return
  }
  func.func @transform_0(%arg0: i32) -> (i32, i32) {
    %c0_i32 = arith.constant 0 : i32
    %c0_i32_0 = arith.constant 0 : i32
    return %arg0, %c0_i32 : i32, i32
  }
  func.func @transform_1(%arg0: i32) -> (i32, i32) {
    %c0_i32 = arith.constant 0 : i32
    %c0_i32_0 = arith.constant 0 : i32
    return %arg0, %c0_i32 : i32, i32
  }
  func.func @transform_2(%arg0: i32) -> (i32, i32) {
    %c0_i32 = arith.constant 0 : i32
    %c0_i32_0 = arith.constant 0 : i32
    %c0_i32_1 = arith.constant 0 : i32
    return %c0_i32, %c0_i32_0 : i32, i32
  }
  func.func @transform_3(%arg0: i32) -> (i32, i32) {
    %c0_i32 = arith.constant 0 : i32
    %c0_i32_0 = arith.constant 0 : i32
    return %arg0, %c0_i32 : i32, i32
  }
  func.func @transform_4(%arg0: i32) -> (i32, i32) {
    %c0_i32 = arith.constant 0 : i32
    %c0_i32_0 = arith.constant 0 : i32
    return %arg0, %c0_i32 : i32, i32
  }
  func.func @transform_5(%arg0: i32) -> (i32, i32) {
    %c0_i32 = arith.constant 0 : i32
    %c0_i32_0 = arith.constant 0 : i32
    return %arg0, %c0_i32 : i32, i32
  }
}

module attributes {stable_mosaic.version = 11 : i64} {
  func.func @_train_kernel(%arg0: i32, %arg1: memref<8x128xf32, #tpu.memory_space<vmem>>, %arg2: memref<8x16xf32, #tpu.memory_space<vmem>>, %arg3: memref<16x128xf32, #tpu.memory_space<vmem>>, %arg4: memref<8x16xf32, #tpu.memory_space<vmem>>, %arg5: memref<8x32xf32, #tpu.memory_space<vmem>>, %arg6: memref<8x128xf32, #tpu.memory_space<vmem>>) attributes {dimension_semantics = [#tpu.dimension_semantics<parallel>], iteration_bounds = array<i64: 2>, scalar_prefetch = 0 : i64, scratch_operands = 0 : i64, tpu.core_type = #tpu.core_type<tc>, window_params = [{transform_indices = @transform_0, window_bounds = array<i64: 8, 128>}, {transform_indices = @transform_1, window_bounds = array<i64: 8, 16>}, {pipeline_mode = #tpu.pipeline_mode<synchronous>, transform_indices = @transform_2, window_bounds = array<i64: 16, 128>}, {transform_indices = @transform_3, window_bounds = array<i64: 8, 16>}, {transform_indices = @transform_4, window_bounds = array<i64: 8, 32>}, {transform_indices = @transform_5, window_bounds = array<i64: 8, 128>}]} {
    %c0 = arith.constant 0 : index
    %c0_0 = arith.constant 0 : index
    %0 = vector.load %arg1[%c0, %c0_0] : memref<8x128xf32, #tpu.memory_space<vmem>>, vector<8x128xf32>
    %c0_1 = arith.constant 0 : index
    %c0_2 = arith.constant 0 : index
    %1 = vector.load %arg2[%c0_1, %c0_2] : memref<8x16xf32, #tpu.memory_space<vmem>>, vector<8x16xf32>
    %c0_3 = arith.constant 0 : index
    %c0_4 = arith.constant 0 : index
    %2 = vector.load %arg3[%c0_3, %c0_4] : memref<16x128xf32, #tpu.memory_space<vmem>>, vector<16x128xf32>
    %c0_5 = arith.constant 0 : index
    %c0_6 = arith.constant 0 : index
    %3 = vector.load %arg4[%c0_5, %c0_6] : memref<8x16xf32, #tpu.memory_space<vmem>>, vector<8x16xf32>
    %cst = arith.constant dense<0.000000e+00> : vector<8x128xf32>
    %4 = tpu.matmul %3, %2, %cst {dimension_numbers = #tpu.dot_dimension_numbers<[1], [0], [0], [1], [0, 0, 1, 1], [], []>} : vector<8x16xf32>, vector<16x128xf32>, vector<8x128xf32> -> vector<8x128xf32>
    %5 = tpu.iota {dimensions = array<i32: 1>} : vector<8x16xi32>
    %6 = tpu.iota {dimensions = array<i32: 1>} : vector<8x128xi32>
    %cst_7 = arith.constant 0.000000e+00 : f32
    %7 = vector.broadcast %cst_7 : f32 to vector<8x128xf32>
    %cst_8 = arith.constant dense<0xFF800000> : vector<8xf32>
    %8 = vector.multi_reduction <maximumf>, %1, %cst_8 [1] : vector<8x16xf32> to vector<8xf32>
    %9 = vector.shape_cast %8 : vector<8xf32> to vector<8x1xf32>
    %10 = vector.broadcast %9 : vector<8x1xf32> to vector<8x16xf32>
    %11 = arith.cmpf oeq, %1, %10 : vector<8x16xf32>
    %c1073741824_i32 = arith.constant 1073741824 : i32
    %12 = vector.broadcast %c1073741824_i32 : i32 to vector<8x16xi32>
    %13 = arith.select %11, %5, %12 : vector<8x16xi1>, vector<8x16xi32>
    %cst_9 = arith.constant dense<2147483647> : vector<8xi32>
    %14 = vector.multi_reduction <minsi>, %13, %cst_9 [1] : vector<8x16xi32> to vector<8xi32>
    %15 = vector.shape_cast %14 : vector<8xi32> to vector<8x1xi32>
    %16 = vector.broadcast %15 : vector<8x1xi32> to vector<8x16xi32>
    %17 = arith.cmpi eq, %5, %16 : vector<8x16xi32>
    %18 = arith.extui %17 : vector<8x16xi1> to vector<8x16xi32>
    %19 = arith.sitofp %18 : vector<8x16xi32> to vector<8x16xf32>
    %cst_10 = arith.constant dense<0.000000e+00> : vector<8x128xf32>
    %20 = tpu.matmul %19, %2, %cst_10 {dimension_numbers = #tpu.dot_dimension_numbers<[1], [0], [0], [1], [0, 0, 1, 1], [], []>} : vector<8x16xf32>, vector<16x128xf32>, vector<8x128xf32> -> vector<8x128xf32>
    %21 = arith.subf %20, %4 : vector<8x128xf32>
    %22 = arith.mulf %0, %21 : vector<8x128xf32>
    %23 = math.absf %22 : vector<8x128xf32>
    %24 = arith.addf %7, %23 : vector<8x128xf32>
    %25 = vector.broadcast %15 : vector<8x1xi32> to vector<8x16xi32>
    %26 = arith.cmpi eq, %5, %25 : vector<8x16xi32>
    %cst_11 = arith.constant 0xFF800000 : f32
    %27 = vector.broadcast %cst_11 : f32 to vector<8x16xf32>
    %28 = arith.select %26, %27, %1 : vector<8x16xi1>, vector<8x16xf32>
    %cst_12 = arith.constant dense<0xFF800000> : vector<8xf32>
    %29 = vector.multi_reduction <maximumf>, %28, %cst_12 [1] : vector<8x16xf32> to vector<8xf32>
    %30 = vector.shape_cast %29 : vector<8xf32> to vector<8x1xf32>
    %31 = vector.broadcast %30 : vector<8x1xf32> to vector<8x16xf32>
    %32 = arith.cmpf oeq, %28, %31 : vector<8x16xf32>
    %c1073741824_i32_13 = arith.constant 1073741824 : i32
    %33 = vector.broadcast %c1073741824_i32_13 : i32 to vector<8x16xi32>
    %34 = arith.select %32, %5, %33 : vector<8x16xi1>, vector<8x16xi32>
    %cst_14 = arith.constant dense<2147483647> : vector<8xi32>
    %35 = vector.multi_reduction <minsi>, %34, %cst_14 [1] : vector<8x16xi32> to vector<8xi32>
    %36 = vector.shape_cast %35 : vector<8xi32> to vector<8x1xi32>
    %37 = vector.broadcast %36 : vector<8x1xi32> to vector<8x16xi32>
    %38 = arith.cmpi eq, %5, %37 : vector<8x16xi32>
    %39 = arith.extui %38 : vector<8x16xi1> to vector<8x16xi32>
    %40 = arith.sitofp %39 : vector<8x16xi32> to vector<8x16xf32>
    %cst_15 = arith.constant dense<0.000000e+00> : vector<8x128xf32>
    %41 = tpu.matmul %40, %2, %cst_15 {dimension_numbers = #tpu.dot_dimension_numbers<[1], [0], [0], [1], [0, 0, 1, 1], [], []>} : vector<8x16xf32>, vector<16x128xf32>, vector<8x128xf32> -> vector<8x128xf32>
    %42 = arith.subf %41, %4 : vector<8x128xf32>
    %43 = arith.mulf %0, %42 : vector<8x128xf32>
    %44 = math.absf %43 : vector<8x128xf32>
    %45 = arith.addf %24, %44 : vector<8x128xf32>
    %cst_16 = arith.constant 2.000000e+00 : f32
    %46 = vector.broadcast %cst_16 : f32 to vector<8x128xf32>
    %47 = arith.divf %45, %46 : vector<8x128xf32>
    %c0_17 = arith.constant 0 : index
    %c0_18 = arith.constant 0 : index
    %48 = vector.load %arg5[%c0_17, %c0_18] : memref<8x32xf32, #tpu.memory_space<vmem>>, vector<8x32xf32>
    %cst_19 = arith.constant 8.000000e-01 : f32
    %49 = vector.broadcast %cst_19 : f32 to vector<8x32xf32>
    %50 = arith.cmpf ogt, %48, %49 : vector<8x32xf32>
    %51 = arith.extui %50 : vector<8x32xi1> to vector<8x32xi32>
    %52 = arith.sitofp %51 : vector<8x32xi32> to vector<8x32xf32>
    %cst_20 = arith.constant 1.000000e+00 : f32
    %53 = vector.broadcast %cst_20 : f32 to vector<8x128xf32>
    %cst_21 = arith.constant dense<0xFF800000> : vector<8xf32>
    %54 = vector.multi_reduction <maximumf>, %47, %cst_21 [1] : vector<8x128xf32> to vector<8xf32>
    %55 = vector.shape_cast %54 : vector<8xf32> to vector<8x1xf32>
    %56 = vector.broadcast %55 : vector<8x1xf32> to vector<8x128xf32>
    %57 = arith.cmpf oeq, %47, %56 : vector<8x128xf32>
    %c1073741824_i32_22 = arith.constant 1073741824 : i32
    %58 = vector.broadcast %c1073741824_i32_22 : i32 to vector<8x128xi32>
    %59 = arith.select %57, %6, %58 : vector<8x128xi1>, vector<8x128xi32>
    %cst_23 = arith.constant dense<2147483647> : vector<8xi32>
    %60 = vector.multi_reduction <minsi>, %59, %cst_23 [1] : vector<8x128xi32> to vector<8xi32>
    %61 = vector.shape_cast %60 : vector<8xi32> to vector<8x1xi32>
    %62 = vector.broadcast %61 : vector<8x1xi32> to vector<8x128xi32>
    %63 = arith.cmpi eq, %6, %62 : vector<8x128xi32>
    %64 = vector.extract_strided_slice %52 {offsets = [0, 0], sizes = [8, 1], strides = [1, 1]} : vector<8x32xf32> to vector<8x1xf32>
    %65 = vector.shape_cast %64 : vector<8x1xf32> to vector<8x1xf32>
    %66 = vector.broadcast %65 : vector<8x1xf32> to vector<8x128xf32>
    %67 = arith.select %63, %66, %53 : vector<8x128xi1>, vector<8x128xf32>
    %cst_24 = arith.constant 0xFF800000 : f32
    %68 = vector.broadcast %cst_24 : f32 to vector<8x128xf32>
    %69 = arith.select %63, %68, %47 : vector<8x128xi1>, vector<8x128xf32>
    %cst_25 = arith.constant dense<0xFF800000> : vector<8xf32>
    %70 = vector.multi_reduction <maximumf>, %69, %cst_25 [1] : vector<8x128xf32> to vector<8xf32>
    %71 = vector.shape_cast %70 : vector<8xf32> to vector<8x1xf32>
    %72 = vector.broadcast %71 : vector<8x1xf32> to vector<8x128xf32>
    %73 = arith.cmpf oeq, %69, %72 : vector<8x128xf32>
    %c1073741824_i32_26 = arith.constant 1073741824 : i32
    %74 = vector.broadcast %c1073741824_i32_26 : i32 to vector<8x128xi32>
    %75 = arith.select %73, %6, %74 : vector<8x128xi1>, vector<8x128xi32>
    %cst_27 = arith.constant dense<2147483647> : vector<8xi32>
    %76 = vector.multi_reduction <minsi>, %75, %cst_27 [1] : vector<8x128xi32> to vector<8xi32>
    %77 = vector.shape_cast %76 : vector<8xi32> to vector<8x1xi32>
    %78 = vector.broadcast %77 : vector<8x1xi32> to vector<8x128xi32>
    %79 = arith.cmpi eq, %6, %78 : vector<8x128xi32>
    %80 = vector.extract_strided_slice %52 {offsets = [0, 1], sizes = [8, 1], strides = [1, 1]} : vector<8x32xf32> to vector<8x1xf32>
    %81 = vector.shape_cast %80 : vector<8x1xf32> to vector<8x1xf32>
    %82 = vector.broadcast %81 : vector<8x1xf32> to vector<8x128xf32>
    %83 = arith.select %79, %82, %67 : vector<8x128xi1>, vector<8x128xf32>
    %cst_28 = arith.constant 0xFF800000 : f32
    %84 = vector.broadcast %cst_28 : f32 to vector<8x128xf32>
    %85 = arith.select %79, %84, %69 : vector<8x128xi1>, vector<8x128xf32>
    %cst_29 = arith.constant dense<0xFF800000> : vector<8xf32>
    %86 = vector.multi_reduction <maximumf>, %85, %cst_29 [1] : vector<8x128xf32> to vector<8xf32>
    %87 = vector.shape_cast %86 : vector<8xf32> to vector<8x1xf32>
    %88 = vector.broadcast %87 : vector<8x1xf32> to vector<8x128xf32>
    %89 = arith.cmpf oeq, %85, %88 : vector<8x128xf32>
    %c1073741824_i32_30 = arith.constant 1073741824 : i32
    %90 = vector.broadcast %c1073741824_i32_30 : i32 to vector<8x128xi32>
    %91 = arith.select %89, %6, %90 : vector<8x128xi1>, vector<8x128xi32>
    %cst_31 = arith.constant dense<2147483647> : vector<8xi32>
    %92 = vector.multi_reduction <minsi>, %91, %cst_31 [1] : vector<8x128xi32> to vector<8xi32>
    %93 = vector.shape_cast %92 : vector<8xi32> to vector<8x1xi32>
    %94 = vector.broadcast %93 : vector<8x1xi32> to vector<8x128xi32>
    %95 = arith.cmpi eq, %6, %94 : vector<8x128xi32>
    %96 = vector.extract_strided_slice %52 {offsets = [0, 2], sizes = [8, 1], strides = [1, 1]} : vector<8x32xf32> to vector<8x1xf32>
    %97 = vector.shape_cast %96 : vector<8x1xf32> to vector<8x1xf32>
    %98 = vector.broadcast %97 : vector<8x1xf32> to vector<8x128xf32>
    %99 = arith.select %95, %98, %83 : vector<8x128xi1>, vector<8x128xf32>
    %cst_32 = arith.constant 0xFF800000 : f32
    %100 = vector.broadcast %cst_32 : f32 to vector<8x128xf32>
    %101 = arith.select %95, %100, %85 : vector<8x128xi1>, vector<8x128xf32>
    %cst_33 = arith.constant dense<0xFF800000> : vector<8xf32>
    %102 = vector.multi_reduction <maximumf>, %101, %cst_33 [1] : vector<8x128xf32> to vector<8xf32>
    %103 = vector.shape_cast %102 : vector<8xf32> to vector<8x1xf32>
    %104 = vector.broadcast %103 : vector<8x1xf32> to vector<8x128xf32>
    %105 = arith.cmpf oeq, %101, %104 : vector<8x128xf32>
    %c1073741824_i32_34 = arith.constant 1073741824 : i32
    %106 = vector.broadcast %c1073741824_i32_34 : i32 to vector<8x128xi32>
    %107 = arith.select %105, %6, %106 : vector<8x128xi1>, vector<8x128xi32>
    %cst_35 = arith.constant dense<2147483647> : vector<8xi32>
    %108 = vector.multi_reduction <minsi>, %107, %cst_35 [1] : vector<8x128xi32> to vector<8xi32>
    %109 = vector.shape_cast %108 : vector<8xi32> to vector<8x1xi32>
    %110 = vector.broadcast %109 : vector<8x1xi32> to vector<8x128xi32>
    %111 = arith.cmpi eq, %6, %110 : vector<8x128xi32>
    %112 = vector.extract_strided_slice %52 {offsets = [0, 3], sizes = [8, 1], strides = [1, 1]} : vector<8x32xf32> to vector<8x1xf32>
    %113 = vector.shape_cast %112 : vector<8x1xf32> to vector<8x1xf32>
    %114 = vector.broadcast %113 : vector<8x1xf32> to vector<8x128xf32>
    %115 = arith.select %111, %114, %99 : vector<8x128xi1>, vector<8x128xf32>
    %cst_36 = arith.constant 0xFF800000 : f32
    %116 = vector.broadcast %cst_36 : f32 to vector<8x128xf32>
    %117 = arith.select %111, %116, %101 : vector<8x128xi1>, vector<8x128xf32>
    %cst_37 = arith.constant dense<0xFF800000> : vector<8xf32>
    %118 = vector.multi_reduction <maximumf>, %117, %cst_37 [1] : vector<8x128xf32> to vector<8xf32>
    %119 = vector.shape_cast %118 : vector<8xf32> to vector<8x1xf32>
    %120 = vector.broadcast %119 : vector<8x1xf32> to vector<8x128xf32>
    %121 = arith.cmpf oeq, %117, %120 : vector<8x128xf32>
    %c1073741824_i32_38 = arith.constant 1073741824 : i32
    %122 = vector.broadcast %c1073741824_i32_38 : i32 to vector<8x128xi32>
    %123 = arith.select %121, %6, %122 : vector<8x128xi1>, vector<8x128xi32>
    %cst_39 = arith.constant dense<2147483647> : vector<8xi32>
    %124 = vector.multi_reduction <minsi>, %123, %cst_39 [1] : vector<8x128xi32> to vector<8xi32>
    %125 = vector.shape_cast %124 : vector<8xi32> to vector<8x1xi32>
    %126 = vector.broadcast %125 : vector<8x1xi32> to vector<8x128xi32>
    %127 = arith.cmpi eq, %6, %126 : vector<8x128xi32>
    %128 = vector.extract_strided_slice %52 {offsets = [0, 4], sizes = [8, 1], strides = [1, 1]} : vector<8x32xf32> to vector<8x1xf32>
    %129 = vector.shape_cast %128 : vector<8x1xf32> to vector<8x1xf32>
    %130 = vector.broadcast %129 : vector<8x1xf32> to vector<8x128xf32>
    %131 = arith.select %127, %130, %115 : vector<8x128xi1>, vector<8x128xf32>
    %cst_40 = arith.constant 0xFF800000 : f32
    %132 = vector.broadcast %cst_40 : f32 to vector<8x128xf32>
    %133 = arith.select %127, %132, %117 : vector<8x128xi1>, vector<8x128xf32>
    %cst_41 = arith.constant dense<0xFF800000> : vector<8xf32>
    %134 = vector.multi_reduction <maximumf>, %133, %cst_41 [1] : vector<8x128xf32> to vector<8xf32>
    %135 = vector.shape_cast %134 : vector<8xf32> to vector<8x1xf32>
    %136 = vector.broadcast %135 : vector<8x1xf32> to vector<8x128xf32>
    %137 = arith.cmpf oeq, %133, %136 : vector<8x128xf32>
    %c1073741824_i32_42 = arith.constant 1073741824 : i32
    %138 = vector.broadcast %c1073741824_i32_42 : i32 to vector<8x128xi32>
    %139 = arith.select %137, %6, %138 : vector<8x128xi1>, vector<8x128xi32>
    %cst_43 = arith.constant dense<2147483647> : vector<8xi32>
    %140 = vector.multi_reduction <minsi>, %139, %cst_43 [1] : vector<8x128xi32> to vector<8xi32>
    %141 = vector.shape_cast %140 : vector<8xi32> to vector<8x1xi32>
    %142 = vector.broadcast %141 : vector<8x1xi32> to vector<8x128xi32>
    %143 = arith.cmpi eq, %6, %142 : vector<8x128xi32>
    %144 = vector.extract_strided_slice %52 {offsets = [0, 5], sizes = [8, 1], strides = [1, 1]} : vector<8x32xf32> to vector<8x1xf32>
    %145 = vector.shape_cast %144 : vector<8x1xf32> to vector<8x1xf32>
    %146 = vector.broadcast %145 : vector<8x1xf32> to vector<8x128xf32>
    %147 = arith.select %143, %146, %131 : vector<8x128xi1>, vector<8x128xf32>
    %cst_44 = arith.constant 0xFF800000 : f32
    %148 = vector.broadcast %cst_44 : f32 to vector<8x128xf32>
    %149 = arith.select %143, %148, %133 : vector<8x128xi1>, vector<8x128xf32>
    %cst_45 = arith.constant dense<0xFF800000> : vector<8xf32>
    %150 = vector.multi_reduction <maximumf>, %149, %cst_45 [1] : vector<8x128xf32> to vector<8xf32>
    %151 = vector.shape_cast %150 : vector<8xf32> to vector<8x1xf32>
    %152 = vector.broadcast %151 : vector<8x1xf32> to vector<8x128xf32>
    %153 = arith.cmpf oeq, %149, %152 : vector<8x128xf32>
    %c1073741824_i32_46 = arith.constant 1073741824 : i32
    %154 = vector.broadcast %c1073741824_i32_46 : i32 to vector<8x128xi32>
    %155 = arith.select %153, %6, %154 : vector<8x128xi1>, vector<8x128xi32>
    %cst_47 = arith.constant dense<2147483647> : vector<8xi32>
    %156 = vector.multi_reduction <minsi>, %155, %cst_47 [1] : vector<8x128xi32> to vector<8xi32>
    %157 = vector.shape_cast %156 : vector<8xi32> to vector<8x1xi32>
    %158 = vector.broadcast %157 : vector<8x1xi32> to vector<8x128xi32>
    %159 = arith.cmpi eq, %6, %158 : vector<8x128xi32>
    %160 = vector.extract_strided_slice %52 {offsets = [0, 6], sizes = [8, 1], strides = [1, 1]} : vector<8x32xf32> to vector<8x1xf32>
    %161 = vector.shape_cast %160 : vector<8x1xf32> to vector<8x1xf32>
    %162 = vector.broadcast %161 : vector<8x1xf32> to vector<8x128xf32>
    %163 = arith.select %159, %162, %147 : vector<8x128xi1>, vector<8x128xf32>
    %cst_48 = arith.constant 0xFF800000 : f32
    %164 = vector.broadcast %cst_48 : f32 to vector<8x128xf32>
    %165 = arith.select %159, %164, %149 : vector<8x128xi1>, vector<8x128xf32>
    %cst_49 = arith.constant dense<0xFF800000> : vector<8xf32>
    %166 = vector.multi_reduction <maximumf>, %165, %cst_49 [1] : vector<8x128xf32> to vector<8xf32>
    %167 = vector.shape_cast %166 : vector<8xf32> to vector<8x1xf32>
    %168 = vector.broadcast %167 : vector<8x1xf32> to vector<8x128xf32>
    %169 = arith.cmpf oeq, %165, %168 : vector<8x128xf32>
    %c1073741824_i32_50 = arith.constant 1073741824 : i32
    %170 = vector.broadcast %c1073741824_i32_50 : i32 to vector<8x128xi32>
    %171 = arith.select %169, %6, %170 : vector<8x128xi1>, vector<8x128xi32>
    %cst_51 = arith.constant dense<2147483647> : vector<8xi32>
    %172 = vector.multi_reduction <minsi>, %171, %cst_51 [1] : vector<8x128xi32> to vector<8xi32>
    %173 = vector.shape_cast %172 : vector<8xi32> to vector<8x1xi32>
    %174 = vector.broadcast %173 : vector<8x1xi32> to vector<8x128xi32>
    %175 = arith.cmpi eq, %6, %174 : vector<8x128xi32>
    %176 = vector.extract_strided_slice %52 {offsets = [0, 7], sizes = [8, 1], strides = [1, 1]} : vector<8x32xf32> to vector<8x1xf32>
    %177 = vector.shape_cast %176 : vector<8x1xf32> to vector<8x1xf32>
    %178 = vector.broadcast %177 : vector<8x1xf32> to vector<8x128xf32>
    %179 = arith.select %175, %178, %163 : vector<8x128xi1>, vector<8x128xf32>
    %cst_52 = arith.constant 0xFF800000 : f32
    %180 = vector.broadcast %cst_52 : f32 to vector<8x128xf32>
    %181 = arith.select %175, %180, %165 : vector<8x128xi1>, vector<8x128xf32>
    %cst_53 = arith.constant dense<0xFF800000> : vector<8xf32>
    %182 = vector.multi_reduction <maximumf>, %181, %cst_53 [1] : vector<8x128xf32> to vector<8xf32>
    %183 = vector.shape_cast %182 : vector<8xf32> to vector<8x1xf32>
    %184 = vector.broadcast %183 : vector<8x1xf32> to vector<8x128xf32>
    %185 = arith.cmpf oeq, %181, %184 : vector<8x128xf32>
    %c1073741824_i32_54 = arith.constant 1073741824 : i32
    %186 = vector.broadcast %c1073741824_i32_54 : i32 to vector<8x128xi32>
    %187 = arith.select %185, %6, %186 : vector<8x128xi1>, vector<8x128xi32>
    %cst_55 = arith.constant dense<2147483647> : vector<8xi32>
    %188 = vector.multi_reduction <minsi>, %187, %cst_55 [1] : vector<8x128xi32> to vector<8xi32>
    %189 = vector.shape_cast %188 : vector<8xi32> to vector<8x1xi32>
    %190 = vector.broadcast %189 : vector<8x1xi32> to vector<8x128xi32>
    %191 = arith.cmpi eq, %6, %190 : vector<8x128xi32>
    %192 = vector.extract_strided_slice %52 {offsets = [0, 8], sizes = [8, 1], strides = [1, 1]} : vector<8x32xf32> to vector<8x1xf32>
    %193 = vector.shape_cast %192 : vector<8x1xf32> to vector<8x1xf32>
    %194 = vector.broadcast %193 : vector<8x1xf32> to vector<8x128xf32>
    %195 = arith.select %191, %194, %179 : vector<8x128xi1>, vector<8x128xf32>
    %cst_56 = arith.constant 0xFF800000 : f32
    %196 = vector.broadcast %cst_56 : f32 to vector<8x128xf32>
    %197 = arith.select %191, %196, %181 : vector<8x128xi1>, vector<8x128xf32>
    %cst_57 = arith.constant dense<0xFF800000> : vector<8xf32>
    %198 = vector.multi_reduction <maximumf>, %197, %cst_57 [1] : vector<8x128xf32> to vector<8xf32>
    %199 = vector.shape_cast %198 : vector<8xf32> to vector<8x1xf32>
    %200 = vector.broadcast %199 : vector<8x1xf32> to vector<8x128xf32>
    %201 = arith.cmpf oeq, %197, %200 : vector<8x128xf32>
    %c1073741824_i32_58 = arith.constant 1073741824 : i32
    %202 = vector.broadcast %c1073741824_i32_58 : i32 to vector<8x128xi32>
    %203 = arith.select %201, %6, %202 : vector<8x128xi1>, vector<8x128xi32>
    %cst_59 = arith.constant dense<2147483647> : vector<8xi32>
    %204 = vector.multi_reduction <minsi>, %203, %cst_59 [1] : vector<8x128xi32> to vector<8xi32>
    %205 = vector.shape_cast %204 : vector<8xi32> to vector<8x1xi32>
    %206 = vector.broadcast %205 : vector<8x1xi32> to vector<8x128xi32>
    %207 = arith.cmpi eq, %6, %206 : vector<8x128xi32>
    %208 = vector.extract_strided_slice %52 {offsets = [0, 9], sizes = [8, 1], strides = [1, 1]} : vector<8x32xf32> to vector<8x1xf32>
    %209 = vector.shape_cast %208 : vector<8x1xf32> to vector<8x1xf32>
    %210 = vector.broadcast %209 : vector<8x1xf32> to vector<8x128xf32>
    %211 = arith.select %207, %210, %195 : vector<8x128xi1>, vector<8x128xf32>
    %cst_60 = arith.constant 0xFF800000 : f32
    %212 = vector.broadcast %cst_60 : f32 to vector<8x128xf32>
    %213 = arith.select %207, %212, %197 : vector<8x128xi1>, vector<8x128xf32>
    %cst_61 = arith.constant dense<0xFF800000> : vector<8xf32>
    %214 = vector.multi_reduction <maximumf>, %213, %cst_61 [1] : vector<8x128xf32> to vector<8xf32>
    %215 = vector.shape_cast %214 : vector<8xf32> to vector<8x1xf32>
    %216 = vector.broadcast %215 : vector<8x1xf32> to vector<8x128xf32>
    %217 = arith.cmpf oeq, %213, %216 : vector<8x128xf32>
    %c1073741824_i32_62 = arith.constant 1073741824 : i32
    %218 = vector.broadcast %c1073741824_i32_62 : i32 to vector<8x128xi32>
    %219 = arith.select %217, %6, %218 : vector<8x128xi1>, vector<8x128xi32>
    %cst_63 = arith.constant dense<2147483647> : vector<8xi32>
    %220 = vector.multi_reduction <minsi>, %219, %cst_63 [1] : vector<8x128xi32> to vector<8xi32>
    %221 = vector.shape_cast %220 : vector<8xi32> to vector<8x1xi32>
    %222 = vector.broadcast %221 : vector<8x1xi32> to vector<8x128xi32>
    %223 = arith.cmpi eq, %6, %222 : vector<8x128xi32>
    %224 = vector.extract_strided_slice %52 {offsets = [0, 10], sizes = [8, 1], strides = [1, 1]} : vector<8x32xf32> to vector<8x1xf32>
    %225 = vector.shape_cast %224 : vector<8x1xf32> to vector<8x1xf32>
    %226 = vector.broadcast %225 : vector<8x1xf32> to vector<8x128xf32>
    %227 = arith.select %223, %226, %211 : vector<8x128xi1>, vector<8x128xf32>
    %cst_64 = arith.constant 0xFF800000 : f32
    %228 = vector.broadcast %cst_64 : f32 to vector<8x128xf32>
    %229 = arith.select %223, %228, %213 : vector<8x128xi1>, vector<8x128xf32>
    %cst_65 = arith.constant dense<0xFF800000> : vector<8xf32>
    %230 = vector.multi_reduction <maximumf>, %229, %cst_65 [1] : vector<8x128xf32> to vector<8xf32>
    %231 = vector.shape_cast %230 : vector<8xf32> to vector<8x1xf32>
    %232 = vector.broadcast %231 : vector<8x1xf32> to vector<8x128xf32>
    %233 = arith.cmpf oeq, %229, %232 : vector<8x128xf32>
    %c1073741824_i32_66 = arith.constant 1073741824 : i32
    %234 = vector.broadcast %c1073741824_i32_66 : i32 to vector<8x128xi32>
    %235 = arith.select %233, %6, %234 : vector<8x128xi1>, vector<8x128xi32>
    %cst_67 = arith.constant dense<2147483647> : vector<8xi32>
    %236 = vector.multi_reduction <minsi>, %235, %cst_67 [1] : vector<8x128xi32> to vector<8xi32>
    %237 = vector.shape_cast %236 : vector<8xi32> to vector<8x1xi32>
    %238 = vector.broadcast %237 : vector<8x1xi32> to vector<8x128xi32>
    %239 = arith.cmpi eq, %6, %238 : vector<8x128xi32>
    %240 = vector.extract_strided_slice %52 {offsets = [0, 11], sizes = [8, 1], strides = [1, 1]} : vector<8x32xf32> to vector<8x1xf32>
    %241 = vector.shape_cast %240 : vector<8x1xf32> to vector<8x1xf32>
    %242 = vector.broadcast %241 : vector<8x1xf32> to vector<8x128xf32>
    %243 = arith.select %239, %242, %227 : vector<8x128xi1>, vector<8x128xf32>
    %cst_68 = arith.constant 0xFF800000 : f32
    %244 = vector.broadcast %cst_68 : f32 to vector<8x128xf32>
    %245 = arith.select %239, %244, %229 : vector<8x128xi1>, vector<8x128xf32>
    %cst_69 = arith.constant dense<0xFF800000> : vector<8xf32>
    %246 = vector.multi_reduction <maximumf>, %245, %cst_69 [1] : vector<8x128xf32> to vector<8xf32>
    %247 = vector.shape_cast %246 : vector<8xf32> to vector<8x1xf32>
    %248 = vector.broadcast %247 : vector<8x1xf32> to vector<8x128xf32>
    %249 = arith.cmpf oeq, %245, %248 : vector<8x128xf32>
    %c1073741824_i32_70 = arith.constant 1073741824 : i32
    %250 = vector.broadcast %c1073741824_i32_70 : i32 to vector<8x128xi32>
    %251 = arith.select %249, %6, %250 : vector<8x128xi1>, vector<8x128xi32>
    %cst_71 = arith.constant dense<2147483647> : vector<8xi32>
    %252 = vector.multi_reduction <minsi>, %251, %cst_71 [1] : vector<8x128xi32> to vector<8xi32>
    %253 = vector.shape_cast %252 : vector<8xi32> to vector<8x1xi32>
    %254 = vector.broadcast %253 : vector<8x1xi32> to vector<8x128xi32>
    %255 = arith.cmpi eq, %6, %254 : vector<8x128xi32>
    %256 = vector.extract_strided_slice %52 {offsets = [0, 12], sizes = [8, 1], strides = [1, 1]} : vector<8x32xf32> to vector<8x1xf32>
    %257 = vector.shape_cast %256 : vector<8x1xf32> to vector<8x1xf32>
    %258 = vector.broadcast %257 : vector<8x1xf32> to vector<8x128xf32>
    %259 = arith.select %255, %258, %243 : vector<8x128xi1>, vector<8x128xf32>
    %cst_72 = arith.constant 0xFF800000 : f32
    %260 = vector.broadcast %cst_72 : f32 to vector<8x128xf32>
    %261 = arith.select %255, %260, %245 : vector<8x128xi1>, vector<8x128xf32>
    %cst_73 = arith.constant dense<0xFF800000> : vector<8xf32>
    %262 = vector.multi_reduction <maximumf>, %261, %cst_73 [1] : vector<8x128xf32> to vector<8xf32>
    %263 = vector.shape_cast %262 : vector<8xf32> to vector<8x1xf32>
    %264 = vector.broadcast %263 : vector<8x1xf32> to vector<8x128xf32>
    %265 = arith.cmpf oeq, %261, %264 : vector<8x128xf32>
    %c1073741824_i32_74 = arith.constant 1073741824 : i32
    %266 = vector.broadcast %c1073741824_i32_74 : i32 to vector<8x128xi32>
    %267 = arith.select %265, %6, %266 : vector<8x128xi1>, vector<8x128xi32>
    %cst_75 = arith.constant dense<2147483647> : vector<8xi32>
    %268 = vector.multi_reduction <minsi>, %267, %cst_75 [1] : vector<8x128xi32> to vector<8xi32>
    %269 = vector.shape_cast %268 : vector<8xi32> to vector<8x1xi32>
    %270 = vector.broadcast %269 : vector<8x1xi32> to vector<8x128xi32>
    %271 = arith.cmpi eq, %6, %270 : vector<8x128xi32>
    %272 = vector.extract_strided_slice %52 {offsets = [0, 13], sizes = [8, 1], strides = [1, 1]} : vector<8x32xf32> to vector<8x1xf32>
    %273 = vector.shape_cast %272 : vector<8x1xf32> to vector<8x1xf32>
    %274 = vector.broadcast %273 : vector<8x1xf32> to vector<8x128xf32>
    %275 = arith.select %271, %274, %259 : vector<8x128xi1>, vector<8x128xf32>
    %cst_76 = arith.constant 0xFF800000 : f32
    %276 = vector.broadcast %cst_76 : f32 to vector<8x128xf32>
    %277 = arith.select %271, %276, %261 : vector<8x128xi1>, vector<8x128xf32>
    %cst_77 = arith.constant dense<0xFF800000> : vector<8xf32>
    %278 = vector.multi_reduction <maximumf>, %277, %cst_77 [1] : vector<8x128xf32> to vector<8xf32>
    %279 = vector.shape_cast %278 : vector<8xf32> to vector<8x1xf32>
    %280 = vector.broadcast %279 : vector<8x1xf32> to vector<8x128xf32>
    %281 = arith.cmpf oeq, %277, %280 : vector<8x128xf32>
    %c1073741824_i32_78 = arith.constant 1073741824 : i32
    %282 = vector.broadcast %c1073741824_i32_78 : i32 to vector<8x128xi32>
    %283 = arith.select %281, %6, %282 : vector<8x128xi1>, vector<8x128xi32>
    %cst_79 = arith.constant dense<2147483647> : vector<8xi32>
    %284 = vector.multi_reduction <minsi>, %283, %cst_79 [1] : vector<8x128xi32> to vector<8xi32>
    %285 = vector.shape_cast %284 : vector<8xi32> to vector<8x1xi32>
    %286 = vector.broadcast %285 : vector<8x1xi32> to vector<8x128xi32>
    %287 = arith.cmpi eq, %6, %286 : vector<8x128xi32>
    %288 = vector.extract_strided_slice %52 {offsets = [0, 14], sizes = [8, 1], strides = [1, 1]} : vector<8x32xf32> to vector<8x1xf32>
    %289 = vector.shape_cast %288 : vector<8x1xf32> to vector<8x1xf32>
    %290 = vector.broadcast %289 : vector<8x1xf32> to vector<8x128xf32>
    %291 = arith.select %287, %290, %275 : vector<8x128xi1>, vector<8x128xf32>
    %cst_80 = arith.constant 0xFF800000 : f32
    %292 = vector.broadcast %cst_80 : f32 to vector<8x128xf32>
    %293 = arith.select %287, %292, %277 : vector<8x128xi1>, vector<8x128xf32>
    %cst_81 = arith.constant dense<0xFF800000> : vector<8xf32>
    %294 = vector.multi_reduction <maximumf>, %293, %cst_81 [1] : vector<8x128xf32> to vector<8xf32>
    %295 = vector.shape_cast %294 : vector<8xf32> to vector<8x1xf32>
    %296 = vector.broadcast %295 : vector<8x1xf32> to vector<8x128xf32>
    %297 = arith.cmpf oeq, %293, %296 : vector<8x128xf32>
    %c1073741824_i32_82 = arith.constant 1073741824 : i32
    %298 = vector.broadcast %c1073741824_i32_82 : i32 to vector<8x128xi32>
    %299 = arith.select %297, %6, %298 : vector<8x128xi1>, vector<8x128xi32>
    %cst_83 = arith.constant dense<2147483647> : vector<8xi32>
    %300 = vector.multi_reduction <minsi>, %299, %cst_83 [1] : vector<8x128xi32> to vector<8xi32>
    %301 = vector.shape_cast %300 : vector<8xi32> to vector<8x1xi32>
    %302 = vector.broadcast %301 : vector<8x1xi32> to vector<8x128xi32>
    %303 = arith.cmpi eq, %6, %302 : vector<8x128xi32>
    %304 = vector.extract_strided_slice %52 {offsets = [0, 15], sizes = [8, 1], strides = [1, 1]} : vector<8x32xf32> to vector<8x1xf32>
    %305 = vector.shape_cast %304 : vector<8x1xf32> to vector<8x1xf32>
    %306 = vector.broadcast %305 : vector<8x1xf32> to vector<8x128xf32>
    %307 = arith.select %303, %306, %291 : vector<8x128xi1>, vector<8x128xf32>
    %cst_84 = arith.constant 0xFF800000 : f32
    %308 = vector.broadcast %cst_84 : f32 to vector<8x128xf32>
    %309 = arith.select %303, %308, %293 : vector<8x128xi1>, vector<8x128xf32>
    %cst_85 = arith.constant dense<0xFF800000> : vector<8xf32>
    %310 = vector.multi_reduction <maximumf>, %309, %cst_85 [1] : vector<8x128xf32> to vector<8xf32>
    %311 = vector.shape_cast %310 : vector<8xf32> to vector<8x1xf32>
    %312 = vector.broadcast %311 : vector<8x1xf32> to vector<8x128xf32>
    %313 = arith.cmpf oeq, %309, %312 : vector<8x128xf32>
    %c1073741824_i32_86 = arith.constant 1073741824 : i32
    %314 = vector.broadcast %c1073741824_i32_86 : i32 to vector<8x128xi32>
    %315 = arith.select %313, %6, %314 : vector<8x128xi1>, vector<8x128xi32>
    %cst_87 = arith.constant dense<2147483647> : vector<8xi32>
    %316 = vector.multi_reduction <minsi>, %315, %cst_87 [1] : vector<8x128xi32> to vector<8xi32>
    %317 = vector.shape_cast %316 : vector<8xi32> to vector<8x1xi32>
    %318 = vector.broadcast %317 : vector<8x1xi32> to vector<8x128xi32>
    %319 = arith.cmpi eq, %6, %318 : vector<8x128xi32>
    %320 = vector.extract_strided_slice %52 {offsets = [0, 16], sizes = [8, 1], strides = [1, 1]} : vector<8x32xf32> to vector<8x1xf32>
    %321 = vector.shape_cast %320 : vector<8x1xf32> to vector<8x1xf32>
    %322 = vector.broadcast %321 : vector<8x1xf32> to vector<8x128xf32>
    %323 = arith.select %319, %322, %307 : vector<8x128xi1>, vector<8x128xf32>
    %cst_88 = arith.constant 0xFF800000 : f32
    %324 = vector.broadcast %cst_88 : f32 to vector<8x128xf32>
    %325 = arith.select %319, %324, %309 : vector<8x128xi1>, vector<8x128xf32>
    %cst_89 = arith.constant dense<0xFF800000> : vector<8xf32>
    %326 = vector.multi_reduction <maximumf>, %325, %cst_89 [1] : vector<8x128xf32> to vector<8xf32>
    %327 = vector.shape_cast %326 : vector<8xf32> to vector<8x1xf32>
    %328 = vector.broadcast %327 : vector<8x1xf32> to vector<8x128xf32>
    %329 = arith.cmpf oeq, %325, %328 : vector<8x128xf32>
    %c1073741824_i32_90 = arith.constant 1073741824 : i32
    %330 = vector.broadcast %c1073741824_i32_90 : i32 to vector<8x128xi32>
    %331 = arith.select %329, %6, %330 : vector<8x128xi1>, vector<8x128xi32>
    %cst_91 = arith.constant dense<2147483647> : vector<8xi32>
    %332 = vector.multi_reduction <minsi>, %331, %cst_91 [1] : vector<8x128xi32> to vector<8xi32>
    %333 = vector.shape_cast %332 : vector<8xi32> to vector<8x1xi32>
    %334 = vector.broadcast %333 : vector<8x1xi32> to vector<8x128xi32>
    %335 = arith.cmpi eq, %6, %334 : vector<8x128xi32>
    %336 = vector.extract_strided_slice %52 {offsets = [0, 17], sizes = [8, 1], strides = [1, 1]} : vector<8x32xf32> to vector<8x1xf32>
    %337 = vector.shape_cast %336 : vector<8x1xf32> to vector<8x1xf32>
    %338 = vector.broadcast %337 : vector<8x1xf32> to vector<8x128xf32>
    %339 = arith.select %335, %338, %323 : vector<8x128xi1>, vector<8x128xf32>
    %cst_92 = arith.constant 0xFF800000 : f32
    %340 = vector.broadcast %cst_92 : f32 to vector<8x128xf32>
    %341 = arith.select %335, %340, %325 : vector<8x128xi1>, vector<8x128xf32>
    %cst_93 = arith.constant dense<0xFF800000> : vector<8xf32>
    %342 = vector.multi_reduction <maximumf>, %341, %cst_93 [1] : vector<8x128xf32> to vector<8xf32>
    %343 = vector.shape_cast %342 : vector<8xf32> to vector<8x1xf32>
    %344 = vector.broadcast %343 : vector<8x1xf32> to vector<8x128xf32>
    %345 = arith.cmpf oeq, %341, %344 : vector<8x128xf32>
    %c1073741824_i32_94 = arith.constant 1073741824 : i32
    %346 = vector.broadcast %c1073741824_i32_94 : i32 to vector<8x128xi32>
    %347 = arith.select %345, %6, %346 : vector<8x128xi1>, vector<8x128xi32>
    %cst_95 = arith.constant dense<2147483647> : vector<8xi32>
    %348 = vector.multi_reduction <minsi>, %347, %cst_95 [1] : vector<8x128xi32> to vector<8xi32>
    %349 = vector.shape_cast %348 : vector<8xi32> to vector<8x1xi32>
    %350 = vector.broadcast %349 : vector<8x1xi32> to vector<8x128xi32>
    %351 = arith.cmpi eq, %6, %350 : vector<8x128xi32>
    %352 = vector.extract_strided_slice %52 {offsets = [0, 18], sizes = [8, 1], strides = [1, 1]} : vector<8x32xf32> to vector<8x1xf32>
    %353 = vector.shape_cast %352 : vector<8x1xf32> to vector<8x1xf32>
    %354 = vector.broadcast %353 : vector<8x1xf32> to vector<8x128xf32>
    %355 = arith.select %351, %354, %339 : vector<8x128xi1>, vector<8x128xf32>
    %cst_96 = arith.constant 0xFF800000 : f32
    %356 = vector.broadcast %cst_96 : f32 to vector<8x128xf32>
    %357 = arith.select %351, %356, %341 : vector<8x128xi1>, vector<8x128xf32>
    %cst_97 = arith.constant dense<0xFF800000> : vector<8xf32>
    %358 = vector.multi_reduction <maximumf>, %357, %cst_97 [1] : vector<8x128xf32> to vector<8xf32>
    %359 = vector.shape_cast %358 : vector<8xf32> to vector<8x1xf32>
    %360 = vector.broadcast %359 : vector<8x1xf32> to vector<8x128xf32>
    %361 = arith.cmpf oeq, %357, %360 : vector<8x128xf32>
    %c1073741824_i32_98 = arith.constant 1073741824 : i32
    %362 = vector.broadcast %c1073741824_i32_98 : i32 to vector<8x128xi32>
    %363 = arith.select %361, %6, %362 : vector<8x128xi1>, vector<8x128xi32>
    %cst_99 = arith.constant dense<2147483647> : vector<8xi32>
    %364 = vector.multi_reduction <minsi>, %363, %cst_99 [1] : vector<8x128xi32> to vector<8xi32>
    %365 = vector.shape_cast %364 : vector<8xi32> to vector<8x1xi32>
    %366 = vector.broadcast %365 : vector<8x1xi32> to vector<8x128xi32>
    %367 = arith.cmpi eq, %6, %366 : vector<8x128xi32>
    %368 = vector.extract_strided_slice %52 {offsets = [0, 19], sizes = [8, 1], strides = [1, 1]} : vector<8x32xf32> to vector<8x1xf32>
    %369 = vector.shape_cast %368 : vector<8x1xf32> to vector<8x1xf32>
    %370 = vector.broadcast %369 : vector<8x1xf32> to vector<8x128xf32>
    %371 = arith.select %367, %370, %355 : vector<8x128xi1>, vector<8x128xf32>
    %cst_100 = arith.constant 0xFF800000 : f32
    %372 = vector.broadcast %cst_100 : f32 to vector<8x128xf32>
    %373 = arith.select %367, %372, %357 : vector<8x128xi1>, vector<8x128xf32>
    %cst_101 = arith.constant dense<0xFF800000> : vector<8xf32>
    %374 = vector.multi_reduction <maximumf>, %373, %cst_101 [1] : vector<8x128xf32> to vector<8xf32>
    %375 = vector.shape_cast %374 : vector<8xf32> to vector<8x1xf32>
    %376 = vector.broadcast %375 : vector<8x1xf32> to vector<8x128xf32>
    %377 = arith.cmpf oeq, %373, %376 : vector<8x128xf32>
    %c1073741824_i32_102 = arith.constant 1073741824 : i32
    %378 = vector.broadcast %c1073741824_i32_102 : i32 to vector<8x128xi32>
    %379 = arith.select %377, %6, %378 : vector<8x128xi1>, vector<8x128xi32>
    %cst_103 = arith.constant dense<2147483647> : vector<8xi32>
    %380 = vector.multi_reduction <minsi>, %379, %cst_103 [1] : vector<8x128xi32> to vector<8xi32>
    %381 = vector.shape_cast %380 : vector<8xi32> to vector<8x1xi32>
    %382 = vector.broadcast %381 : vector<8x1xi32> to vector<8x128xi32>
    %383 = arith.cmpi eq, %6, %382 : vector<8x128xi32>
    %384 = vector.extract_strided_slice %52 {offsets = [0, 20], sizes = [8, 1], strides = [1, 1]} : vector<8x32xf32> to vector<8x1xf32>
    %385 = vector.shape_cast %384 : vector<8x1xf32> to vector<8x1xf32>
    %386 = vector.broadcast %385 : vector<8x1xf32> to vector<8x128xf32>
    %387 = arith.select %383, %386, %371 : vector<8x128xi1>, vector<8x128xf32>
    %cst_104 = arith.constant 0xFF800000 : f32
    %388 = vector.broadcast %cst_104 : f32 to vector<8x128xf32>
    %389 = arith.select %383, %388, %373 : vector<8x128xi1>, vector<8x128xf32>
    %cst_105 = arith.constant dense<0xFF800000> : vector<8xf32>
    %390 = vector.multi_reduction <maximumf>, %389, %cst_105 [1] : vector<8x128xf32> to vector<8xf32>
    %391 = vector.shape_cast %390 : vector<8xf32> to vector<8x1xf32>
    %392 = vector.broadcast %391 : vector<8x1xf32> to vector<8x128xf32>
    %393 = arith.cmpf oeq, %389, %392 : vector<8x128xf32>
    %c1073741824_i32_106 = arith.constant 1073741824 : i32
    %394 = vector.broadcast %c1073741824_i32_106 : i32 to vector<8x128xi32>
    %395 = arith.select %393, %6, %394 : vector<8x128xi1>, vector<8x128xi32>
    %cst_107 = arith.constant dense<2147483647> : vector<8xi32>
    %396 = vector.multi_reduction <minsi>, %395, %cst_107 [1] : vector<8x128xi32> to vector<8xi32>
    %397 = vector.shape_cast %396 : vector<8xi32> to vector<8x1xi32>
    %398 = vector.broadcast %397 : vector<8x1xi32> to vector<8x128xi32>
    %399 = arith.cmpi eq, %6, %398 : vector<8x128xi32>
    %400 = vector.extract_strided_slice %52 {offsets = [0, 21], sizes = [8, 1], strides = [1, 1]} : vector<8x32xf32> to vector<8x1xf32>
    %401 = vector.shape_cast %400 : vector<8x1xf32> to vector<8x1xf32>
    %402 = vector.broadcast %401 : vector<8x1xf32> to vector<8x128xf32>
    %403 = arith.select %399, %402, %387 : vector<8x128xi1>, vector<8x128xf32>
    %cst_108 = arith.constant 0xFF800000 : f32
    %404 = vector.broadcast %cst_108 : f32 to vector<8x128xf32>
    %405 = arith.select %399, %404, %389 : vector<8x128xi1>, vector<8x128xf32>
    %cst_109 = arith.constant dense<0xFF800000> : vector<8xf32>
    %406 = vector.multi_reduction <maximumf>, %405, %cst_109 [1] : vector<8x128xf32> to vector<8xf32>
    %407 = vector.shape_cast %406 : vector<8xf32> to vector<8x1xf32>
    %408 = vector.broadcast %407 : vector<8x1xf32> to vector<8x128xf32>
    %409 = arith.cmpf oeq, %405, %408 : vector<8x128xf32>
    %c1073741824_i32_110 = arith.constant 1073741824 : i32
    %410 = vector.broadcast %c1073741824_i32_110 : i32 to vector<8x128xi32>
    %411 = arith.select %409, %6, %410 : vector<8x128xi1>, vector<8x128xi32>
    %cst_111 = arith.constant dense<2147483647> : vector<8xi32>
    %412 = vector.multi_reduction <minsi>, %411, %cst_111 [1] : vector<8x128xi32> to vector<8xi32>
    %413 = vector.shape_cast %412 : vector<8xi32> to vector<8x1xi32>
    %414 = vector.broadcast %413 : vector<8x1xi32> to vector<8x128xi32>
    %415 = arith.cmpi eq, %6, %414 : vector<8x128xi32>
    %416 = vector.extract_strided_slice %52 {offsets = [0, 22], sizes = [8, 1], strides = [1, 1]} : vector<8x32xf32> to vector<8x1xf32>
    %417 = vector.shape_cast %416 : vector<8x1xf32> to vector<8x1xf32>
    %418 = vector.broadcast %417 : vector<8x1xf32> to vector<8x128xf32>
    %419 = arith.select %415, %418, %403 : vector<8x128xi1>, vector<8x128xf32>
    %cst_112 = arith.constant 0xFF800000 : f32
    %420 = vector.broadcast %cst_112 : f32 to vector<8x128xf32>
    %421 = arith.select %415, %420, %405 : vector<8x128xi1>, vector<8x128xf32>
    %cst_113 = arith.constant dense<0xFF800000> : vector<8xf32>
    %422 = vector.multi_reduction <maximumf>, %421, %cst_113 [1] : vector<8x128xf32> to vector<8xf32>
    %423 = vector.shape_cast %422 : vector<8xf32> to vector<8x1xf32>
    %424 = vector.broadcast %423 : vector<8x1xf32> to vector<8x128xf32>
    %425 = arith.cmpf oeq, %421, %424 : vector<8x128xf32>
    %c1073741824_i32_114 = arith.constant 1073741824 : i32
    %426 = vector.broadcast %c1073741824_i32_114 : i32 to vector<8x128xi32>
    %427 = arith.select %425, %6, %426 : vector<8x128xi1>, vector<8x128xi32>
    %cst_115 = arith.constant dense<2147483647> : vector<8xi32>
    %428 = vector.multi_reduction <minsi>, %427, %cst_115 [1] : vector<8x128xi32> to vector<8xi32>
    %429 = vector.shape_cast %428 : vector<8xi32> to vector<8x1xi32>
    %430 = vector.broadcast %429 : vector<8x1xi32> to vector<8x128xi32>
    %431 = arith.cmpi eq, %6, %430 : vector<8x128xi32>
    %432 = vector.extract_strided_slice %52 {offsets = [0, 23], sizes = [8, 1], strides = [1, 1]} : vector<8x32xf32> to vector<8x1xf32>
    %433 = vector.shape_cast %432 : vector<8x1xf32> to vector<8x1xf32>
    %434 = vector.broadcast %433 : vector<8x1xf32> to vector<8x128xf32>
    %435 = arith.select %431, %434, %419 : vector<8x128xi1>, vector<8x128xf32>
    %cst_116 = arith.constant 0xFF800000 : f32
    %436 = vector.broadcast %cst_116 : f32 to vector<8x128xf32>
    %437 = arith.select %431, %436, %421 : vector<8x128xi1>, vector<8x128xf32>
    %cst_117 = arith.constant dense<0xFF800000> : vector<8xf32>
    %438 = vector.multi_reduction <maximumf>, %437, %cst_117 [1] : vector<8x128xf32> to vector<8xf32>
    %439 = vector.shape_cast %438 : vector<8xf32> to vector<8x1xf32>
    %440 = vector.broadcast %439 : vector<8x1xf32> to vector<8x128xf32>
    %441 = arith.cmpf oeq, %437, %440 : vector<8x128xf32>
    %c1073741824_i32_118 = arith.constant 1073741824 : i32
    %442 = vector.broadcast %c1073741824_i32_118 : i32 to vector<8x128xi32>
    %443 = arith.select %441, %6, %442 : vector<8x128xi1>, vector<8x128xi32>
    %cst_119 = arith.constant dense<2147483647> : vector<8xi32>
    %444 = vector.multi_reduction <minsi>, %443, %cst_119 [1] : vector<8x128xi32> to vector<8xi32>
    %445 = vector.shape_cast %444 : vector<8xi32> to vector<8x1xi32>
    %446 = vector.broadcast %445 : vector<8x1xi32> to vector<8x128xi32>
    %447 = arith.cmpi eq, %6, %446 : vector<8x128xi32>
    %448 = vector.extract_strided_slice %52 {offsets = [0, 24], sizes = [8, 1], strides = [1, 1]} : vector<8x32xf32> to vector<8x1xf32>
    %449 = vector.shape_cast %448 : vector<8x1xf32> to vector<8x1xf32>
    %450 = vector.broadcast %449 : vector<8x1xf32> to vector<8x128xf32>
    %451 = arith.select %447, %450, %435 : vector<8x128xi1>, vector<8x128xf32>
    %cst_120 = arith.constant 0xFF800000 : f32
    %452 = vector.broadcast %cst_120 : f32 to vector<8x128xf32>
    %453 = arith.select %447, %452, %437 : vector<8x128xi1>, vector<8x128xf32>
    %cst_121 = arith.constant dense<0xFF800000> : vector<8xf32>
    %454 = vector.multi_reduction <maximumf>, %453, %cst_121 [1] : vector<8x128xf32> to vector<8xf32>
    %455 = vector.shape_cast %454 : vector<8xf32> to vector<8x1xf32>
    %456 = vector.broadcast %455 : vector<8x1xf32> to vector<8x128xf32>
    %457 = arith.cmpf oeq, %453, %456 : vector<8x128xf32>
    %c1073741824_i32_122 = arith.constant 1073741824 : i32
    %458 = vector.broadcast %c1073741824_i32_122 : i32 to vector<8x128xi32>
    %459 = arith.select %457, %6, %458 : vector<8x128xi1>, vector<8x128xi32>
    %cst_123 = arith.constant dense<2147483647> : vector<8xi32>
    %460 = vector.multi_reduction <minsi>, %459, %cst_123 [1] : vector<8x128xi32> to vector<8xi32>
    %461 = vector.shape_cast %460 : vector<8xi32> to vector<8x1xi32>
    %462 = vector.broadcast %461 : vector<8x1xi32> to vector<8x128xi32>
    %463 = arith.cmpi eq, %6, %462 : vector<8x128xi32>
    %464 = vector.extract_strided_slice %52 {offsets = [0, 25], sizes = [8, 1], strides = [1, 1]} : vector<8x32xf32> to vector<8x1xf32>
    %465 = vector.shape_cast %464 : vector<8x1xf32> to vector<8x1xf32>
    %466 = vector.broadcast %465 : vector<8x1xf32> to vector<8x128xf32>
    %467 = arith.select %463, %466, %451 : vector<8x128xi1>, vector<8x128xf32>
    %cst_124 = arith.constant 0xFF800000 : f32
    %468 = vector.broadcast %cst_124 : f32 to vector<8x128xf32>
    %469 = arith.select %463, %468, %453 : vector<8x128xi1>, vector<8x128xf32>
    %cst_125 = arith.constant dense<0xFF800000> : vector<8xf32>
    %470 = vector.multi_reduction <maximumf>, %469, %cst_125 [1] : vector<8x128xf32> to vector<8xf32>
    %471 = vector.shape_cast %470 : vector<8xf32> to vector<8x1xf32>
    %472 = vector.broadcast %471 : vector<8x1xf32> to vector<8x128xf32>
    %473 = arith.cmpf oeq, %469, %472 : vector<8x128xf32>
    %c1073741824_i32_126 = arith.constant 1073741824 : i32
    %474 = vector.broadcast %c1073741824_i32_126 : i32 to vector<8x128xi32>
    %475 = arith.select %473, %6, %474 : vector<8x128xi1>, vector<8x128xi32>
    %cst_127 = arith.constant dense<2147483647> : vector<8xi32>
    %476 = vector.multi_reduction <minsi>, %475, %cst_127 [1] : vector<8x128xi32> to vector<8xi32>
    %477 = vector.shape_cast %476 : vector<8xi32> to vector<8x1xi32>
    %478 = vector.broadcast %477 : vector<8x1xi32> to vector<8x128xi32>
    %479 = arith.cmpi eq, %6, %478 : vector<8x128xi32>
    %480 = vector.extract_strided_slice %52 {offsets = [0, 26], sizes = [8, 1], strides = [1, 1]} : vector<8x32xf32> to vector<8x1xf32>
    %481 = vector.shape_cast %480 : vector<8x1xf32> to vector<8x1xf32>
    %482 = vector.broadcast %481 : vector<8x1xf32> to vector<8x128xf32>
    %483 = arith.select %479, %482, %467 : vector<8x128xi1>, vector<8x128xf32>
    %cst_128 = arith.constant 0xFF800000 : f32
    %484 = vector.broadcast %cst_128 : f32 to vector<8x128xf32>
    %485 = arith.select %479, %484, %469 : vector<8x128xi1>, vector<8x128xf32>
    %cst_129 = arith.constant dense<0xFF800000> : vector<8xf32>
    %486 = vector.multi_reduction <maximumf>, %485, %cst_129 [1] : vector<8x128xf32> to vector<8xf32>
    %487 = vector.shape_cast %486 : vector<8xf32> to vector<8x1xf32>
    %488 = vector.broadcast %487 : vector<8x1xf32> to vector<8x128xf32>
    %489 = arith.cmpf oeq, %485, %488 : vector<8x128xf32>
    %c1073741824_i32_130 = arith.constant 1073741824 : i32
    %490 = vector.broadcast %c1073741824_i32_130 : i32 to vector<8x128xi32>
    %491 = arith.select %489, %6, %490 : vector<8x128xi1>, vector<8x128xi32>
    %cst_131 = arith.constant dense<2147483647> : vector<8xi32>
    %492 = vector.multi_reduction <minsi>, %491, %cst_131 [1] : vector<8x128xi32> to vector<8xi32>
    %493 = vector.shape_cast %492 : vector<8xi32> to vector<8x1xi32>
    %494 = vector.broadcast %493 : vector<8x1xi32> to vector<8x128xi32>
    %495 = arith.cmpi eq, %6, %494 : vector<8x128xi32>
    %496 = vector.extract_strided_slice %52 {offsets = [0, 27], sizes = [8, 1], strides = [1, 1]} : vector<8x32xf32> to vector<8x1xf32>
    %497 = vector.shape_cast %496 : vector<8x1xf32> to vector<8x1xf32>
    %498 = vector.broadcast %497 : vector<8x1xf32> to vector<8x128xf32>
    %499 = arith.select %495, %498, %483 : vector<8x128xi1>, vector<8x128xf32>
    %cst_132 = arith.constant 0xFF800000 : f32
    %500 = vector.broadcast %cst_132 : f32 to vector<8x128xf32>
    %501 = arith.select %495, %500, %485 : vector<8x128xi1>, vector<8x128xf32>
    %cst_133 = arith.constant dense<0xFF800000> : vector<8xf32>
    %502 = vector.multi_reduction <maximumf>, %501, %cst_133 [1] : vector<8x128xf32> to vector<8xf32>
    %503 = vector.shape_cast %502 : vector<8xf32> to vector<8x1xf32>
    %504 = vector.broadcast %503 : vector<8x1xf32> to vector<8x128xf32>
    %505 = arith.cmpf oeq, %501, %504 : vector<8x128xf32>
    %c1073741824_i32_134 = arith.constant 1073741824 : i32
    %506 = vector.broadcast %c1073741824_i32_134 : i32 to vector<8x128xi32>
    %507 = arith.select %505, %6, %506 : vector<8x128xi1>, vector<8x128xi32>
    %cst_135 = arith.constant dense<2147483647> : vector<8xi32>
    %508 = vector.multi_reduction <minsi>, %507, %cst_135 [1] : vector<8x128xi32> to vector<8xi32>
    %509 = vector.shape_cast %508 : vector<8xi32> to vector<8x1xi32>
    %510 = vector.broadcast %509 : vector<8x1xi32> to vector<8x128xi32>
    %511 = arith.cmpi eq, %6, %510 : vector<8x128xi32>
    %512 = vector.extract_strided_slice %52 {offsets = [0, 28], sizes = [8, 1], strides = [1, 1]} : vector<8x32xf32> to vector<8x1xf32>
    %513 = vector.shape_cast %512 : vector<8x1xf32> to vector<8x1xf32>
    %514 = vector.broadcast %513 : vector<8x1xf32> to vector<8x128xf32>
    %515 = arith.select %511, %514, %499 : vector<8x128xi1>, vector<8x128xf32>
    %cst_136 = arith.constant 0xFF800000 : f32
    %516 = vector.broadcast %cst_136 : f32 to vector<8x128xf32>
    %517 = arith.select %511, %516, %501 : vector<8x128xi1>, vector<8x128xf32>
    %cst_137 = arith.constant dense<0xFF800000> : vector<8xf32>
    %518 = vector.multi_reduction <maximumf>, %517, %cst_137 [1] : vector<8x128xf32> to vector<8xf32>
    %519 = vector.shape_cast %518 : vector<8xf32> to vector<8x1xf32>
    %520 = vector.broadcast %519 : vector<8x1xf32> to vector<8x128xf32>
    %521 = arith.cmpf oeq, %517, %520 : vector<8x128xf32>
    %c1073741824_i32_138 = arith.constant 1073741824 : i32
    %522 = vector.broadcast %c1073741824_i32_138 : i32 to vector<8x128xi32>
    %523 = arith.select %521, %6, %522 : vector<8x128xi1>, vector<8x128xi32>
    %cst_139 = arith.constant dense<2147483647> : vector<8xi32>
    %524 = vector.multi_reduction <minsi>, %523, %cst_139 [1] : vector<8x128xi32> to vector<8xi32>
    %525 = vector.shape_cast %524 : vector<8xi32> to vector<8x1xi32>
    %526 = vector.broadcast %525 : vector<8x1xi32> to vector<8x128xi32>
    %527 = arith.cmpi eq, %6, %526 : vector<8x128xi32>
    %528 = vector.extract_strided_slice %52 {offsets = [0, 29], sizes = [8, 1], strides = [1, 1]} : vector<8x32xf32> to vector<8x1xf32>
    %529 = vector.shape_cast %528 : vector<8x1xf32> to vector<8x1xf32>
    %530 = vector.broadcast %529 : vector<8x1xf32> to vector<8x128xf32>
    %531 = arith.select %527, %530, %515 : vector<8x128xi1>, vector<8x128xf32>
    %cst_140 = arith.constant 0xFF800000 : f32
    %532 = vector.broadcast %cst_140 : f32 to vector<8x128xf32>
    %533 = arith.select %527, %532, %517 : vector<8x128xi1>, vector<8x128xf32>
    %cst_141 = arith.constant dense<0xFF800000> : vector<8xf32>
    %534 = vector.multi_reduction <maximumf>, %533, %cst_141 [1] : vector<8x128xf32> to vector<8xf32>
    %535 = vector.shape_cast %534 : vector<8xf32> to vector<8x1xf32>
    %536 = vector.broadcast %535 : vector<8x1xf32> to vector<8x128xf32>
    %537 = arith.cmpf oeq, %533, %536 : vector<8x128xf32>
    %c1073741824_i32_142 = arith.constant 1073741824 : i32
    %538 = vector.broadcast %c1073741824_i32_142 : i32 to vector<8x128xi32>
    %539 = arith.select %537, %6, %538 : vector<8x128xi1>, vector<8x128xi32>
    %cst_143 = arith.constant dense<2147483647> : vector<8xi32>
    %540 = vector.multi_reduction <minsi>, %539, %cst_143 [1] : vector<8x128xi32> to vector<8xi32>
    %541 = vector.shape_cast %540 : vector<8xi32> to vector<8x1xi32>
    %542 = vector.broadcast %541 : vector<8x1xi32> to vector<8x128xi32>
    %543 = arith.cmpi eq, %6, %542 : vector<8x128xi32>
    %544 = vector.extract_strided_slice %52 {offsets = [0, 30], sizes = [8, 1], strides = [1, 1]} : vector<8x32xf32> to vector<8x1xf32>
    %545 = vector.shape_cast %544 : vector<8x1xf32> to vector<8x1xf32>
    %546 = vector.broadcast %545 : vector<8x1xf32> to vector<8x128xf32>
    %547 = arith.select %543, %546, %531 : vector<8x128xi1>, vector<8x128xf32>
    %cst_144 = arith.constant 0xFF800000 : f32
    %548 = vector.broadcast %cst_144 : f32 to vector<8x128xf32>
    %549 = arith.select %543, %548, %533 : vector<8x128xi1>, vector<8x128xf32>
    %cst_145 = arith.constant dense<0xFF800000> : vector<8xf32>
    %550 = vector.multi_reduction <maximumf>, %549, %cst_145 [1] : vector<8x128xf32> to vector<8xf32>
    %551 = vector.shape_cast %550 : vector<8xf32> to vector<8x1xf32>
    %552 = vector.broadcast %551 : vector<8x1xf32> to vector<8x128xf32>
    %553 = arith.cmpf oeq, %549, %552 : vector<8x128xf32>
    %c1073741824_i32_146 = arith.constant 1073741824 : i32
    %554 = vector.broadcast %c1073741824_i32_146 : i32 to vector<8x128xi32>
    %555 = arith.select %553, %6, %554 : vector<8x128xi1>, vector<8x128xi32>
    %cst_147 = arith.constant dense<2147483647> : vector<8xi32>
    %556 = vector.multi_reduction <minsi>, %555, %cst_147 [1] : vector<8x128xi32> to vector<8xi32>
    %557 = vector.shape_cast %556 : vector<8xi32> to vector<8x1xi32>
    %558 = vector.broadcast %557 : vector<8x1xi32> to vector<8x128xi32>
    %559 = arith.cmpi eq, %6, %558 : vector<8x128xi32>
    %560 = vector.extract_strided_slice %52 {offsets = [0, 31], sizes = [8, 1], strides = [1, 1]} : vector<8x32xf32> to vector<8x1xf32>
    %561 = vector.shape_cast %560 : vector<8x1xf32> to vector<8x1xf32>
    %562 = vector.broadcast %561 : vector<8x1xf32> to vector<8x128xf32>
    %563 = arith.select %559, %562, %547 : vector<8x128xi1>, vector<8x128xf32>
    %564 = arith.mulf %0, %563 : vector<8x128xf32>
    %c0_148 = arith.constant 0 : index
    %c0_149 = arith.constant 0 : index
    %565 = vector.load %arg6[%c0_148, %c0_149] : memref<8x128xf32, #tpu.memory_space<vmem>>, vector<8x128xf32>
    tpu.vector_store %arg6[%c0_148, %c0_149], %564 {strides = array<i32>} : memref<8x128xf32, #tpu.memory_space<vmem>>, vector<8x128xf32>,
    return
  }
  func.func @transform_0(%arg0: i32) -> (i32, i32) {
    %c0_i32 = arith.constant 0 : i32
    %c0_i32_0 = arith.constant 0 : i32
    return %arg0, %c0_i32 : i32, i32
  }
  func.func @transform_1(%arg0: i32) -> (i32, i32) {
    %c0_i32 = arith.constant 0 : i32
    %c0_i32_0 = arith.constant 0 : i32
    return %arg0, %c0_i32 : i32, i32
  }
  func.func @transform_2(%arg0: i32) -> (i32, i32) {
    %c0_i32 = arith.constant 0 : i32
    %c0_i32_0 = arith.constant 0 : i32
    %c0_i32_1 = arith.constant 0 : i32
    return %c0_i32, %c0_i32_0 : i32, i32
  }
  func.func @transform_3(%arg0: i32) -> (i32, i32) {
    %c0_i32 = arith.constant 0 : i32
    %c0_i32_0 = arith.constant 0 : i32
    return %arg0, %c0_i32 : i32, i32
  }
  func.func @transform_4(%arg0: i32) -> (i32, i32) {
    %c0_i32 = arith.constant 0 : i32
    %c0_i32_0 = arith.constant 0 : i32
    return %arg0, %c0_i32 : i32, i32
  }
  func.func @transform_5(%arg0: i32) -> (i32, i32) {
    %c0_i32 = arith.constant 0 : i32
    %c0_i32_0 = arith.constant 0 : i32
    return %arg0, %c0_i32 : i32, i32
  }
}

</mosaic_0001>

<bundles_post_ra>
// kernel: tpu_custom_call.1
= control target key start
LH: loop header
LB: loop body
LE: loop exit
PB: predicated region body
PF: predicated region fallthrough
CT: control target
= control target key end

     0   :  { %s2801_s0 = inlined_call_operand.hbm [shape: f32[16,128], index: 0, kind: input, shape index: {}]   ;;  %s2802_s1 = inlined_call_operand.hbm [shape: f32[16,16], index: 1, kind: input, shape index: {}]   ;;  %s2803_s2 = inlined_call_operand.hbm [shape: f32[16,128], index: 2, kind: input, shape index: {}]   ;;  %s2804_s3 = inlined_call_operand.hbm [shape: f32[16,16], index: 3, kind: input, shape index: {}]   ;;  %s2805_s4 = inlined_call_operand.hbm [shape: f32[16,32], index: 4, kind: input, shape index: {}]   ;;  %s2806_s5 = inlined_call_operand.hbm [shape: f32[16,128], index: 5, kind: output, shape index: {}]  }
   0x1   :  { %2827 = sst [smem:[#allocation18_spill]] %s2803_s2 }
   0x2   :  { %2828 = sst [smem:[#allocation19_spill]] %s2804_s3 }
   0x3   :  { %10 = vsyncpa [#allocation3], 0 }
   0x4   :  { %12 = vsyncpa [#allocation3 + $0x1], 0 }
   0x5   :  { %13 = vsyncpa [#allocation6], 0 }
   0x6   :  { %15 = vsyncpa [#allocation6 + $0x1], 0 }
   0x7   :  { %16 = vsyncpa [#allocation9], 0 }
   0x8   :  { %18 = vsyncpa [#allocation9 + $0x1], 0 }
   0x9   :  { %19 = vsyncpa [#allocation4], 0 }
   0xa   :  { %21 = vsyncpa [#allocation4 + $0x1], 0  ;;  %s2122_s18 = smov 0   ;;  %s2124_s19 = smov 0  }
   0xb   :  { %s2126_s20 = smov 0   ;;  %s2128_s21 = smov 0  }
   0xc LB: > { %s2143_s22 = sadd.s32 4294967295, %s2047_s21   ;;  %s1611_s23 = sadd.s32 4294967294, %s2047_s21   ;;  %s2047_s21 = sphi %s2128_s21, %s2868_s21   ;;  %s2043_s20 = sphi %s2126_s20, %s2867_s20   ;;  %s2039_s19 = sphi %s2124_s19, %s2866_s19   ;;  %s2035_s18 = sphi %s2122_s18, %s2865_s18  }
   0xd   : > { %p47_p0 = scmp.ne.s32.totalorder %s2039_s19, %s2035_s18  ;;  %p2807_p1 = scmp.eq.s32.totalorder %s2143_s22, 0 }
   0xe   : > { %p176_p3 = scmp.eq.s32.totalorder %s1611_s23, 1  ;;  %p1612_p5 = scmp.ge.s32.totalorder %s2047_s21, 1 }
   0xf   : > { %p2152_p4 = por %p2807_p1, %p47_p0  ;;  %p183_p7 = scmp.lt.s32.totalorder %s2047_s21, 3 }
  0x10   : > { %p2157_p6 = por %p176_p3, %p47_p0  ;;  %s2049_s27 = smov [#allocation7]  }
  0x11   : > { %s2829_s24 = scalar_select %p2152_p4, 1, 0 }
  0x12   : > { %s2830_s25 = scalar_select %p2157_p6, 1, 0 }
  0x13   : > { %p2162_p8 = pnand %p1612_p5, %p183_p7  ;;  %s195_s28 = sshll.u32 %s2049_s27, 4  ;;  %s2166_s28 = int_to_ptr.vmem [resolvable:$true] %s195_s28 }
  0x14   : > { %s2178_s30 = sadd.s32 1, %s2047_s21   ;;  %s34_s6 = sadd.s32 1, %s2043_s20 }
  0x15   : > { %s2831_s26 = scalar_select %p2162_p8, 1, 0 }
  0x16   : > { %p1693_p9 = pneg %p2162_p8  ;;  %s31_s7 = ssub.s32 %s2047_s21, %s2178_s30 }
  0x17   : > { %s2833_s2 = sld [smem:[#allocation18_spill]] }
  0x18   : > { %p2173_p11 = pnand %p1693_p9, %p2807_p1 }
  0x1a   : > { %p1823_p13 = pneg %p2173_p11 }
  0x1d   : > { %s1821_s10 = scalar_lea.hbm %s2833_s2, 256 }
  0x1e   : > { %p1822_p12 = scmp.ne.s32.totalorder %s2833_s2, %s1821_s10  ;;  %p1828_p5 = scmp.lt.u32.totalorder %s1821_s10, %s2833_s2 }
  0x20   : > { %p1824_p0 = pnand %p1823_p13, %p1822_p12 }
  0x22   : > { %p1825_p3 = pneg %p1824_p0 }
  0x24   : > { %p1830_p7 = pnand %p1828_p5, %p1825_p3 }
  0x26   : > { %1833 = shalt.err (!%p1830_p7)
}
  0x27   : > { %s1834_s15 = scalar_lea.vmem %s2166_s28, 256  ;;  %p1842_p2 = scmp.lt.s32.totalorder %s2166_s28, %s2166_s28 }
  0x28   : > { %p1835_p9 = scmp.ne.s32.totalorder %s2166_s28, %s1834_s15  ;;  %p1843_p6 = scmp.lt.s32.totalorder %s1834_s15, %s1834_s15 }
  0x2a   : > { %p1837_p10 = pnand %p1835_p9, %p1823_p13  ;;  %p1844_p4 = por %p1843_p6, %p1842_p2 }
  0x2c   : > { %p1838_p1 = pneg %p1837_p10 }
  0x2e   : > { %p1845_p8 = pnand %p1844_p4, %p1838_p1 }
  0x30   : > { %1848 = shalt.err (!%p1845_p8)
}
  0x31   : > { %s2050_s16 = smov 128   ;;  %s2051_s17 = smov 8  }
  0x32   : > { %1696 = dma.hbm_to_vmem [thread:$0]  (!%p2173_p11), %s2833_s2, 256, %s2166_s28, [#allocation6], %s2050_s16, %s2050_s16, %s2051_s17  }
  0x33   : > { %p32_p1 = scmp.eq.s32.totalorder %s31_s7, 0  ;;  %p41_p2 = scmp.ne.s32.totalorder %s2043_s20, %s2039_s19 }
  0x34   : > { %p42_p4 = scmp.eq.s32.totalorder %s2047_s21, 0  ;;  %p1715_p6 = scmp.lt.s32.totalorder %s2047_s21, 2 }
  0x35   : > { %s2209_s8 = scalar_select %p32_p1, %s2043_s20, %s34_s6  }
  0x36   : > { %p43_p8 = por %p42_p4, %p41_p2  ;;  %p2835_p10 = scmp.eq.s32.totalorder %s2143_s22, 1 }
  0x37   : > { %2834 = sst [smem:[#allocation17_spill]] %s2209_s8  ;;  %s2810_s10 = sand.u32 1, %s2043_s20  }
  0x38   : > { %p2213_p12 = por %p2835_p10, %p41_p2  ;;  %s2219_s11 = sshll.u32 %s2047_s21, 7 }
  0x39   : > { %s2223_s29 = sshll.u32 %s2810_s10, 3  ;;  %p2225_p11 = pnand %p1715_p6, %p43_p8 }
  0x3a   : > { %s2836_s9 = scalar_select %p2213_p12, 1, 0 }
  0x3b   : > { %s2837_s28 = scalar_select %p2225_p11, 1, 0 }
  0x3c   : > { %s2811_s6 = sand.u32 1, %s2047_s21   ;;  %s2838_s3 = sld [smem:[#allocation19_spill]] }
  0x3d   : > { %s249_s14 = scalar_lea.vmem [#allocation8], %s2223_s29  ;;  %s2241_s16 = scalar_lea.sflag [#allocation9], %s2811_s6 }
  0x3e   : > { %s256_s15 = sshll.u32 %s249_s14, 4  ;;  %p2247_p0 = pneg %p2225_p11  ;;  %s2237_s15 = int_to_ptr.vmem [resolvable:$true] %s256_s15 }
  0x42   : > { %s2234_s13 = scalar_lea.hbm %s2838_s3, %s2219_s11  ;;  %s1854_s12 = scalar_lea.hbm %s2838_s3, 256 }
  0x43   : > { %s1849_s17 = scalar_lea.hbm %s2234_s13, 128  ;;  %p1855_p7 = scmp.lt.u32.totalorder %s2234_s13, %s2838_s3 }
  0x44   : > { %p1850_p13 = scmp.ne.s32.totalorder %s2234_s13, %s1849_s17  ;;  %p1856_p9 = scmp.lt.u32.totalorder %s1854_s12, %s1849_s17 }
  0x45   : > { %p1858_p2 = scmp.lt.u32.totalorder %s1849_s17, %s2234_s13 }
  0x46   : > { %p1852_p3 = pnand %p2247_p0, %p1850_p13  ;;  %p1857_p1 = por %p1856_p9, %p1855_p7 }
  0x48   : > { %p1853_p5 = pneg %p1852_p3  ;;  %p1859_p4 = por %p1858_p2, %p1857_p1 }
  0x4a   : > { %p1860_p6 = pnand %p1859_p4, %p1853_p5 }
  0x4c   : > { %1863 = shalt.err (!%p1860_p6)
}
  0x4d   : > { %s1864_s6 = scalar_lea.vmem %s2237_s15, 128  ;;  %s2052_s27 = smov [#allocation8]  }
  0x4e   : > { %p1865_p8 = scmp.ne.s32.totalorder %s2237_s15, %s1864_s6  ;;  %s1869_s7 = sshll.u32 %s2052_s27, 4  ;;  %s1870_s7 = int_to_ptr.vmem [resolvable:$false] %s1869_s7 }
  0x4f   : > { %s1871_s10 = scalar_lea.vmem %s1870_s7, 256  ;;  %p1872_p3 = scmp.lt.s32.totalorder %s2237_s15, %s1870_s7 }
  0x50   : > { %p1867_p10 = pnand %p1865_p8, %p2247_p0  ;;  %p1873_p12 = scmp.lt.s32.totalorder %s1871_s10, %s1864_s6 }
  0x52   : > { %p1868_p13 = pneg %p1867_p10  ;;  %p1874_p7 = por %p1873_p12, %p1872_p3 }
  0x54   : > { %p1875_p9 = pnand %p1874_p7, %p1868_p13 }
  0x56   : > { %1878 = shalt.err (!%p1875_p9)
}
  0x57   : > { %1706 = dma.hbm_to_vmem [thread:$0]  (!%p2225_p11), %s2234_s13, 128, %s2237_s15, %s2241_s16  }
  0x58   : > { %s2275_s14 = scalar_lea.hbm %s2801_s0, %s2219_s11  ;;  %s213_s6 = scalar_lea.vmem [#allocation2], %s2223_s29 }
  0x59   : > { %s220_s27 = sshll.u32 %s213_s6, 4  ;;  %s2840_s7 = sand.u32 1, %s2043_s20   ;;  %s221_s27 = int_to_ptr.vmem [resolvable:$true] %s220_s27 }
  0x5a   : > { %s210_s10 = scalar_lea.sflag [#allocation3], %s2840_s7  ;;  %s1879_s2 = scalar_lea.hbm %s2275_s14, 128 }
  0x5b   : > { %p1880_p12 = scmp.ne.s32.totalorder %s2275_s14, %s1879_s2  ;;  %s1884_s17 = scalar_lea.hbm %s2801_s0, 256 }
  0x5c   : > { %p1885_p2 = scmp.lt.u32.totalorder %s2275_s14, %s2801_s0  ;;  %p1886_p4 = scmp.lt.u32.totalorder %s1884_s17, %s1879_s2 }
  0x5d   : > { %p1882_p5 = pnand %p1880_p12, %p2247_p0  ;;  %p1888_p8 = scmp.lt.u32.totalorder %s1879_s2, %s2275_s14 }
  0x5e   : > { %p1887_p6 = por %p1886_p4, %p1885_p2 }
  0x5f   : > { %p1883_p1 = pneg %p1882_p5 }
  0x60   : > { %p1889_p10 = por %p1888_p8, %p1887_p6 }
  0x62   : > { %p1890_p13 = pnand %p1889_p10, %p1883_p1 }
  0x64   : > { %1893 = shalt.err (!%p1890_p13)
}
  0x65   : > { %s1894_s6 = scalar_lea.vmem %s221_s27, 128  ;;  %s2053_s7 = smov [#allocation2]  }
  0x66   : > { %p1895_p3 = scmp.ne.s32.totalorder %s221_s27, %s1894_s6  ;;  %s1899_s8 = sshll.u32 %s2053_s7, 4  ;;  %s1900_s8 = int_to_ptr.vmem [resolvable:$false] %s1899_s8 }
  0x67   : > { %s1901_s13 = scalar_lea.vmem %s1900_s8, 256  ;;  %p1902_p12 = scmp.lt.s32.totalorder %s221_s27, %s1900_s8 }
  0x68   : > { %p1897_p7 = pnand %p1895_p3, %p2247_p0  ;;  %p1903_p5 = scmp.lt.s32.totalorder %s1901_s13, %s1894_s6 }
  0x6a   : > { %p1898_p9 = pneg %p1897_p7  ;;  %p1904_p11 = por %p1903_p5, %p1902_p12 }
  0x6c   : > { %p1905_p2 = pnand %p1904_p11, %p1898_p9 }
  0x6e   : > { %1908 = shalt.err (!%p1905_p2)
}
  0x6f   : > { %p2841_p4 = scmp.ne.s32.totalorder %s2837_s28, 0  ;;  %s2301_s15 = scalar_lea.hbm %s2802_s1, %s2219_s11 }
  0x70   : > { %s231_s8 = scalar_lea.vmem [#allocation5], %s2223_s29  ;;  %s2842_s12 = sand.u32 1, %s2047_s21  }
  0x71   : > { %1700 = dma.hbm_to_vmem [thread:$0]  (!%p2841_p4), %s2275_s14, 128, %s221_s27, %s210_s10  }
  0x72   : > { %s238_s17 = sshll.u32 %s231_s8, 4  ;;  %s228_s6 = scalar_lea.sflag [#allocation6], %s2842_s12  ;;  %s239_s17 = int_to_ptr.vmem [resolvable:$true] %s238_s17 }
  0x73   : > { %s1909_s7 = scalar_lea.hbm %s2301_s15, 128  ;;  %s1914_s10 = scalar_lea.hbm %s2802_s1, 256 }
  0x74   : > { %p1910_p11 = scmp.ne.s32.totalorder %s2301_s15, %s1909_s7  ;;  %p1915_p8 = scmp.lt.u32.totalorder %s2301_s15, %s2802_s1 }
  0x75   : > { %p1916_p10 = scmp.lt.u32.totalorder %s1914_s10, %s1909_s7  ;;  %p1918_p3 = scmp.lt.u32.totalorder %s1909_s7, %s2301_s15 }
  0x76   : > { %p1912_p1 = pnand %p1910_p11, %p2247_p0 }
  0x77   : > { %p1917_p13 = por %p1916_p10, %p1915_p8 }
  0x78   : > { %p1913_p6 = pneg %p1912_p1 }
  0x79   : > { %p1919_p7 = por %p1918_p3, %p1917_p13 }
  0x7b   : > { %p1920_p9 = pnand %p1919_p7, %p1913_p6 }
  0x7d   : > { %1923 = shalt.err (!%p1920_p9)
}
  0x7e   : > { %s1924_s3 = scalar_lea.vmem %s239_s17, 128  ;;  %s2054_s8 = smov [#allocation5]  }
  0x7f   : > { %p1925_p12 = scmp.ne.s32.totalorder %s239_s17, %s1924_s3  ;;  %s1929_s12 = sshll.u32 %s2054_s8, 4  ;;  %s1930_s12 = int_to_ptr.vmem [resolvable:$false] %s1929_s12 }
  0x80   : > { %s1931_s14 = scalar_lea.vmem %s1930_s12, 256  ;;  %p1932_p11 = scmp.lt.s32.totalorder %s239_s17, %s1930_s12 }
  0x81   : > { %p1927_p5 = pnand %p1925_p12, %p2247_p0  ;;  %p1933_p1 = scmp.lt.s32.totalorder %s1931_s14, %s1924_s3 }
  0x83   : > { %p1928_p2 = pneg %p1927_p5  ;;  %p1934_p4 = por %p1933_p1, %p1932_p11 }
  0x85   : > { %p1935_p8 = pnand %p1934_p4, %p1928_p2 }
  0x87   : > { %1938 = shalt.err (!%p1935_p8)
}
  0x88   : > { %p2843_p10 = scmp.ne.s32.totalorder %s2837_s28, 0  ;;  %s2327_s10 = scalar_lea.hbm %s2805_s4, %s2219_s11 }
  0x89   : > { %s267_s13 = scalar_lea.vmem [#allocation10], %s2223_s29  ;;  %s1939_s3 = scalar_lea.hbm %s2327_s10, 128 }
  0x8a   : > { %1703 = dma.hbm_to_vmem [thread:$0]  (!%p2843_p10), %s2301_s15, 128, %s239_s17, %s228_s6  }
  0x8b   : > { %s274_s2 = sshll.u32 %s267_s13, 4  ;;  %p1940_p4 = scmp.ne.s32.totalorder %s2327_s10, %s1939_s3  ;;  %s275_s2 = int_to_ptr.vmem [resolvable:$true] %s274_s2 }
  0x8c   : > { %s1944_s15 = scalar_lea.hbm %s2805_s4, 256  ;;  %p1945_p3 = scmp.lt.u32.totalorder %s2327_s10, %s2805_s4 }
  0x8d   : > { %p1942_p6 = pnand %p1940_p4, %p2247_p0  ;;  %p1946_p7 = scmp.lt.u32.totalorder %s1944_s15, %s1939_s3 }
  0x8e   : > { %p1948_p12 = scmp.lt.u32.totalorder %s1939_s3, %s2327_s10 }
  0x8f   : > { %p1943_p13 = pneg %p1942_p6  ;;  %p1947_p9 = por %p1946_p7, %p1945_p3 }
  0x91   : > { %p1949_p5 = por %p1948_p12, %p1947_p9 }
  0x93   : > { %p1950_p2 = pnand %p1949_p5, %p1943_p13 }
  0x95   : > { %1953 = shalt.err (!%p1950_p2)
}
  0x96   : > { %s1954_s11 = scalar_lea.vmem %s275_s2, 128  ;;  %s2055_s29 = smov [#allocation10]  }
  0x97   : > { %p1955_p11 = scmp.ne.s32.totalorder %s275_s2, %s1954_s11  ;;  %s1959_s14 = sshll.u32 %s2055_s29, 4  ;;  %s1960_s14 = int_to_ptr.vmem [resolvable:$false] %s1959_s14 }
  0x98   : > { %s1961_s7 = scalar_lea.vmem %s1960_s14, 256  ;;  %p1962_p4 = scmp.lt.s32.totalorder %s275_s2, %s1960_s14 }
  0x99   : > { %p1957_p1 = pnand %p1955_p11, %p2247_p0  ;;  %p1963_p6 = scmp.lt.s32.totalorder %s1961_s7, %s1954_s11 }
  0x9b   : > { %p1958_p8 = pneg %p1957_p1  ;;  %p1964_p10 = por %p1963_p6, %p1962_p4 }
  0x9d   : > { %p1965_p3 = pnand %p1964_p10, %p1958_p8 }
  0x9f   : > { %1968 = shalt.err (!%p1965_p3)
}
  0xa0   : > { %p2844_p7 = scmp.ne.s32.totalorder %s2837_s28, 0  ;;  %p2845_p13 = scmp.ne.s32.totalorder %s2831_s26, 0 }
  0xa1   : > { %s2351_s23 = sand.u32 (!%p2845_p13), 1, %s2039_s19   ;;  %p2846_p0 = scmp.ne.s32.totalorder (!%p2845_p13), %s2829_s24, 0 }
  0xa2   : > { %1709 = dma.hbm_to_vmem [thread:$0]  (!%p2844_p7), %s2327_s10, 128, %s275_s2, %s2241_s16  }
  0xa3   : > { %283 = sbr.rel (%p2845_p13) target bundleno = 15386 (0x3c1a), region = 40  ;;  %s2354_s27 = sshll.u32 (!%p2845_p13), %s2351_s23, 3 }
  0xa4   : > { %s286_s13 = scalar_lea.sflag (!%p2845_p13), [#allocation3], %s2351_s23  ;;  %s289_s3 = scalar_lea.vmem (!%p2845_p13), [#allocation2], %s2354_s27 }
  0xaa   : > { %2014 = dma.done.wait (%p2846_p0), %s286_s13, 128  }
  0xab   : > { %2016 = vsyncadd (%p2846_p0), %s286_s13, 4294967168  ;;  %s294_s26 = sand.u32 1, %s2143_s22   ;;  %s298_s16 = scalar_lea.vmem [#allocation5], %s2354_s27 }
  0xac   : > { %s295_s28 = scalar_lea.sflag [#allocation6], %s294_s26 }
  0xad   : > { %2018 = dma.done.wait (%p2846_p0), %s295_s28, 128  }
  0xae   : > { %2020 = vsyncadd (%p2846_p0), %s295_s28, 4294967168  ;;  %p2847_p10 = scmp.eq.s32.totalorder %s2143_s22, 0 }
  0xb0   : > { %2022 = dma.done.wait (%p2847_p10), [#allocation6], 256   ;;  %p2848_p9 = pmov %p2847_p10 }
  0xb1   : > { %s308_s10 = scalar_lea.sflag [#allocation9], %s294_s26  ;;  %s311_s2 = scalar_lea.vmem [#allocation8], %s2354_s27 }
  0xb2   : > { %2024 = vsyncadd (%p2848_p9), [#allocation6], 4294967040 }
  0xb3   : > { %2026 = dma.done.wait (%p2846_p0), %s308_s10, 256  }
  0xb4   : > { %2028 = vsyncadd (%p2846_p0), %s308_s10, 4294967040  ;;  %vm367_vm0 = vcmask 130048   ;;  %v363_v0 = vld [vmem:[%s298_s16] sm:$0xff]  ;;  %v441_v2 = vlaneseq  ;;  %v364_v13 = vld [vmem:[#allocation7] sm:$0xff]  ;;  %v2056_v16 = vmov 0.0|0.0   ;;  %vm2057_vm3 = vmmov 0  }
  0xb5   : > { %v443_v1 = vsel %vm367_vm0, %v363_v0, -inf  ;;  %v365_v14 = vld [vmem:[#allocation7 + $0x8] sm:$0xff]  ;;  %1670 = vmatprep.subr.bf16.mxu0 %v2056_v16  ;;  %1673 = vmatprep.subr.bf16.mxu1 %v2056_v16  ;;  %v366_v17 = vld [vmem:[%s311_s2] sm:$0xff]  ;;  %v2058_v18 = vmov 0.0   ;;  %s320_s24 = scalar_lea.vmem [#allocation10], %s2354_s27  ;;  %s1637_s8 = sshll.u32 %s2143_s22, 7 }
  0xb6   : > { %444 = vmax.xlane.f32.xlu0 %v443_v1  ;;  %v2378_v3 = vand.u32 127, %v441_v2  ;;  %v1671_v15 = vpack.c.bf16 %v365_v14, %v364_v13  ;;  %1653 = vmatprep.mubr.msk.f32.mxu0 %vm2057_vm3, %v2058_v18  ;;  %v362_v47 = vld [vmem:[%s289_s3] sm:$0xff]  ;;  %s361_s12 = scalar_lea.vmem [#allocation11], %s2354_s27  ;;  %s2757_s11 = scalar_lea.hbm %s2806_s5, %s1637_s8 }
  0xb7   : > { %1660 = vmatprep.mubr.msk.f32.mxu1 %vm2057_vm3, %v2058_v18  ;;  %s1466_s15 = sshll.u32 %s361_s12, 4  ;;  %s1453_s22 = scalar_lea.sflag [#allocation4], %s2351_s23  ;;  %s2759_s15 = int_to_ptr.vmem [resolvable:$true] %s1466_s15 }
  0xb8   : > { %1672 = vmatpush3.bf16.msra.mxu0 %v1671_v15  ;;  %1675 = vmatpush3.bf16.msra.mxu1 %v1671_v15  ;;  %s1969_s29 = scalar_lea.vmem %s2759_s15, 128  ;;  %p2861_p5 = scmp.ne.s32.totalorder %s2836_s9, 0 }
  0xb9   : > { %1676 = vmatprep.subr.bf16.mxu0 %v2056_v16  ;;  %p1970_p12 = scmp.ne.s32.totalorder %s2759_s15, %s1969_s29  ;;  %s2091_s14 = smov [#allocation11]  }
  0xba   : > { %s1973_s7 = sshll.u32 %s2091_s14, 4  ;;  %s1974_s7 = int_to_ptr.vmem [resolvable:$false] %s1973_s7 }
  0xbb   : > { %1654 = vmatmul.mubr.msk.f32.vlgmr.msra.gmra.mrb[0].mxu0 %vm367_vm0, %v366_v17  ;;  %p1971_p2 = pnand %p1970_p12, %p2861_p5  ;;  %s1975_s27 = scalar_lea.vmem %s1974_s7, 256 }
  0xbc   : > { %1678 = vmatpush3.bf16.msra.mxu0 %v1671_v15  ;;  %1667 = vmatprep.mubr.msk.f32.mxu0 %vm2057_vm3, %v2058_v18  ;;  %p1976_p1 = scmp.lt.s32.totalorder %s2759_s15, %s1974_s7  ;;  %p1977_p8 = scmp.lt.s32.totalorder %s1975_s27, %s1969_s29 }
  0xbd   : > { %p1972_p11 = pneg %p1971_p2 }
  0xbe   : > { %p1978_p4 = por %p1977_p8, %p1976_p1 }
  0xc0   : > { %p1979_p6 = pnand %p1978_p4, %p1972_p11 }
 0x143   : > { %v445_v4 = vpop.xlane.xlu0 %444 }
 0x144   : > { %vm446_vm1 = vcmp.eq.f32.partialorder %v363_v0, %v445_v4 }
 0x145   : > { %v447_v5 = vsel %vm446_vm1, %v2378_v3, 1073741824 }
 0x146   : > { %v448_v6 = vsel %vm367_vm0, %v447_v5, 2147483647 }
 0x147   : > { %v450_v7 = vshra.s32 %v448_v6, 16  ;;  %v449_v9 = vand.u32 65535, %v448_v6 }
 0x149   : > { %v452_v8 = vcvt.s32.f32 %v450_v7  ;;  %v451_v11 = vcvt.s32.f32 %v449_v9 }
 0x14b   : > { %453 = vmin.xlane.f32.xlu0 %v452_v8 }
 0x18e   : > { %v437_v27 = vpop.f32.mrb[0].mxu0 }
 0x18f   : > { %v1655_v28 = vpop.f32.mrb[1].mxu0 }
 0x1d8   : > { %v454_v10 = vpop.xlane.xlu0 %453 }
 0x1d9   : > { %vm455_vm2 = vcmp.eq.f32.partialorder %v452_v8, %v454_v10  ;;  %v460_v19 = vcvt.f32.s32 %v454_v10 }
 0x1da   : > { %v456_v12 = vsel %vm455_vm2, %v451_v11, inf }
 0x1db   : > { %457 = vmin.xlane.f32.xlu1 %v456_v12  ;;  %v461_v21 = vshll.u32 %v460_v19, 16 }
 0x268   : > { %v458_v20 = vpop.xlane.xlu1 %457 }
 0x269   : > { %v459_v22 = vcvt.f32.s32 %v458_v20 }
 0x26b   : > { %v462_v23 = vadd.s32 %v461_v21, %v459_v22 }
 0x26d   : > { %vm463_vm4 = vcmp.eq.s32.totalorder %v2378_v3, %v462_v23 }
 0x26e   : > { %v1631_v24 = vsel %vm463_vm4, 1.0, %v2058_v18  ;;  %v543_v25 = vsel %vm463_vm4, -inf, %v363_v0 }
 0x26f   : > { %1661 = vmatmul.mubr.msk.f32.vlgmr.msra.gmra.mrb[0].mxu1 %vm367_vm0, %v1631_v24  ;;  %v544_v26 = vsel %vm367_vm0, %v543_v25, -inf }
 0x270   : > { %545 = vmax.xlane.f32.xlu1 %v544_v26 }
 0x2fd   : > { %v546_v29 = vpop.xlane.xlu1 %545 }
 0x2fe   : > { %vm547_vm5 = vcmp.eq.f32.partialorder %v543_v25, %v546_v29 }
 0x2ff   : > { %v548_v30 = vsel %vm547_vm5, %v2378_v3, 1073741824 }
 0x300   : > { %v549_v31 = vsel %vm367_vm0, %v548_v30, 2147483647 }
 0x301   : > { %v551_v32 = vshra.s32 %v549_v31, 16  ;;  %v550_v37 = vand.u32 65535, %v549_v31 }
 0x303   : > { %v553_v33 = vcvt.s32.f32 %v551_v32  ;;  %v552_v39 = vcvt.s32.f32 %v550_v37 }
 0x305   : > { %554 = vmin.xlane.f32.xlu0 %v553_v33 }
 0x342   : > { %v535_v34 = vpop.f32.mrb[0].mxu1 }
 0x343   : > { %v539_v35 = vsub.f32 %v535_v34, %v437_v27  ;;  %v1662_v36 = vpop.f32.mrb[1].mxu1 }
 0x345   : > { %v540_v49 = vmul.f32 %v539_v35, %v362_v47 }
 0x347   : > { %v541_v53 = vand.u32 2147483647, %v540_v49 }
 0x392   : > { %v555_v38 = vpop.xlane.xlu0 %554 }
 0x393   : > { %vm556_vm6 = vcmp.eq.f32.partialorder %v553_v33, %v555_v38  ;;  %v561_v41 = vcvt.f32.s32 %v555_v38 }
 0x394   : > { %v557_v40 = vsel %vm556_vm6, %v552_v39, inf }
 0x395   : > { %558 = vmin.xlane.f32.xlu1 %v557_v40  ;;  %v562_v43 = vshll.u32 %v561_v41, 16 }
 0x422   : > { %v559_v42 = vpop.xlane.xlu1 %558 }
 0x423   : > { %v560_v44 = vcvt.f32.s32 %v559_v42 }
 0x425   : > { %v563_v45 = vadd.s32 %v562_v43, %v560_v44 }
 0x427   : > { %vm564_vm7 = vcmp.eq.s32.totalorder %v2378_v3, %v563_v45 }
 0x428   : > { %v1633_v46 = vsel %vm564_vm7, 1.0, %v2058_v18 }
 0x429   : > { %1668 = vmatmul.mubr.msk.f32.vlgmr.msra.gmra.mrb[2].mxu0 %vm367_vm0, %v1633_v46 }
 0x4fc   : > { %v636_v48 = vpop.f32.mrb[2].mxu0 }
 0x4fd   : > { %v640_v50 = vsub.f32 %v636_v48, %v437_v27  ;;  %v1669_v51 = vpop.f32.mrb[3].mxu0 }
 0x4ff   : > { %v641_v52 = vmul.f32 %v640_v50, %v362_v47 }
 0x501   : > { %v642_v54 = vand.u32 2147483647, %v641_v52 }
 0x503   : > { %v643_v55 = vadd.f32 %v642_v54, %v541_v53 }
 0x505   : > { %v645_v56 = vmul.f32 0.5, %v643_v55 }
 0x507   : > { %650 = vmax.xlane.f32.xlu0 %v645_v56 }
 0x594   : > { %v651_v57 = vpop.xlane.xlu0 %650 }
 0x595   : > { %vm652_vm8 = vcmp.eq.f32.partialorder %v645_v56, %v651_v57 }
 0x596   : > { %v653_v58 = vsel %vm652_vm8, %v2378_v3, 1073741824 }
 0x597   : > { %v655_v59 = vshra.s32 %v653_v58, 16  ;;  %v654_v61 = vand.u32 65535, %v653_v58 }
 0x599   : > { %v657_v60 = vcvt.s32.f32 %v655_v59  ;;  %v656_v63 = vcvt.s32.f32 %v654_v61 }
 0x59b   : > { %658 = vmin.xlane.f32.xlu1 %v657_v60 }
 0x628   : > { %v659_v62 = vpop.xlane.xlu1 %658 }
 0x629   : > { %vm660_vm9 = vcmp.eq.f32.partialorder %v657_v60, %v659_v62  ;;  %v665_v1 = vcvt.f32.s32 %v659_v62 }
 0x62a   : > { %v661_v0 = vsel %vm660_vm9, %v656_v63, inf }
 0x62b   : > { %662 = vmin.xlane.f32.xlu0 %v661_v0  ;;  %v666_v4 = vshll.u32 %v665_v1, 16 }
 0x6b8   : > { %v663_v2 = vpop.xlane.xlu0 %662 }
 0x6b9   : > { %v664_v5 = vcvt.f32.s32 %v663_v2 }
 0x6bb   : > { %v2398_v6 = vadd.s32 %v666_v4, %v664_v5 }
 0x6bd   : > { %vm668_vm10 = vcmp.eq.s32.totalorder %v2378_v3, %v2398_v6 }
 0x6be   : > { %v675_v7 = vsel %vm668_vm10, -inf, %v645_v56 }
 0x6bf   : > { %676 = vmax.xlane.f32.xlu1 %v675_v7 }
 0x74c   : > { %v677_v8 = vpop.xlane.xlu1 %676 }
 0x74d   : > { %vm678_vm11 = vcmp.eq.f32.partialorder %v675_v7, %v677_v8 }
 0x74e   : > { %v679_v9 = vsel %vm678_vm11, %v2378_v3, 1073741824 }
 0x74f   : > { %v681_v10 = vshra.s32 %v679_v9, 16  ;;  %v680_v12 = vand.u32 65535, %v679_v9 }
 0x751   : > { %v683_v11 = vcvt.s32.f32 %v681_v10  ;;  %v682_v14 = vcvt.s32.f32 %v680_v12 }
 0x753   : > { %684 = vmin.xlane.f32.xlu0 %v683_v11 }
 0x7e0   : > { %v685_v13 = vpop.xlane.xlu0 %684 }
 0x7e1   : > { %vm686_vm12 = vcmp.eq.f32.partialorder %v683_v11, %v685_v13  ;;  %v691_v16 = vcvt.f32.s32 %v685_v13 }
 0x7e2   : > { %v687_v15 = vsel %vm686_vm12, %v682_v14, inf }
 0x7e3   : > { %688 = vmin.xlane.f32.xlu1 %v687_v15  ;;  %v692_v19 = vshll.u32 %v691_v16, 16 }
 0x870   : > { %v689_v17 = vpop.xlane.xlu1 %688 }
 0x871   : > { %v690_v20 = vcvt.f32.s32 %v689_v17 }
 0x873   : > { %v2406_v21 = vadd.s32 %v692_v19, %v690_v20 }
 0x875   : > { %vm694_vm13 = vcmp.eq.s32.totalorder %v2378_v3, %v2406_v21 }
 0x876   : > { %v700_v22 = vsel %vm694_vm13, -inf, %v675_v7 }
 0x877   : > { %701 = vmax.xlane.f32.xlu0 %v700_v22 }
 0x904   : > { %v702_v23 = vpop.xlane.xlu0 %701 }
 0x905   : > { %vm703_vm14 = vcmp.eq.f32.partialorder %v700_v22, %v702_v23 }
 0x906   : > { %v704_v24 = vsel %vm703_vm14, %v2378_v3, 1073741824 }
 0x907   : > { %v706_v25 = vshra.s32 %v704_v24, 16  ;;  %v705_v27 = vand.u32 65535, %v704_v24 }
 0x909   : > { %v708_v26 = vcvt.s32.f32 %v706_v25  ;;  %v707_v29 = vcvt.s32.f32 %v705_v27 }
 0x90b   : > { %709 = vmin.xlane.f32.xlu1 %v708_v26 }
 0x998   : > { %v710_v28 = vpop.xlane.xlu1 %709 }
 0x999   : > { %vm711_vm15 = vcmp.eq.f32.partialorder %v708_v26, %v710_v28  ;;  %v716_v31 = vcvt.f32.s32 %v710_v28 }
 0x99a   : > { %v712_v30 = vsel %vm711_vm15, %v707_v29, inf }
 0x99b   : > { %713 = vmin.xlane.f32.xlu0 %v712_v30  ;;  %v717_v33 = vshll.u32 %v716_v31, 16 }
 0xa28   : > { %v714_v32 = vpop.xlane.xlu0 %713 }
 0xa29   : > { %v715_v34 = vcvt.f32.s32 %v714_v32 }
 0xa2b   : > { %v2414_v35 = vadd.s32 %v717_v33, %v715_v34 }
 0xa2d   : > { %vm719_vm0 = vcmp.eq.s32.totalorder %v2378_v3, %v2414_v35 }
 0xa2e   : > { %v725_v36 = vsel %vm719_vm0, -inf, %v700_v22 }
 0xa2f   : > { %726 = vmax.xlane.f32.xlu1 %v725_v36 }
 0xabc   : > { %v727_v37 = vpop.xlane.xlu1 %726 }
 0xabd   : > { %vm728_vm1 = vcmp.eq.f32.partialorder %v725_v36, %v727_v37 }
 0xabe   : > { %v729_v38 = vsel %vm728_vm1, %v2378_v3, 1073741824 }
 0xabf   : > { %v731_v39 = vshra.s32 %v729_v38, 16  ;;  %v730_v41 = vand.u32 65535, %v729_v38 }
 0xac1   : > { %v733_v40 = vcvt.s32.f32 %v731_v39  ;;  %v732_v43 = vcvt.s32.f32 %v730_v41 }
 0xac3   : > { %734 = vmin.xlane.f32.xlu0 %v733_v40 }
 0xb50   : > { %v735_v42 = vpop.xlane.xlu0 %734 }
 0xb51   : > { %vm736_vm2 = vcmp.eq.f32.partialorder %v733_v40, %v735_v42  ;;  %v741_v45 = vcvt.f32.s32 %v735_v42 }
 0xb52   : > { %v737_v44 = vsel %vm736_vm2, %v732_v43, inf }
 0xb53   : > { %738 = vmin.xlane.f32.xlu1 %v737_v44  ;;  %v742_v47 = vshll.u32 %v741_v45, 16 }
 0xbe0   : > { %v739_v46 = vpop.xlane.xlu1 %738 }
 0xbe1   : > { %v740_v48 = vcvt.f32.s32 %v739_v46 }
 0xbe3   : > { %v2422_v49 = vadd.s32 %v742_v47, %v740_v48 }
 0xbe5   : > { %vm744_vm3 = vcmp.eq.s32.totalorder %v2378_v3, %v2422_v49 }
 0xbe6   : > { %v750_v50 = vsel %vm744_vm3, -inf, %v725_v36 }
 0xbe7   : > { %751 = vmax.xlane.f32.xlu0 %v750_v50 }
 0xc74   : > { %v752_v51 = vpop.xlane.xlu0 %751 }
 0xc75   : > { %vm753_vm4 = vcmp.eq.f32.partialorder %v750_v50, %v752_v51 }
 0xc76   : > { %v754_v52 = vsel %vm753_vm4, %v2378_v3, 1073741824 }
 0xc77   : > { %v756_v53 = vshra.s32 %v754_v52, 16  ;;  %v755_v55 = vand.u32 65535, %v754_v52 }
 0xc79   : > { %v758_v54 = vcvt.s32.f32 %v756_v53  ;;  %v757_v57 = vcvt.s32.f32 %v755_v55 }
 0xc7b   : > { %759 = vmin.xlane.f32.xlu1 %v758_v54 }
 0xd08   : > { %v760_v56 = vpop.xlane.xlu1 %759 }
 0xd09   : > { %vm761_vm5 = vcmp.eq.f32.partialorder %v758_v54, %v760_v56  ;;  %v766_v59 = vcvt.f32.s32 %v760_v56 }
 0xd0a   : > { %v762_v58 = vsel %vm761_vm5, %v757_v57, inf }
 0xd0b   : > { %763 = vmin.xlane.f32.xlu0 %v762_v58  ;;  %v767_v61 = vshll.u32 %v766_v59, 16 }
 0xd98   : > { %v764_v60 = vpop.xlane.xlu0 %763 }
 0xd99   : > { %v765_v62 = vcvt.f32.s32 %v764_v60 }
 0xd9b   : > { %v2430_v63 = vadd.s32 %v767_v61, %v765_v62 }
 0xd9d   : > { %vm769_vm6 = vcmp.eq.s32.totalorder %v2378_v3, %v2430_v63 }
 0xd9e   : > { %v775_v0 = vsel %vm769_vm6, -inf, %v750_v50 }
 0xd9f   : > { %776 = vmax.xlane.f32.xlu1 %v775_v0 }
 0xe2c   : > { %v777_v1 = vpop.xlane.xlu1 %776 }
 0xe2d   : > { %vm778_vm7 = vcmp.eq.f32.partialorder %v775_v0, %v777_v1 }
 0xe2e   : > { %v779_v2 = vsel %vm778_vm7, %v2378_v3, 1073741824 }
 0xe2f   : > { %v781_v4 = vshra.s32 %v779_v2, 16  ;;  %v780_v7 = vand.u32 65535, %v779_v2 }
 0xe31   : > { %v783_v5 = vcvt.s32.f32 %v781_v4  ;;  %v782_v9 = vcvt.s32.f32 %v780_v7 }
 0xe33   : > { %784 = vmin.xlane.f32.xlu0 %v783_v5 }
 0xec0   : > { %v785_v8 = vpop.xlane.xlu0 %784 }
 0xec1   : > { %vm786_vm8 = vcmp.eq.f32.partialorder %v783_v5, %v785_v8  ;;  %v791_v11 = vcvt.f32.s32 %v785_v8 }
 0xec2   : > { %v787_v10 = vsel %vm786_vm8, %v782_v9, inf }
 0xec3   : > { %788 = vmin.xlane.f32.xlu1 %v787_v10  ;;  %v792_v13 = vshll.u32 %v791_v11, 16 }
 0xf50   : > { %v789_v12 = vpop.xlane.xlu1 %788 }
 0xf51   : > { %v790_v14 = vcvt.f32.s32 %v789_v12 }
 0xf53   : > { %v2438_v15 = vadd.s32 %v792_v13, %v790_v14 }
 0xf55   : > { %vm794_vm9 = vcmp.eq.s32.totalorder %v2378_v3, %v2438_v15 }
 0xf56   : > { %v800_v16 = vsel %vm794_vm9, -inf, %v775_v0 }
 0xf57   : > { %801 = vmax.xlane.f32.xlu0 %v800_v16 }
 0xfe4   : > { %v802_v17 = vpop.xlane.xlu0 %801 }
 0xfe5   : > { %vm803_vm11 = vcmp.eq.f32.partialorder %v800_v16, %v802_v17 }
 0xfe6   : > { %v804_v19 = vsel %vm803_vm11, %v2378_v3, 1073741824 }
 0xfe7   : > { %v806_v20 = vshra.s32 %v804_v19, 16  ;;  %v805_v23 = vand.u32 65535, %v804_v19 }
 0xfe9   : > { %v808_v22 = vcvt.s32.f32 %v806_v20  ;;  %v807_v25 = vcvt.s32.f32 %v805_v23 }
 0xfeb   : > { %809 = vmin.xlane.f32.xlu1 %v808_v22 }
0x1078   : > { %v810_v24 = vpop.xlane.xlu1 %809 }
0x1079   : > { %vm811_vm12 = vcmp.eq.f32.partialorder %v808_v22, %v810_v24  ;;  %v816_v27 = vcvt.f32.s32 %v810_v24 }
0x107a   : > { %v812_v26 = vsel %vm811_vm12, %v807_v25, inf }
0x107b   : > { %813 = vmin.xlane.f32.xlu0 %v812_v26  ;;  %v817_v29 = vshll.u32 %v816_v27, 16 }
0x1108   : > { %v814_v28 = vpop.xlane.xlu0 %813 }
0x1109   : > { %v815_v30 = vcvt.f32.s32 %v814_v28 }
0x110b   : > { %v2446_v31 = vadd.s32 %v817_v29, %v815_v30 }
0x110d   : > { %vm819_vm14 = vcmp.eq.s32.totalorder %v2378_v3, %v2446_v31 }
0x110e   : > { %v825_v32 = vsel %vm819_vm14, -inf, %v800_v16 }
0x110f   : > { %826 = vmax.xlane.f32.xlu1 %v825_v32 }
0x119c   : > { %v827_v33 = vpop.xlane.xlu1 %826 }
0x119d   : > { %vm828_vm15 = vcmp.eq.f32.partialorder %v825_v32, %v827_v33 }
0x119e   : > { %v829_v34 = vsel %vm828_vm15, %v2378_v3, 1073741824 }
0x119f   : > { %v831_v36 = vshra.s32 %v829_v34, 16  ;;  %v830_v38 = vand.u32 65535, %v829_v34 }
0x11a1   : > { %v833_v37 = vcvt.s32.f32 %v831_v36  ;;  %v832_v40 = vcvt.s32.f32 %v830_v38 }
0x11a3   : > { %834 = vmin.xlane.f32.xlu0 %v833_v37 }
0x1230   : > { %v835_v39 = vpop.xlane.xlu0 %834 }
0x1231   : > { %vm836_vm1 = vcmp.eq.f32.partialorder %v833_v37, %v835_v39  ;;  %v841_v42 = vcvt.f32.s32 %v835_v39 }
0x1232   : > { %v837_v41 = vsel %vm836_vm1, %v832_v40, inf }
0x1233   : > { %838 = vmin.xlane.f32.xlu1 %v837_v41  ;;  %v842_v44 = vshll.u32 %v841_v42, 16 }
0x12c0   : > { %v839_v43 = vpop.xlane.xlu1 %838 }
0x12c1   : > { %v840_v45 = vcvt.f32.s32 %v839_v43 }
0x12c3   : > { %v2454_v46 = vadd.s32 %v842_v44, %v840_v45 }
0x12c5   : > { %vm844_vm2 = vcmp.eq.s32.totalorder %v2378_v3, %v2454_v46 }
0x12c6   : > { %v850_v47 = vsel %vm844_vm2, -inf, %v825_v32 }
0x12c7   : > { %851 = vmax.xlane.f32.xlu0 %v850_v47 }
0x1354   : > { %v852_v48 = vpop.xlane.xlu0 %851 }
0x1355   : > { %vm853_vm4 = vcmp.eq.f32.partialorder %v850_v47, %v852_v48 }
0x1356   : > { %v854_v50 = vsel %vm853_vm4, %v2378_v3, 1073741824 }
0x1357   : > { %v856_v51 = vshra.s32 %v854_v50, 16  ;;  %v855_v53 = vand.u32 65535, %v854_v50 }
0x1359   : > { %v858_v52 = vcvt.s32.f32 %v856_v51  ;;  %v857_v55 = vcvt.s32.f32 %v855_v53 }
0x135b   : > { %859 = vmin.xlane.f32.xlu1 %v858_v52 }
0x13e8   : > { %v860_v54 = vpop.xlane.xlu1 %859 }
0x13e9   : > { %vm861_vm5 = vcmp.eq.f32.partialorder %v858_v52, %v860_v54  ;;  %v866_v57 = vcvt.f32.s32 %v860_v54 }
0x13ea   : > { %v862_v56 = vsel %vm861_vm5, %v857_v55, inf }
0x13eb   : > { %863 = vmin.xlane.f32.xlu0 %v862_v56  ;;  %v867_v59 = vshll.u32 %v866_v57, 16 }
0x1478   : > { %v864_v58 = vpop.xlane.xlu0 %863 }
0x1479   : > { %v865_v60 = vcvt.f32.s32 %v864_v58 }
0x147b   : > { %v2462_v61 = vadd.s32 %v867_v59, %v865_v60 }
0x147d   : > { %vm869_vm7 = vcmp.eq.s32.totalorder %v2378_v3, %v2462_v61 }
0x147e   : > { %v875_v62 = vsel %vm869_vm7, -inf, %v850_v47 }
0x147f   : > { %876 = vmax.xlane.f32.xlu1 %v875_v62 }
0x150c   : > { %v877_v0 = vpop.xlane.xlu1 %876 }
0x150d   : > { %vm878_vm8 = vcmp.eq.f32.partialorder %v875_v62, %v877_v0 }
0x150e   : > { %v879_v1 = vsel %vm878_vm8, %v2378_v3, 1073741824 }
0x150f   : > { %v881_v2 = vshra.s32 %v879_v1, 16  ;;  %v880_v5 = vand.u32 65535, %v879_v1 }
0x1511   : > { %v883_v4 = vcvt.s32.f32 %v881_v2  ;;  %v882_v8 = vcvt.s32.f32 %v880_v5 }
0x1513   : > { %884 = vmin.xlane.f32.xlu0 %v883_v4 }
0x15a0   : > { %v885_v7 = vpop.xlane.xlu0 %884 }
0x15a1   : > { %vm886_vm11 = vcmp.eq.f32.partialorder %v883_v4, %v885_v7  ;;  %v891_v10 = vcvt.f32.s32 %v885_v7 }
0x15a2   : > { %v887_v9 = vsel %vm886_vm11, %v882_v8, inf }
0x15a3   : > { %888 = vmin.xlane.f32.xlu1 %v887_v9  ;;  %v892_v12 = vshll.u32 %v891_v10, 16 }
0x1630   : > { %v889_v11 = vpop.xlane.xlu1 %888 }
0x1631   : > { %v890_v13 = vcvt.f32.s32 %v889_v11 }
0x1633   : > { %v2470_v14 = vadd.s32 %v892_v12, %v890_v13 }
0x1635   : > { %vm894_vm12 = vcmp.eq.s32.totalorder %v2378_v3, %v2470_v14 }
0x1636   : > { %v900_v16 = vsel %vm894_vm12, -inf, %v875_v62 }
0x1637   : > { %901 = vmax.xlane.f32.xlu0 %v900_v16 }
0x16c4   : > { %v902_v17 = vpop.xlane.xlu0 %901 }
0x16c5   : > { %vm903_vm15 = vcmp.eq.f32.partialorder %v900_v16, %v902_v17 }
0x16c6   : > { %v904_v19 = vsel %vm903_vm15, %v2378_v3, 1073741824 }
0x16c7   : > { %v906_v20 = vshra.s32 %v904_v19, 16  ;;  %v905_v23 = vand.u32 65535, %v904_v19 }
0x16c9   : > { %v908_v22 = vcvt.s32.f32 %v906_v20  ;;  %v907_v25 = vcvt.s32.f32 %v905_v23 }
0x16cb   : > { %909 = vmin.xlane.f32.xlu1 %v908_v22 }
0x1758   : > { %v910_v24 = vpop.xlane.xlu1 %909 }
0x1759   : > { %vm911_vm1 = vcmp.eq.f32.partialorder %v908_v22, %v910_v24  ;;  %v916_v27 = vcvt.f32.s32 %v910_v24 }
0x175a   : > { %v912_v26 = vsel %vm911_vm1, %v907_v25, inf }
0x175b   : > { %913 = vmin.xlane.f32.xlu0 %v912_v26  ;;  %v917_v29 = vshll.u32 %v916_v27, 16 }
0x17e8   : > { %v914_v28 = vpop.xlane.xlu0 %913 }
0x17e9   : > { %v915_v30 = vcvt.f32.s32 %v914_v28 }
0x17eb   : > { %v2478_v32 = vadd.s32 %v917_v29, %v915_v30 }
0x17ed   : > { %vm919_vm4 = vcmp.eq.s32.totalorder %v2378_v3, %v2478_v32 }
0x17ee   : > { %v925_v33 = vsel %vm919_vm4, -inf, %v900_v16 }
0x17ef   : > { %926 = vmax.xlane.f32.xlu1 %v925_v33 }
0x187c   : > { %v927_v34 = vpop.xlane.xlu1 %926 }
0x187d   : > { %vm928_vm5 = vcmp.eq.f32.partialorder %v925_v33, %v927_v34 }
0x187e   : > { %v929_v36 = vsel %vm928_vm5, %v2378_v3, 1073741824 }
0x187f   : > { %v931_v37 = vshra.s32 %v929_v36, 16  ;;  %v930_v39 = vand.u32 65535, %v929_v36 }
0x1881   : > { %v933_v38 = vcvt.s32.f32 %v931_v37  ;;  %v932_v41 = vcvt.s32.f32 %v930_v39 }
0x1883   : > { %934 = vmin.xlane.f32.xlu0 %v933_v38 }
0x1910   : > { %v935_v40 = vpop.xlane.xlu0 %934 }
0x1911   : > { %vm936_vm8 = vcmp.eq.f32.partialorder %v933_v38, %v935_v40  ;;  %v941_v43 = vcvt.f32.s32 %v935_v40 }
0x1912   : > { %v937_v42 = vsel %vm936_vm8, %v932_v41, inf }
0x1913   : > { %938 = vmin.xlane.f32.xlu1 %v937_v42  ;;  %v942_v45 = vshll.u32 %v941_v43, 16 }
0x19a0   : > { %v939_v44 = vpop.xlane.xlu1 %938 }
0x19a1   : > { %v940_v47 = vcvt.f32.s32 %v939_v44 }
0x19a3   : > { %v2486_v48 = vadd.s32 %v942_v45, %v940_v47 }
0x19a5   : > { %vm944_vm11 = vcmp.eq.s32.totalorder %v2378_v3, %v2486_v48 }
0x19a6   : > { %v950_v50 = vsel %vm944_vm11, -inf, %v925_v33 }
0x19a7   : > { %951 = vmax.xlane.f32.xlu0 %v950_v50 }
0x1a34   : > { %v952_v51 = vpop.xlane.xlu0 %951 }
0x1a35   : > { %vm953_vm15 = vcmp.eq.f32.partialorder %v950_v50, %v952_v51 }
0x1a36   : > { %v954_v52 = vsel %vm953_vm15, %v2378_v3, 1073741824 }
0x1a37   : > { %v956_v53 = vshra.s32 %v954_v52, 16  ;;  %v955_v55 = vand.u32 65535, %v954_v52 }
0x1a39   : > { %v958_v54 = vcvt.s32.f32 %v956_v53  ;;  %v957_v57 = vcvt.s32.f32 %v955_v55 }
0x1a3b   : > { %959 = vmin.xlane.f32.xlu1 %v958_v54 }
0x1ac8   : > { %v960_v56 = vpop.xlane.xlu1 %959 }
0x1ac9   : > { %vm961_vm1 = vcmp.eq.f32.partialorder %v958_v54, %v960_v56  ;;  %v966_v59 = vcvt.f32.s32 %v960_v56 }
0x1aca   : > { %v962_v58 = vsel %vm961_vm1, %v957_v57, inf }
0x1acb   : > { %963 = vmin.xlane.f32.xlu0 %v962_v58  ;;  %v967_v62 = vshll.u32 %v966_v59, 16 }
0x1b58   : > { %v964_v60 = vpop.xlane.xlu0 %963 }
0x1b59   : > { %v965_v0 = vcvt.f32.s32 %v964_v60 }
0x1b5b   : > { %v2494_v1 = vadd.s32 %v967_v62, %v965_v0 }
0x1b5d   : > { %vm969_vm5 = vcmp.eq.s32.totalorder %v2378_v3, %v2494_v1 }
0x1b5e   : > { %v975_v2 = vsel %vm969_vm5, -inf, %v950_v50 }
0x1b5f   : > { %976 = vmax.xlane.f32.xlu1 %v975_v2 }
0x1bec   : > { %v977_v4 = vpop.xlane.xlu1 %976 }
0x1bed   : > { %vm978_vm8 = vcmp.eq.f32.partialorder %v975_v2, %v977_v4 }
0x1bee   : > { %v979_v5 = vsel %vm978_vm8, %v2378_v3, 1073741824 }
0x1bef   : > { %v981_v7 = vshra.s32 %v979_v5, 16  ;;  %v980_v9 = vand.u32 65535, %v979_v5 }
0x1bf1   : > { %v983_v8 = vcvt.s32.f32 %v981_v7  ;;  %v982_v11 = vcvt.s32.f32 %v980_v9 }
0x1bf3   : > { %984 = vmin.xlane.f32.xlu0 %v983_v8 }
0x1c80   : > { %v985_v10 = vpop.xlane.xlu0 %984 }
0x1c81   : > { %vm986_vm15 = vcmp.eq.f32.partialorder %v983_v8, %v985_v10  ;;  %v991_v13 = vcvt.f32.s32 %v985_v10 }
0x1c82   : > { %v987_v12 = vsel %vm986_vm15, %v982_v11, inf }
0x1c83   : > { %988 = vmin.xlane.f32.xlu1 %v987_v12  ;;  %v992_v17 = vshll.u32 %v991_v13, 16 }
0x1d10   : > { %v989_v16 = vpop.xlane.xlu1 %988 }
0x1d11   : > { %v990_v19 = vcvt.f32.s32 %v989_v16 }
0x1d13   : > { %v2502_v20 = vadd.s32 %v992_v17, %v990_v19 }
0x1d15   : > { %vm2815_vm1 = vcmp.eq.s32.totalorder %v2378_v3, %v2502_v20 }
0x1d16   : > { %v1000_v22 = vsel %vm2815_vm1, -inf, %v975_v2 }
0x1d17   : > { %1001 = vmax.xlane.f32.xlu0 %v1000_v22 }
0x1da4   : > { %v1002_v23 = vpop.xlane.xlu0 %1001 }
0x1da5   : > { %vm1003_vm8 = vcmp.eq.f32.partialorder %v1000_v22, %v1002_v23 }
0x1da6   : > { %v1004_v24 = vsel %vm1003_vm8, %v2378_v3, 1073741824 }
0x1da7   : > { %v1006_v25 = vshra.s32 %v1004_v24, 16  ;;  %v1005_v27 = vand.u32 65535, %v1004_v24 }
0x1da9   : > { %v1008_v26 = vcvt.s32.f32 %v1006_v25  ;;  %v1007_v29 = vcvt.s32.f32 %v1005_v27 }
0x1dab   : > { %1009 = vmin.xlane.f32.xlu1 %v1008_v26 }
0x1e38   : > { %v1010_v28 = vpop.xlane.xlu1 %1009 }
0x1e39   : > { %vm1011_vm15 = vcmp.eq.f32.partialorder %v1008_v26, %v1010_v28  ;;  %v1016_v33 = vcvt.f32.s32 %v1010_v28 }
0x1e3a   : > { %v1012_v30 = vsel %vm1011_vm15, %v1007_v29, inf }
0x1e3b   : > { %1013 = vmin.xlane.f32.xlu0 %v1012_v30  ;;  %v1017_v36 = vshll.u32 %v1016_v33, 16 }
0x1ec8   : > { %v1014_v34 = vpop.xlane.xlu0 %1013 }
0x1ec9   : > { %v1015_v37 = vcvt.f32.s32 %v1014_v34 }
0x1ecb   : > { %v2510_v38 = vadd.s32 %v1017_v36, %v1015_v37 }
0x1ecd   : > { %vm2816_vm1 = vcmp.eq.s32.totalorder %v2378_v3, %v2510_v38 }
0x1ece   : > { %v1025_v39 = vsel %vm2816_vm1, -inf, %v1000_v22 }
0x1ecf   : > { %1026 = vmax.xlane.f32.xlu1 %v1025_v39 }
0x1f5c   : > { %v1027_v40 = vpop.xlane.xlu1 %1026 }
0x1f5d   : > { %vm1028_vm8 = vcmp.eq.f32.partialorder %v1025_v39, %v1027_v40 }
0x1f5e   : > { %v1029_v41 = vsel %vm1028_vm8, %v2378_v3, 1073741824 }
0x1f5f   : > { %v1031_v42 = vshra.s32 %v1029_v41, 16  ;;  %v1030_v44 = vand.u32 65535, %v1029_v41 }
0x1f61   : > { %v1033_v43 = vcvt.s32.f32 %v1031_v42  ;;  %v1032_v47 = vcvt.s32.f32 %v1030_v44 }
0x1f63   : > { %1034 = vmin.xlane.f32.xlu0 %v1033_v43 }
0x1ff0   : > { %v1035_v45 = vpop.xlane.xlu0 %1034 }
0x1ff1   : > { %vm1036_vm15 = vcmp.eq.f32.partialorder %v1033_v43, %v1035_v45  ;;  %v1041_v51 = vcvt.f32.s32 %v1035_v45 }
0x1ff2   : > { %v1037_v50 = vsel %vm1036_vm15, %v1032_v47, inf }
0x1ff3   : > { %1038 = vmin.xlane.f32.xlu1 %v1037_v50  ;;  %v1042_v53 = vshll.u32 %v1041_v51, 16 }
0x2080   : > { %v1039_v52 = vpop.xlane.xlu1 %1038 }
0x2081   : > { %v1040_v54 = vcvt.f32.s32 %v1039_v52 }
0x2083   : > { %v2518_v55 = vadd.s32 %v1042_v53, %v1040_v54 }
0x2085   : > { %vm2817_vm1 = vcmp.eq.s32.totalorder %v2378_v3, %v2518_v55 }
0x2086   : > { %v1050_v56 = vsel %vm2817_vm1, -inf, %v1025_v39 }
0x2087   : > { %1051 = vmax.xlane.f32.xlu0 %v1050_v56 }
0x2114   : > { %v1052_v57 = vpop.xlane.xlu0 %1051 }
0x2115   : > { %vm1053_vm8 = vcmp.eq.f32.partialorder %v1050_v56, %v1052_v57 }
0x2116   : > { %v1054_v58 = vsel %vm1053_vm8, %v2378_v3, 1073741824 }
0x2117   : > { %v1056_v59 = vshra.s32 %v1054_v58, 16  ;;  %v1055_v62 = vand.u32 65535, %v1054_v58 }
0x2119   : > { %v1058_v60 = vcvt.s32.f32 %v1056_v59  ;;  %v1057_v2 = vcvt.s32.f32 %v1055_v62 }
0x211b   : > { %1059 = vmin.xlane.f32.xlu1 %v1058_v60 }
0x21a8   : > { %v1060_v0 = vpop.xlane.xlu1 %1059 }
0x21a9   : > { %vm1061_vm15 = vcmp.eq.f32.partialorder %v1058_v60, %v1060_v0  ;;  %v1066_v5 = vcvt.f32.s32 %v1060_v0 }
0x21aa   : > { %v1062_v4 = vsel %vm1061_vm15, %v1057_v2, inf }
0x21ab   : > { %1063 = vmin.xlane.f32.xlu0 %v1062_v4  ;;  %v1067_v8 = vshll.u32 %v1066_v5, 16 }
0x2238   : > { %v1064_v7 = vpop.xlane.xlu0 %1063 }
0x2239   : > { %v1065_v9 = vcvt.f32.s32 %v1064_v7 }
0x223b   : > { %v2526_v10 = vadd.s32 %v1067_v8, %v1065_v9 }
0x223d   : > { %vm2818_vm1 = vcmp.eq.s32.totalorder %v2378_v3, %v2526_v10 }
0x223e   : > { %v1075_v11 = vsel %vm2818_vm1, -inf, %v1050_v56 }
0x223f   : > { %1076 = vmax.xlane.f32.xlu1 %v1075_v11 }
0x22cc   : > { %v1077_v12 = vpop.xlane.xlu1 %1076 }
0x22cd   : > { %vm1078_vm8 = vcmp.eq.f32.partialorder %v1075_v11, %v1077_v12 }
0x22ce   : > { %v1079_v13 = vsel %vm1078_vm8, %v2378_v3, 1073741824 }
0x22cf   : > { %v1081_v16 = vshra.s32 %v1079_v13, 16  ;;  %v1080_v19 = vand.u32 65535, %v1079_v13 }
0x22d1   : > { %v1083_v17 = vcvt.s32.f32 %v1081_v16  ;;  %v1082_v23 = vcvt.s32.f32 %v1080_v19 }
0x22d3   : > { %1084 = vmin.xlane.f32.xlu0 %v1083_v17 }
0x2360   : > { %v1085_v22 = vpop.xlane.xlu0 %1084 }
0x2361   : > { %vm1086_vm15 = vcmp.eq.f32.partialorder %v1083_v17, %v1085_v22  ;;  %v1091_v25 = vcvt.f32.s32 %v1085_v22 }
0x2362   : > { %v1087_v24 = vsel %vm1086_vm15, %v1082_v23, inf }
0x2363   : > { %1088 = vmin.xlane.f32.xlu1 %v1087_v24  ;;  %v1092_v27 = vshll.u32 %v1091_v25, 16 }
0x23f0   : > { %v1089_v26 = vpop.xlane.xlu1 %1088 }
0x23f1   : > { %v1090_v28 = vcvt.f32.s32 %v1089_v26 }
0x23f3   : > { %v2534_v29 = vadd.s32 %v1092_v27, %v1090_v28 }
0x23f5   : > { %vm2819_vm1 = vcmp.eq.s32.totalorder %v2378_v3, %v2534_v29 }
0x23f6   : > { %v1100_v30 = vsel %vm2819_vm1, -inf, %v1075_v11 }
0x23f7   : > { %1101 = vmax.xlane.f32.xlu0 %v1100_v30 }
0x2484   : > { %v1102_v33 = vpop.xlane.xlu0 %1101 }
0x2485   : > { %vm1103_vm8 = vcmp.eq.f32.partialorder %v1100_v30, %v1102_v33 }
0x2486   : > { %v1104_v34 = vsel %vm1103_vm8, %v2378_v3, 1073741824 }
0x2487   : > { %v1106_v36 = vshra.s32 %v1104_v34, 16  ;;  %v1105_v39 = vand.u32 65535, %v1104_v34 }
0x2489   : > { %v1108_v37 = vcvt.s32.f32 %v1106_v36  ;;  %v1107_v41 = vcvt.s32.f32 %v1105_v39 }
0x248b   : > { %1109 = vmin.xlane.f32.xlu1 %v1108_v37 }
0x2518   : > { %v1110_v40 = vpop.xlane.xlu1 %1109 }
0x2519   : > { %vm1111_vm15 = vcmp.eq.f32.partialorder %v1108_v37, %v1110_v40  ;;  %v1116_v43 = vcvt.f32.s32 %v1110_v40 }
0x251a   : > { %v1112_v42 = vsel %vm1111_vm15, %v1107_v41, inf }
0x251b   : > { %1113 = vmin.xlane.f32.xlu0 %v1112_v42  ;;  %v1117_v45 = vshll.u32 %v1116_v43, 16 }
0x25a8   : > { %v1114_v44 = vpop.xlane.xlu0 %1113 }
0x25a9   : > { %v1115_v47 = vcvt.f32.s32 %v1114_v44 }
0x25ab   : > { %v2542_v50 = vadd.s32 %v1117_v45, %v1115_v47 }
0x25ad   : > { %vm2820_vm1 = vcmp.eq.s32.totalorder %v2378_v3, %v2542_v50 }
0x25ae   : > { %v1125_v51 = vsel %vm2820_vm1, -inf, %v1100_v30 }
0x25af   : > { %1126 = vmax.xlane.f32.xlu1 %v1125_v51 }
0x263c   : > { %v1127_v52 = vpop.xlane.xlu1 %1126 }
0x263d   : > { %vm1128_vm8 = vcmp.eq.f32.partialorder %v1125_v51, %v1127_v52 }
0x263e   : > { %v1129_v53 = vsel %vm1128_vm8, %v2378_v3, 1073741824 }
0x263f   : > { %v1131_v54 = vshra.s32 %v1129_v53, 16  ;;  %v1130_v57 = vand.u32 65535, %v1129_v53 }
0x2641   : > { %v1133_v56 = vcvt.s32.f32 %v1131_v54  ;;  %v1132_v59 = vcvt.s32.f32 %v1130_v57 }
0x2643   : > { %1134 = vmin.xlane.f32.xlu0 %v1133_v56 }
0x26d0   : > { %v1135_v58 = vpop.xlane.xlu0 %1134 }
0x26d1   : > { %vm1136_vm15 = vcmp.eq.f32.partialorder %v1133_v56, %v1135_v58  ;;  %v1141_v62 = vcvt.f32.s32 %v1135_v58 }
0x26d2   : > { %v1137_v60 = vsel %vm1136_vm15, %v1132_v59, inf }
0x26d3   : > { %1138 = vmin.xlane.f32.xlu1 %v1137_v60  ;;  %v1142_v2 = vshll.u32 %v1141_v62, 16 }
0x2760   : > { %v1139_v0 = vpop.xlane.xlu1 %1138 }
0x2761   : > { %v1140_v4 = vcvt.f32.s32 %v1139_v0 }
0x2763   : > { %v2550_v5 = vadd.s32 %v1142_v2, %v1140_v4 }
0x2765   : > { %vm2821_vm1 = vcmp.eq.s32.totalorder %v2378_v3, %v2550_v5 }
0x2766   : > { %v1150_v7 = vsel %vm2821_vm1, -inf, %v1125_v51 }
0x2767   : > { %1151 = vmax.xlane.f32.xlu0 %v1150_v7 }
0x27f4   : > { %v1152_v8 = vpop.xlane.xlu0 %1151 }
0x27f5   : > { %vm1153_vm8 = vcmp.eq.f32.partialorder %v1150_v7, %v1152_v8 }
0x27f6   : > { %v1154_v9 = vsel %vm1153_vm8, %v2378_v3, 1073741824 }
0x27f7   : > { %v1156_v11 = vshra.s32 %v1154_v9, 16  ;;  %v1155_v13 = vand.u32 65535, %v1154_v9 }
0x27f9   : > { %v1158_v12 = vcvt.s32.f32 %v1156_v11  ;;  %v1157_v17 = vcvt.s32.f32 %v1155_v13 }
0x27fb   : > { %1159 = vmin.xlane.f32.xlu1 %v1158_v12 }
0x2888   : > { %v1160_v16 = vpop.xlane.xlu1 %1159 }
0x2889   : > { %vm1161_vm15 = vcmp.eq.f32.partialorder %v1158_v12, %v1160_v16  ;;  %v1166_v22 = vcvt.f32.s32 %v1160_v16 }
0x288a   : > { %v1162_v19 = vsel %vm1161_vm15, %v1157_v17, inf }
0x288b   : > { %1163 = vmin.xlane.f32.xlu0 %v1162_v19  ;;  %v1167_v24 = vshll.u32 %v1166_v22, 16 }
0x2918   : > { %v1164_v23 = vpop.xlane.xlu0 %1163 }
0x2919   : > { %v1165_v25 = vcvt.f32.s32 %v1164_v23 }
0x291b   : > { %v2558_v26 = vadd.s32 %v1167_v24, %v1165_v25 }
0x291d   : > { %vm2822_vm1 = vcmp.eq.s32.totalorder %v2378_v3, %v2558_v26 }
0x291e   : > { %v1175_v27 = vsel %vm2822_vm1, -inf, %v1150_v7 }
0x291f   : > { %1176 = vmax.xlane.f32.xlu1 %v1175_v27 }
0x29ac   : > { %v1177_v28 = vpop.xlane.xlu1 %1176 }
0x29ad   : > { %vm1178_vm8 = vcmp.eq.f32.partialorder %v1175_v27, %v1177_v28 }
0x29ae   : > { %v1179_v30 = vsel %vm1178_vm8, %v2378_v3, 1073741824 }
0x29af   : > { %v1181_v33 = vshra.s32 %v1179_v30, 16  ;;  %v1180_v36 = vand.u32 65535, %v1179_v30 }
0x29b1   : > { %v1183_v34 = vcvt.s32.f32 %v1181_v33  ;;  %v1182_v39 = vcvt.s32.f32 %v1180_v36 }
0x29b3   : > { %1184 = vmin.xlane.f32.xlu0 %v1183_v34 }
0x2a40   : > { %v1185_v37 = vpop.xlane.xlu0 %1184 }
0x2a41   : > { %vm1186_vm15 = vcmp.eq.f32.partialorder %v1183_v34, %v1185_v37  ;;  %v1191_v41 = vcvt.f32.s32 %v1185_v37 }
0x2a42   : > { %v1187_v40 = vsel %vm1186_vm15, %v1182_v39, inf }
0x2a43   : > { %1188 = vmin.xlane.f32.xlu1 %v1187_v40  ;;  %v1192_v43 = vshll.u32 %v1191_v41, 16 }
0x2ad0   : > { %v1189_v42 = vpop.xlane.xlu1 %1188 }
0x2ad1   : > { %v1190_v44 = vcvt.f32.s32 %v1189_v42 }
0x2ad3   : > { %v2566_v45 = vadd.s32 %v1192_v43, %v1190_v44 }
0x2ad5   : > { %vm2823_vm1 = vcmp.eq.s32.totalorder %v2378_v3, %v2566_v45 }
0x2ad6   : > { %v1200_v47 = vsel %vm2823_vm1, -inf, %v1175_v27 }
0x2ad7   : > { %1201 = vmax.xlane.f32.xlu0 %v1200_v47 }
0x2b64   : > { %v1202_v51 = vpop.xlane.xlu0 %1201 }
0x2b65   : > { %vm1203_vm8 = vcmp.eq.f32.partialorder %v1200_v47, %v1202_v51 }
0x2b66   : > { %v1204_v52 = vsel %vm1203_vm8, %v2378_v3, 1073741824 }
0x2b67   : > { %v1206_v53 = vshra.s32 %v1204_v52, 16  ;;  %v1205_v56 = vand.u32 65535, %v1204_v52 }
0x2b69   : > { %v1208_v54 = vcvt.s32.f32 %v1206_v53  ;;  %v1207_v58 = vcvt.s32.f32 %v1205_v56 }
0x2b6b   : > { %1209 = vmin.xlane.f32.xlu1 %v1208_v54 }
0x2bf8   : > { %v1210_v57 = vpop.xlane.xlu1 %1209 }
0x2bf9   : > { %vm1211_vm15 = vcmp.eq.f32.partialorder %v1208_v54, %v1210_v57  ;;  %v1216_v60 = vcvt.f32.s32 %v1210_v57 }
0x2bfa   : > { %v1212_v59 = vsel %vm1211_vm15, %v1207_v58, inf }
0x2bfb   : > { %1213 = vmin.xlane.f32.xlu0 %v1212_v59  ;;  %v1217_v0 = vshll.u32 %v1216_v60, 16 }
0x2c88   : > { %v1214_v62 = vpop.xlane.xlu0 %1213 }
0x2c89   : > { %v1215_v2 = vcvt.f32.s32 %v1214_v62 }
0x2c8b   : > { %v2574_v4 = vadd.s32 %v1217_v0, %v1215_v2 }
0x2c8d   : > { %vm2824_vm1 = vcmp.eq.s32.totalorder %v2378_v3, %v2574_v4 }
0x2c8e   : > { %v1225_v7 = vsel %vm2824_vm1, -inf, %v1200_v47 }
0x2c8f   : > { %1226 = vmax.xlane.f32.xlu1 %v1225_v7 }
0x2d1c   : > { %v1227_v8 = vpop.xlane.xlu1 %1226 }
0x2d1d   : > { %vm1228_vm8 = vcmp.eq.f32.partialorder %v1225_v7, %v1227_v8 }
0x2d1e   : > { %v1229_v9 = vsel %vm1228_vm8, %v2378_v3, 1073741824 }
0x2d1f   : > { %v1231_v11 = vshra.s32 %v1229_v9, 16  ;;  %v1230_v13 = vand.u32 65535, %v1229_v9 }
0x2d21   : > { %v1233_v12 = vcvt.s32.f32 %v1231_v11  ;;  %v1232_v17 = vcvt.s32.f32 %v1230_v13 }
0x2d23   : > { %1234 = vmin.xlane.f32.xlu0 %v1233_v12 }
0x2db0   : > { %v1235_v16 = vpop.xlane.xlu0 %1234 }
0x2db1   : > { %vm1236_vm15 = vcmp.eq.f32.partialorder %v1233_v12, %v1235_v16  ;;  %v1241_v22 = vcvt.f32.s32 %v1235_v16  ;;  %v2059_v12 = vmov 0  }
0x2db2   : > { %v1237_v19 = vsel %vm1236_vm15, %v1232_v17, inf  ;;  %1788 = vset.pattern.permute.xlu1 %v2059_v12  ;;  %v2079_v12 = vmov 20  }
0x2db3   : > { %1238 = vmin.xlane.f32.xlu1 %v1237_v19  ;;  %v1242_v24 = vshll.u32 %v1241_v22, 16  ;;  %v646_v22 = vld [vmem:[%s320_s24] sm:$0xff] }
0x2e40   : > { %v1239_v23 = vpop.xlane.xlu1 %1238 }
0x2e41   : > { %v1240_v25 = vcvt.f32.s32 %v1239_v23 }
0x2e43   : > { %v2582_v27 = vadd.s32 %v1242_v24, %v1240_v25  ;;  %v2060_v24 = vmov 2   ;;  %v2061_v25 = vmov 3  }
0x2e45   : > { %vm2825_vm1 = vcmp.eq.s32.totalorder %v2378_v3, %v2582_v27 }
0x2e46   : > { %v1250_v28 = vsel %vm2825_vm1, -inf, %v1225_v7 }
0x2e47   : > { %1251 = vmax.xlane.f32.xlu0 %v1250_v28 }
0x2ed4   : > { %v1252_v30 = vpop.xlane.xlu0 %1251 }
0x2ed5   : > { %vm1253_vm8 = vcmp.eq.f32.partialorder %v1250_v28, %v1252_v30  ;;  %v2063_v30 = vmov 5  }
0x2ed6   : > { %v1254_v33 = vsel %vm1253_vm8, %v2378_v3, 1073741824 }
0x2ed7   : > { %v1256_v34 = vshra.s32 %v1254_v33, 16  ;;  %v1255_v37 = vand.u32 65535, %v1254_v33  ;;  %v2065_v33 = vmov 7  }
0x2ed9   : > { %v1258_v36 = vcvt.s32.f32 %v1256_v34  ;;  %v1257_v40 = vcvt.s32.f32 %v1255_v37  ;;  %v2066_v34 = vmov 8  }
0x2edb   : > { %1259 = vmin.xlane.f32.xlu1 %v1258_v36 }
0x2f68   : > { %v1260_v39 = vpop.xlane.xlu1 %1259 }
0x2f69   : > { %vm1261_vm15 = vcmp.eq.f32.partialorder %v1258_v36, %v1260_v39  ;;  %v1266_v42 = vcvt.f32.s32 %v1260_v39  ;;  %v2067_v36 = vmov 9  }
0x2f6a   : > { %v1262_v41 = vsel %vm1261_vm15, %v1257_v40, inf }
0x2f6b   : > { %1263 = vmin.xlane.f32.xlu0 %v1262_v41  ;;  %v1267_v44 = vshll.u32 %v1266_v42, 16  ;;  %v2068_v42 = vmov 10  }
0x2ff8   : > { %v1264_v43 = vpop.xlane.xlu0 %1263 }
0x2ff9   : > { %v1265_v47 = vcvt.f32.s32 %v1264_v43  ;;  %v2069_v43 = vmov 11  }
0x2ffb   : > { %v2590_v51 = vadd.s32 %v1267_v44, %v1265_v47  ;;  %v2070_v44 = vmov 1   ;;  %v2071_v47 = vmov 12  }
0x2ffc   : > { %1789 = vset.pattern.permute.xlu0 %v2070_v44 }
0x2ffd   : > { %vm2826_vm1 = vcmp.eq.s32.totalorder %v2378_v3, %v2590_v51 }
0x2ffe   : > { %v1275_v52 = vsel %vm2826_vm1, -inf, %v1250_v28  ;;  %v2062_v28 = vmov 4  }
0x2fff   : > { %1276 = vmax.xlane.f32.xlu1 %v1275_v52 }
0x308c   : > { %v1277_v53 = vpop.xlane.xlu1 %1276 }
0x308d   : > { %vm1278_vm8 = vcmp.eq.f32.partialorder %v1275_v52, %v1277_v53  ;;  %v2073_v53 = vmov 14  }
0x308e   : > { %v1279_v54 = vsel %vm1278_vm8, %v2378_v3, 1073741824 }
0x308f   : > { %v1281_v56 = vshra.s32 %v1279_v54, 16  ;;  %v1280_v58 = vand.u32 65535, %v1279_v54  ;;  %v2074_v54 = vmov 15  }
0x3091   : > { %v1283_v57 = vcvt.s32.f32 %v1281_v56  ;;  %v1282_v60 = vcvt.s32.f32 %v1280_v58  ;;  %v2075_v56 = vmov 16   ;;  %v2077_v58 = vmov 18  }
0x3093   : > { %1284 = vmin.xlane.f32.xlu0 %v1283_v57 }
0x3120   : > { %v1285_v59 = vpop.xlane.xlu0 %1284 }
0x3121   : > { %vm1286_vm15 = vcmp.eq.f32.partialorder %v1283_v57, %v1285_v59  ;;  %v1291_v0 = vcvt.f32.s32 %v1285_v59  ;;  %v2076_v57 = vmov 17  }
0x3122   : > { %v1287_v62 = vsel %vm1286_vm15, %v1282_v60, inf  ;;  %vm647_vm15 = vcmp.gt.f32.partialorder %v646_v22, 0.8 }
0x3123   : > { %1288 = vmin.xlane.f32.xlu1 %v1287_v62  ;;  %v1292_v7 = vshll.u32 %v1291_v0, 16  ;;  %v2612_v23 = vsel %vm647_vm15, 1.0, %v2058_v18  ;;  %v2064_v18 = vmov 6  }
0x31b0   : > { %v1289_v2 = vpop.xlane.xlu1 %1288 }
0x31b1   : > { %v1290_v8 = vcvt.f32.s32 %v1289_v2 }
0x31b3   : > { %v2598_v9 = vadd.s32 %v1292_v7, %v1290_v8  ;;  %v2078_v8 = vmov 19  }
0x31b5   : > { %vm1294_vm1 = vcmp.eq.s32.totalorder %v2378_v3, %v2598_v9 }
0x31b6   : > { %v2605_v11 = vsel %vm1294_vm1, -inf, %v1275_v52  ;;  %v2072_v52 = vmov 13  }
0x31b7   : > { %1301 = vmax.xlane.f32.xlu0 %v2605_v11 }
0x3244   : > { %v1302_v13 = vpop.xlane.xlu0 %1301 }
0x3245   : > { %vm1303_vm8 = vcmp.eq.f32.partialorder %v2605_v11, %v1302_v13 }
0x3246   : > { %v1304_v16 = vsel %vm1303_vm8, %v2378_v3, 1073741824 }
0x3247   : > { %v1306_v17 = vshra.s32 %v1304_v16, 16  ;;  %v1305_v37 = vand.u32 65535, %v1304_v16 }
0x3249   : > { %v1308_v19 = vcvt.s32.f32 %v1306_v17  ;;  %v1307_v40 = vcvt.s32.f32 %v1305_v37 }
0x324b   : > { %1309 = vmin.xlane.f32.xlu1 %v1308_v19 }
0x325c   : > { %671 = vperm.xlu1 %1788, %v2612_v23  }
0x3260   : > { %1790 = vset.pattern.permute.xlu1 %v2060_v24 }
0x3261   : > { %721 = vperm.xlu1 %1790, %v2612_v23  }
0x3265   : > { %1791 = vset.pattern.permute.xlu1 %v2061_v25 }
0x3266   : > { %746 = vperm.xlu1 %1791, %v2612_v23  }
0x326a   : > { %1792 = vset.pattern.permute.xlu1 %v2062_v28 }
0x326b   : > { %771 = vperm.xlu1 %1792, %v2612_v23  }
0x326f   : > { %1793 = vset.pattern.permute.xlu1 %v2063_v30 }
0x3270   : > { %796 = vperm.xlu1 %1793, %v2612_v23  }
0x3274   : > { %1794 = vset.pattern.permute.xlu1 %v2064_v18 }
0x3275   : > { %821 = vperm.xlu1 %1794, %v2612_v23  }
0x3279   : > { %1795 = vset.pattern.permute.xlu1 %v2065_v33 }
0x327a   : > { %846 = vperm.xlu1 %1795, %v2612_v23  }
0x327e   : > { %1796 = vset.pattern.permute.xlu1 %v2066_v34 }
0x327f   : > { %871 = vperm.xlu1 %1796, %v2612_v23  }
0x3283   : > { %1797 = vset.pattern.permute.xlu1 %v2067_v36 }
0x3284   : > { %896 = vperm.xlu1 %1797, %v2612_v23  }
0x3288   : > { %1798 = vset.pattern.permute.xlu1 %v2068_v42 }
0x3289   : > { %921 = vperm.xlu1 %1798, %v2612_v23  }
0x328d   : > { %1799 = vset.pattern.permute.xlu1 %v2069_v43 }
0x328e   : > { %946 = vperm.xlu1 %1799, %v2612_v23  }
0x3292   : > { %1800 = vset.pattern.permute.xlu1 %v2071_v47 }
0x3293   : > { %971 = vperm.xlu1 %1800, %v2612_v23  }
0x3297   : > { %1801 = vset.pattern.permute.xlu1 %v2072_v52 }
0x3298   : > { %996 = vperm.xlu1 %1801, %v2612_v23  }
0x329c   : > { %1802 = vset.pattern.permute.xlu1 %v2073_v53 }
0x329d   : > { %1021 = vperm.xlu1 %1802, %v2612_v23  }
0x32a1   : > { %1803 = vset.pattern.permute.xlu1 %v2074_v54 }
0x32a2   : > { %1046 = vperm.xlu1 %1803, %v2612_v23  }
0x32a6   : > { %1804 = vset.pattern.permute.xlu1 %v2075_v56 }
0x32a7   : > { %1071 = vperm.xlu1 %1804, %v2612_v23  }
0x32ab   : > { %1805 = vset.pattern.permute.xlu1 %v2076_v57 }
0x32ac   : > { %1096 = vperm.xlu1 %1805, %v2612_v23  }
0x32b0   : > { %1806 = vset.pattern.permute.xlu1 %v2077_v58 }
0x32b1   : > { %1121 = vperm.xlu1 %1806, %v2612_v23  }
0x32b5   : > { %1808 = vset.pattern.permute.xlu1 %v2079_v12  ;;  %v2084_v12 = vmov 24  }
0x32b6   : > { %1171 = vperm.xlu1 %1808, %v2612_v23  }
0x32d8   : > { %v1310_v39 = vpop.xlane.xlu1 %1309 }
0x32d9   : > { %vm1311_vm8 = vcmp.eq.f32.partialorder %v1308_v19, %v1310_v39  ;;  %v1316_v59 = vcvt.f32.s32 %v1310_v39 }
0x32da   : > { %v1312_v41 = vsel %vm1311_vm8, %v1307_v40, inf }
0x32db   : > { %1313 = vmin.xlane.f32.xlu0 %v1312_v41  ;;  %v1317_v62 = vshll.u32 %v1316_v59, 16  ;;  %v2081_v59 = vmov 22  }
0x32dc   : > { %v672_v13 = vpop.permute.xlu1 %671 }
0x32dd   : > { %v674_v43 = vsel %vm668_vm10, %v672_v13, 1.0  ;;  %vm2849_vm10 = vcmp.eq.s32.totalorder %v2378_v3, %v2502_v20  ;;  %v2085_v13 = vmov 26  }
0x32e0   : > { %v722_v16 = vpop.permute.xlu1 %721 }
0x32e5   : > { %v747_v17 = vpop.permute.xlu1 %746 }
0x32ea   : > { %v772_v19 = vpop.permute.xlu1 %771 }
0x32ef   : > { %v797_v22 = vpop.permute.xlu1 %796 }
0x32f4   : > { %v822_v24 = vpop.permute.xlu1 %821 }
0x32f9   : > { %v847_v25 = vpop.permute.xlu1 %846 }
0x32fe   : > { %v872_v28 = vpop.permute.xlu1 %871 }
0x3368   : > { %v1314_v60 = vpop.xlane.xlu0 %1313 }
0x3369   : > { %v1315_v0 = vcvt.f32.s32 %v1314_v60 }
0x336b   : > { %v2632_v2 = vadd.s32 %v1317_v62, %v1315_v0 }
0x336d   : > { %vm1319_vm15 = vcmp.eq.s32.totalorder %v2378_v3, %v2632_v2 }
0x336e   : > { %v2640_v7 = vsel %vm1319_vm15, -inf, %v2605_v11  ;;  %v897_v11 = vpop.permute.xlu1 %896 }
0x336f   : > { %1326 = vmax.xlane.f32.xlu0 %v2640_v7 }
0x3372   : > { %v922_v30 = vpop.permute.xlu1 %921 }
0x3376   : > { %v947_v18 = vpop.permute.xlu1 %946 }
0x337a   : > { %v972_v33 = vpop.permute.xlu1 %971 }
0x337e   : > { %v997_v34 = vpop.permute.xlu1 %996 }
0x3382   : > { %v1022_v36 = vpop.permute.xlu1 %1021 }
0x3385   : > { %696 = vperm.xlu0 %1789, %v2612_v23  }
0x3386   : > { %v1047_v42 = vpop.permute.xlu1 %1046 }
0x3389   : > { %1807 = vset.pattern.permute.xlu0 %v2078_v8 }
0x338a   : > { %v1072_v54 = vpop.permute.xlu1 %1071 }
0x338e   : > { %v1097_v57 = vpop.permute.xlu1 %1096 }
0x3392   : > { %v1122_v58 = vpop.permute.xlu1 %1121 }
0x33fc   : > { %v1327_v37 = vpop.xlane.xlu0 %1326 }
0x33fd   : > { %vm1328_vm8 = vcmp.eq.f32.partialorder %v2640_v7, %v1327_v37 }
0x33fe   : > { %v1329_v39 = vsel %vm1328_vm8, %v2378_v3, 1073741824  ;;  %vm2860_vm8 = vcmp.eq.s32.totalorder %v2378_v3, %v2590_v51  ;;  %v2087_v51 = vmov 28  }
0x33ff   : > { %v1331_v40 = vshra.s32 %v1329_v39, 16 }
0x3401   : > { %v1333_v41 = vcvt.s32.f32 %v1331_v40 }
0x3403   : > { %1334 = vmin.xlane.f32.xlu0 %v1333_v41 }
0x3404   : > { %v697_v44 = vpop.permute.xlu0 %696 }
0x3405   : > { %v699_v47 = vsel %vm694_vm13, %v697_v44, %v674_v43  ;;  %vm2850_vm13 = vcmp.eq.s32.totalorder %v2378_v3, %v2510_v38  ;;  %v2080_v38 = vmov 21  }
0x3406   : > { %v724_v52 = vsel %vm719_vm0, %v722_v16, %v699_v47  ;;  %vm2851_vm0 = vcmp.eq.s32.totalorder %v2378_v3, %v2518_v55  ;;  %1809 = vset.pattern.permute.xlu1 %v2080_v38  ;;  %v2082_v55 = vmov 23   ;;  %v2086_v16 = vmov 27  }
0x3407   : > { %v749_v53 = vsel %vm744_vm3, %v747_v17, %v724_v52  ;;  %vm2852_vm3 = vcmp.eq.s32.totalorder %v2378_v3, %v2526_v10  ;;  %v2083_v10 = vmov 25   ;;  %v1172_v17 = vpop.permute.xlu1 %1171 }
0x3408   : > { %v774_v56 = vsel %vm769_vm6, %v772_v19, %v749_v53  ;;  %vm2853_vm6 = vcmp.eq.s32.totalorder %v2378_v3, %v2534_v29  ;;  %v1330_v29 = vand.u32 65535, %v1329_v39 }
0x3409   : > { %v799_v6 = vsel %vm794_vm9, %v797_v22, %v774_v56  ;;  %vm2854_vm9 = vcmp.eq.s32.totalorder %v2378_v3, %v2542_v50 }
0x340a   : > { %v824_v21 = vsel %vm819_vm14, %v822_v24, %v799_v6  ;;  %v1332_v60 = vcvt.s32.f32 %v1330_v29 }
0x340b   : > { %v849_v35 = vsel %vm844_vm2, %v847_v25, %v824_v21  ;;  %vm2855_vm2 = vcmp.eq.s32.totalorder %v2378_v3, %v2550_v5 }
0x340c   : > { %v874_v49 = vsel %vm869_vm7, %v872_v28, %v849_v35  ;;  %vm2856_vm7 = vcmp.eq.s32.totalorder %v2378_v3, %v2558_v26 }
0x340d   : > { %v899_v63 = vsel %vm894_vm12, %v897_v11, %v874_v49  ;;  %vm2857_vm12 = vcmp.eq.s32.totalorder %v2378_v3, %v2566_v45 }
0x340e   : > { %v924_v15 = vsel %vm919_vm4, %v922_v30, %v899_v63 }
0x340f   : > { %v949_v31 = vsel %vm944_vm11, %v947_v18, %v924_v15  ;;  %vm2858_vm11 = vcmp.eq.s32.totalorder %v2378_v3, %v2574_v4 }
0x3410   : > { %v974_v46 = vsel %vm969_vm5, %v972_v33, %v949_v31  ;;  %vm2859_vm5 = vcmp.eq.s32.totalorder %v2378_v3, %v2582_v27 }
0x3411   : > { %v999_v61 = vsel %vm2849_vm10, %v997_v34, %v974_v46 }
0x3412   : > { %v1024_v14 = vsel %vm2850_vm13, %v1022_v36, %v999_v61 }
0x3413   : > { %v1049_v32 = vsel %vm2851_vm0, %v1047_v42, %v1024_v14  ;;  %v2088_v14 = vmov 29  }
0x3414   : > { %v1074_v48 = vsel %vm2852_vm3, %v1072_v54, %v1049_v32 }
0x3415   : > { %v1099_v1 = vsel %vm2853_vm6, %v1097_v57, %v1074_v48 }
0x3416   : > { %v1124_v20 = vsel %vm2854_vm9, %v1122_v58, %v1099_v1 }
0x3419   : > { %1146 = vperm.xlu0 %1807, %v2612_v23  }
0x341d   : > { %1810 = vset.pattern.permute.xlu0 %v2081_v59 }
0x341e   : > { %1221 = vperm.xlu0 %1810, %v2612_v23  }
0x3422   : > { %1811 = vset.pattern.permute.xlu0 %v2082_v55 }
0x3423   : > { %1246 = vperm.xlu0 %1811, %v2612_v23  }
0x3427   : > { %1813 = vset.pattern.permute.xlu0 %v2083_v10 }
0x3428   : > { %1296 = vperm.xlu0 %1813, %v2612_v23  }
0x342c   : > { %1816 = vset.pattern.permute.xlu0 %v2087_v51 }
0x3490   : > { %v1335_v50 = vpop.xlane.xlu0 %1334 }
0x3491   : > { %vm1336_vm14 = vcmp.eq.f32.partialorder %v1333_v41, %v1335_v50  ;;  %v1341_v19 = vcvt.f32.s32 %v1335_v50 }
0x3492   : > { %v1337_v62 = vsel %vm1336_vm14, %v1332_v60, inf }
0x3493   : > { %1338 = vmin.xlane.f32.xlu1 %v1337_v62  ;;  %v1342_v5 = vshll.u32 %v1341_v19, 16 }
0x3498   : > { %v1147_v0 = vpop.permute.xlu0 %1146 }
0x3499   : > { %v1149_v8 = vsel %vm2855_vm2, %v1147_v0, %v1124_v20 }
0x349a   : > { %v1174_v11 = vsel %vm2856_vm7, %v1172_v17, %v1149_v8 }
0x349d   : > { %v1222_v22 = vpop.permute.xlu0 %1221 }
0x34a2   : > { %v1247_v18 = vpop.permute.xlu0 %1246 }
0x34a4   : > { %1196 = vperm.xlu1 %1809, %v2612_v23  }
0x34a7   : > { %v1297_v45 = vpop.permute.xlu0 %1296 }
0x34a8   : > { %1812 = vset.pattern.permute.xlu1 %v2084_v12 }
0x34a9   : > { %1271 = vperm.xlu1 %1812, %v2612_v23  }
0x34ad   : > { %1814 = vset.pattern.permute.xlu1 %v2085_v13  ;;  %v2089_v13 = vmov 30  }
0x34ae   : > { %1321 = vperm.xlu1 %1814, %v2612_v23  }
0x34b2   : > { %1815 = vset.pattern.permute.xlu1 %v2086_v16 }
0x34b3   : > { %1346 = vperm.xlu1 %1815, %v2612_v23  }
0x34b7   : > { %1817 = vset.pattern.permute.xlu1 %v2088_v14 }
0x3520   : > { %v1339_v24 = vpop.xlane.xlu1 %1338 }
0x3521   : > { %v1340_v25 = vcvt.f32.s32 %v1339_v24 }
0x3523   : > { %v1343_v28 = vadd.s32 %v1342_v5, %v1340_v25 }
0x3524   : > { %v1197_v30 = vpop.permute.xlu1 %1196 }
0x3525   : > { %v1199_v33 = vsel %vm2857_vm12, %v1197_v30, %v1174_v11  ;;  %vm1344_vm4 = vcmp.eq.s32.totalorder %v2378_v3, %v1343_v28 }
0x3526   : > { %v1224_v34 = vsel %vm2858_vm11, %v1222_v22, %v1199_v33  ;;  %v1350_v36 = vsel %vm1344_vm4, -inf, %v2640_v7 }
0x3527   : > { %v1249_v37 = vsel %vm2859_vm5, %v1247_v18, %v1224_v34  ;;  %1351 = vmax.xlane.f32.xlu0 %v1350_v36 }
0x3528   : > { %v1272_v26 = vpop.permute.xlu1 %1271 }
0x3529   : > { %v1274_v39 = vsel %vm2860_vm8, %v1272_v26, %v1249_v37 }
0x352a   : > { %v1299_v40 = vsel %vm1294_vm1, %v1297_v45, %v1274_v39  ;;  %v2090_v39 = vmov 31  }
0x352d   : > { %v1322_v41 = vpop.permute.xlu1 %1321 }
0x352e   : > { %v1324_v4 = vsel %vm1319_vm15, %v1322_v41, %v1299_v40 }
0x3532   : > { %v1347_v7 = vpop.permute.xlu1 %1346 }
0x3533   : > { %v1349_v42 = vsel %vm1344_vm4, %v1347_v7, %v1324_v4 }
0x35b4   : > { %v1352_v27 = vpop.xlane.xlu0 %1351 }
0x35b5   : > { %vm1353_vm10 = vcmp.eq.f32.partialorder %v1350_v36, %v1352_v27 }
0x35b6   : > { %v1354_v43 = vsel %vm1353_vm10, %v2378_v3, 1073741824 }
0x35b7   : > { %v1356_v44 = vshra.s32 %v1354_v43, 16  ;;  %v1355_v52 = vand.u32 65535, %v1354_v43 }
0x35b9   : > { %v1358_v47 = vcvt.s32.f32 %v1356_v44  ;;  %v1357_v53 = vcvt.s32.f32 %v1355_v52  ;;  %v1820_v52 = vld [vmem:[%s289_s3] sm:$0xff] }
0x35bb   : > { %1359 = vmin.xlane.f32.xlu1 %v1358_v47 }
0x3648   : > { %v1360_v9 = vpop.xlane.xlu1 %1359 }
0x3649   : > { %vm1361_vm1 = vcmp.eq.f32.partialorder %v1358_v47, %v1360_v9  ;;  %v1366_v2 = vcvt.f32.s32 %v1360_v9 }
0x364a   : > { %v1362_v54 = vsel %vm1361_vm1, %v1357_v53, inf }
0x364b   : > { %1363 = vmin.xlane.f32.xlu0 %v1362_v54  ;;  %v1367_v6 = vshll.u32 %v1366_v2, 16 }
0x3661   : > { %1371 = vperm.xlu0 %1816, %v2612_v23  }
0x3665   : > { %1819 = vset.pattern.permute.xlu0 %v2090_v39 }
0x36d8   : > { %v1364_v56 = vpop.xlane.xlu0 %1363 }
0x36d9   : > { %v1365_v21 = vcvt.f32.s32 %v1364_v56 }
0x36db   : > { %v1368_v35 = vadd.s32 %v1367_v6, %v1365_v21 }
0x36dd   : > { %vm1369_vm15 = vcmp.eq.s32.totalorder %v2378_v3, %v1368_v35 }
0x36de   : > { %v1375_v49 = vsel %vm1369_vm15, -inf, %v1350_v36 }
0x36df   : > { %1376 = vmax.xlane.f32.xlu1 %v1375_v49 }
0x36e0   : > { %v1372_v63 = vpop.permute.xlu0 %1371 }
0x36e1   : > { %v1374_v57 = vsel %vm1369_vm15, %v1372_v63, %v1349_v42 }
0x376c   : > { %v1377_v15 = vpop.xlane.xlu1 %1376 }
0x376d   : > { %vm1378_vm13 = vcmp.eq.f32.partialorder %v1375_v49, %v1377_v15 }
0x376e   : > { %v1379_v31 = vsel %vm1378_vm13, %v2378_v3, 1073741824 }
0x376f   : > { %v1381_v46 = vshra.s32 %v1379_v31, 16  ;;  %v1380_v32 = vand.u32 65535, %v1379_v31 }
0x3771   : > { %v1383_v61 = vcvt.s32.f32 %v1381_v46  ;;  %v1382_v58 = vcvt.s32.f32 %v1380_v32 }
0x3773   : > { %1384 = vmin.xlane.f32.xlu1 %v1383_v61 }
0x3800   : > { %v1385_v48 = vpop.xlane.xlu1 %1384 }
0x3801   : > { %vm1386_vm0 = vcmp.eq.f32.partialorder %v1383_v61, %v1385_v48  ;;  %v1391_v20 = vcvt.f32.s32 %v1385_v48 }
0x3802   : > { %v1387_v1 = vsel %vm1386_vm0, %v1382_v58, inf }
0x3803   : > { %1388 = vmin.xlane.f32.xlu1 %v1387_v1  ;;  %v1392_v59 = vshll.u32 %v1391_v20, 16 }
0x3814   : > { %1396 = vperm.xlu1 %1817, %v2612_v23  }
0x3818   : > { %1818 = vset.pattern.permute.xlu1 %v2089_v13 }
0x3890   : > { %v1389_v38 = vpop.xlane.xlu1 %1388 }
0x3891   : > { %v1390_v55 = vcvt.f32.s32 %v1389_v38 }
0x3893   : > { %v1393_v10 = vadd.s32 %v1392_v59, %v1390_v55 }
0x3894   : > { %v1397_v29 = vpop.permute.xlu1 %1396 }
0x3895   : > { %vm1394_vm3 = vcmp.eq.s32.totalorder %v2378_v3, %v1393_v10 }
0x3896   : > { %v1399_v60 = vsel %vm1394_vm3, %v1397_v29, %v1374_v57  ;;  %v1400_v50 = vsel %vm1394_vm3, -inf, %v1375_v49 }
0x3897   : > { %1401 = vmax.xlane.f32.xlu1 %v1400_v50 }
0x3924   : > { %v1402_v62 = vpop.xlane.xlu1 %1401 }
0x3925   : > { %vm1403_vm6 = vcmp.eq.f32.partialorder %v1400_v50, %v1402_v62 }
0x3926   : > { %v1404_v0 = vsel %vm1403_vm6, %v2378_v3, 1073741824 }
0x3927   : > { %v1406_v8 = vshra.s32 %v1404_v0, 16  ;;  %v1405_v16 = vand.u32 65535, %v1404_v0 }
0x3929   : > { %v1408_v12 = vcvt.s32.f32 %v1406_v8  ;;  %v1407_v17 = vcvt.s32.f32 %v1405_v16 }
0x392b   : > { %1409 = vmin.xlane.f32.xlu0 %v1408_v12 }
0x39b8   : > { %v1410_v19 = vpop.xlane.xlu0 %1409 }
0x39b9   : > { %vm1411_vm9 = vcmp.eq.f32.partialorder %v1408_v12, %v1410_v19  ;;  %v1416_v24 = vcvt.f32.s32 %v1410_v19 }
0x39ba   : > { %v1412_v22 = vsel %vm1411_vm9, %v1407_v17, inf }
0x39bb   : > { %1413 = vmin.xlane.f32.xlu1 %v1412_v22  ;;  %v1417_v25 = vshll.u32 %v1416_v24, 16 }
0x39cc   : > { %1421 = vperm.xlu1 %1818, %v2612_v23  }
0x3a48   : > { %v1414_v5 = vpop.xlane.xlu1 %1413 }
0x3a49   : > { %v1415_v28 = vcvt.f32.s32 %v1414_v5 }
0x3a4b   : > { %v1418_v11 = vadd.s32 %v1417_v25, %v1415_v28 }
0x3a4c   : > { %v1422_v30 = vpop.permute.xlu1 %1421 }
0x3a4d   : > { %vm1419_vm14 = vcmp.eq.s32.totalorder %v2378_v3, %v1418_v11 }
0x3a4e   : > { %v1424_v18 = vsel %vm1419_vm14, %v1422_v30, %v1399_v60  ;;  %v1425_v33 = vsel %vm1419_vm14, -inf, %v1400_v50 }
0x3a4f   : > { %1426 = vmax.xlane.f32.xlu0 %v1425_v33 }
0x3adc   : > { %v1427_v34 = vpop.xlane.xlu0 %1426 }
0x3add   : > { %vm1428_vm2 = vcmp.eq.f32.partialorder %v1425_v33, %v1427_v34 }
0x3ade   : > { %v1429_v36 = vsel %vm1428_vm2, %v2378_v3, 1073741824 }
0x3adf   : > { %v1431_v37 = vshra.s32 %v1429_v36, 16  ;;  %v1430_v45 = vand.u32 65535, %v1429_v36 }
0x3ae1   : > { %v1433_v26 = vcvt.s32.f32 %v1431_v37  ;;  %v1432_v40 = vcvt.s32.f32 %v1430_v45 }
0x3ae3   : > { %1434 = vmin.xlane.f32.xlu0 %v1433_v26 }
0x3b70   : > { %v1435_v41 = vpop.xlane.xlu0 %1434 }
0x3b71   : > { %vm1436_vm7 = vcmp.eq.f32.partialorder %v1433_v26, %v1435_v41  ;;  %v1441_v7 = vcvt.f32.s32 %v1435_v41 }
0x3b72   : > { %v1437_v4 = vsel %vm1436_vm7, %v1432_v40, inf }
0x3b73   : > { %1438 = vmin.xlane.f32.xlu0 %v1437_v4  ;;  %v1442_v43 = vshll.u32 %v1441_v7, 16 }
0x3b89   : > { %1446 = vperm.xlu0 %1819, %v2612_v23  }
0x3c00   : > { %v1439_v42 = vpop.xlane.xlu0 %1438 }
0x3c01   : > { %v1440_v27 = vcvt.f32.s32 %v1439_v42 }
0x3c03   : > { %v1443_v44 = vadd.s32 %v1442_v43, %v1440_v27 }
0x3c05   : > { %vm1444_vm12 = vcmp.eq.s32.totalorder %v2378_v3, %v1443_v44 }
0x3c08   : > { %v1447_v47 = vpop.permute.xlu0 %1446 }
0x3c09   : > { %v1449_v51 = vsel %vm1444_vm12, %v1447_v47, %v1424_v18 }
0x3c0a   : > { %v1450_v53 = vmul.f32 %v1820_v52, %v1449_v51 }
0x3c0c   : > { %1451 = vst [vmem:[%s361_s12] sm:$0xff] %v1450_v53 }
0x3c0d   : > { %1982 = shalt.err (!%p1979_p6)
}
0x3c0e   : > { %s1983_s23 = scalar_lea.hbm %s2757_s11, 128  ;;  %s1987_s26 = scalar_lea.hbm %s2806_s5, 256 }
0x3c0f   : > { %p1984_p3 = scmp.ne.s32.totalorder %s2757_s11, %s1983_s23  ;;  %p1988_p0 = scmp.lt.u32.totalorder %s2757_s11, %s2806_s5 }
0x3c10   : > { %p1989_p10 = scmp.lt.u32.totalorder %s1987_s26, %s1983_s23  ;;  %p1991_p12 = scmp.lt.u32.totalorder %s1983_s23, %s2757_s11 }
0x3c11   : > { %p1985_p7 = pnand %p1984_p3, %p2861_p5 }
0x3c12   : > { %p1990_p9 = por %p1989_p10, %p1988_p0 }
0x3c13   : > { %p1986_p13 = pneg %p1985_p7 }
0x3c14   : > { %p1992_p2 = por %p1991_p12, %p1990_p9 }
0x3c16   : > { %p1993_p11 = pnand %p1992_p2, %p1986_p13 }
0x3c18   : > { %1996 = shalt.err (!%p1993_p11)
}
0x3c19   : > { %1691 = dma.vmem_to_hbm [thread:$0]  (%p2861_p5), %s2759_s15, 128, %s2757_s11, %s1453_s22  }
0x3c1a PF: > { %s1478_s10 = sand.u32 1, %s2035_s18   ;;  %p2862_p1 = scmp.ne.s32.totalorder %s2830_s25, 0 }
0x3c1b   : > { %p2863_p8 = scmp.ge.s32.totalorder %s2047_s21, 2  ;;  %s1479_s2 = scalar_lea.sflag [#allocation4], %s1478_s10 }
0x3c1d   : > { %p1711_p4 = pnand %p2863_p8, %p2862_p1 }
0x3c1f   : > { %2030 = dma.done.wait (!%p1711_p4), %s1479_s2, 128  }
0x3c20   : > { %2032 = vsyncadd (!%p1711_p4), %s1479_s2, 4294967168  ;;  %s2864_s24 = sld [smem:[#allocation17_spill]]  ;;  %p24_p6 = scmp.ge.s32.totalorder %s2178_s30, 4  }
0x3c21   : > { %s2865_s18 = smov %s2039_s19  ;;  %s2866_s19 = smov %s2043_s20 }
0x3c22   : > { %s2868_s21 = smov %s2178_s30  ;;  %26 = sbr.rel (!%p24_p6) target bundleno = 12 (0xc), region = 126 }
0x3c26   : > { %s2867_s20 = smov %s2864_s24 }
0x3c29   :  { %1484 = vsyncpa [#allocation3], 1 }
0x3c2a   :  { %1486 = vsyncpa [#allocation3 + $0x1], 1 }
0x3c2b   :  { %1487 = vsyncpa [#allocation6], 1 }
0x3c2c   :  { %1489 = vsyncpa [#allocation6 + $0x1], 1 }
0x3c2d   :  { %1490 = vsyncpa [#allocation9], 1 }
0x3c2e   :  { %1492 = vsyncpa [#allocation9 + $0x1], 1 }
0x3c2f   :  { %1493 = vsyncpa [#allocation4], 1 }
0x3c30   :  { %1495 = vsyncpa [#allocation4 + $0x1], 1 }

// kernel: tpu_custom_call.1
= control target key start
LH: loop header
LB: loop body
LE: loop exit
PB: predicated region body
PF: predicated region fallthrough
CT: control target
= control target key end

     0   :  { %s2801_s0 = inlined_call_operand.hbm [shape: f32[16,128], index: 0, kind: input, shape index: {}]   ;;  %s2802_s1 = inlined_call_operand.hbm [shape: f32[16,16], index: 1, kind: input, shape index: {}]   ;;  %s2803_s2 = inlined_call_operand.hbm [shape: f32[16,128], index: 2, kind: input, shape index: {}]   ;;  %s2804_s3 = inlined_call_operand.hbm [shape: f32[16,16], index: 3, kind: input, shape index: {}]   ;;  %s2805_s4 = inlined_call_operand.hbm [shape: f32[16,32], index: 4, kind: input, shape index: {}]   ;;  %s2806_s5 = inlined_call_operand.hbm [shape: f32[16,128], index: 5, kind: output, shape index: {}]  }
   0x1   :  { %2827 = sst [smem:[#allocation18_spill]] %s2803_s2 }
   0x2   :  { %2828 = sst [smem:[#allocation19_spill]] %s2804_s3 }
   0x3   :  { %10 = vsyncpa [#allocation3], 0 }
   0x4   :  { %12 = vsyncpa [#allocation3 + $0x1], 0 }
   0x5   :  { %13 = vsyncpa [#allocation6], 0 }
   0x6   :  { %15 = vsyncpa [#allocation6 + $0x1], 0 }
   0x7   :  { %16 = vsyncpa [#allocation9], 0 }
   0x8   :  { %18 = vsyncpa [#allocation9 + $0x1], 0 }
   0x9   :  { %19 = vsyncpa [#allocation4], 0 }
   0xa   :  { %21 = vsyncpa [#allocation4 + $0x1], 0  ;;  %s2122_s18 = smov 0   ;;  %s2124_s19 = smov 0  }
   0xb   :  { %s2126_s20 = smov 0   ;;  %s2128_s21 = smov 0  }
   0xc LB: > { %s2143_s22 = sadd.s32 4294967295, %s2047_s21   ;;  %s1611_s23 = sadd.s32 4294967294, %s2047_s21   ;;  %s2047_s21 = sphi %s2128_s21, %s2868_s21   ;;  %s2043_s20 = sphi %s2126_s20, %s2867_s20   ;;  %s2039_s19 = sphi %s2124_s19, %s2866_s19   ;;  %s2035_s18 = sphi %s2122_s18, %s2865_s18  }
   0xd   : > { %p47_p0 = scmp.ne.s32.totalorder %s2039_s19, %s2035_s18  ;;  %p2807_p1 = scmp.eq.s32.totalorder %s2143_s22, 0 }
   0xe   : > { %p176_p3 = scmp.eq.s32.totalorder %s1611_s23, 1  ;;  %p1612_p5 = scmp.ge.s32.totalorder %s2047_s21, 1 }
   0xf   : > { %p2152_p4 = por %p2807_p1, %p47_p0  ;;  %p183_p7 = scmp.lt.s32.totalorder %s2047_s21, 3 }
  0x10   : > { %p2157_p6 = por %p176_p3, %p47_p0  ;;  %s2049_s27 = smov [#allocation7]  }
  0x11   : > { %s2829_s24 = scalar_select %p2152_p4, 1, 0 }
  0x12   : > { %s2830_s25 = scalar_select %p2157_p6, 1, 0 }
  0x13   : > { %p2162_p8 = pnand %p1612_p5, %p183_p7  ;;  %s195_s28 = sshll.u32 %s2049_s27, 4  ;;  %s2166_s28 = int_to_ptr.vmem [resolvable:$true] %s195_s28 }
  0x14   : > { %s2178_s30 = sadd.s32 1, %s2047_s21   ;;  %s34_s6 = sadd.s32 1, %s2043_s20 }
  0x15   : > { %s2831_s26 = scalar_select %p2162_p8, 1, 0 }
  0x16   : > { %p1693_p9 = pneg %p2162_p8  ;;  %s31_s7 = ssub.s32 %s2047_s21, %s2178_s30 }
  0x17   : > { %s2833_s2 = sld [smem:[#allocation18_spill]] }
  0x18   : > { %p2173_p11 = pnand %p1693_p9, %p2807_p1 }
  0x1a   : > { %p1823_p13 = pneg %p2173_p11 }
  0x1d   : > { %s1821_s10 = scalar_lea.hbm %s2833_s2, 256 }
  0x1e   : > { %p1822_p12 = scmp.ne.s32.totalorder %s2833_s2, %s1821_s10  ;;  %p1828_p5 = scmp.lt.u32.totalorder %s1821_s10, %s2833_s2 }
  0x20   : > { %p1824_p0 = pnand %p1823_p13, %p1822_p12 }
  0x22   : > { %p1825_p3 = pneg %p1824_p0 }
  0x24   : > { %p1830_p7 = pnand %p1828_p5, %p1825_p3 }
  0x26   : > { %1833 = shalt.err (!%p1830_p7)
}
  0x27   : > { %s1834_s15 = scalar_lea.vmem %s2166_s28, 256  ;;  %p1842_p2 = scmp.lt.s32.totalorder %s2166_s28, %s2166_s28 }
  0x28   : > { %p1835_p9 = scmp.ne.s32.totalorder %s2166_s28, %s1834_s15  ;;  %p1843_p6 = scmp.lt.s32.totalorder %s1834_s15, %s1834_s15 }
  0x2a   : > { %p1837_p10 = pnand %p1835_p9, %p1823_p13  ;;  %p1844_p4 = por %p1843_p6, %p1842_p2 }
  0x2c   : > { %p1838_p1 = pneg %p1837_p10 }
  0x2e   : > { %p1845_p8 = pnand %p1844_p4, %p1838_p1 }
  0x30   : > { %1848 = shalt.err (!%p1845_p8)
}
  0x31   : > { %s2050_s16 = smov 128   ;;  %s2051_s17 = smov 8  }
  0x32   : > { %1696 = dma.hbm_to_vmem [thread:$0]  (!%p2173_p11), %s2833_s2, 256, %s2166_s28, [#allocation6], %s2050_s16, %s2050_s16, %s2051_s17  }
  0x33   : > { %p32_p1 = scmp.eq.s32.totalorder %s31_s7, 0  ;;  %p41_p2 = scmp.ne.s32.totalorder %s2043_s20, %s2039_s19 }
  0x34   : > { %p42_p4 = scmp.eq.s32.totalorder %s2047_s21, 0  ;;  %p1715_p6 = scmp.lt.s32.totalorder %s2047_s21, 2 }
  0x35   : > { %s2209_s8 = scalar_select %p32_p1, %s2043_s20, %s34_s6  }
  0x36   : > { %p43_p8 = por %p42_p4, %p41_p2  ;;  %p2835_p10 = scmp.eq.s32.totalorder %s2143_s22, 1 }
  0x37   : > { %2834 = sst [smem:[#allocation17_spill]] %s2209_s8  ;;  %s2810_s10 = sand.u32 1, %s2043_s20  }
  0x38   : > { %p2213_p12 = por %p2835_p10, %p41_p2  ;;  %s2219_s11 = sshll.u32 %s2047_s21, 7 }
  0x39   : > { %s2223_s29 = sshll.u32 %s2810_s10, 3  ;;  %p2225_p11 = pnand %p1715_p6, %p43_p8 }
  0x3a   : > { %s2836_s9 = scalar_select %p2213_p12, 1, 0 }
  0x3b   : > { %s2837_s28 = scalar_select %p2225_p11, 1, 0 }
  0x3c   : > { %s2811_s6 = sand.u32 1, %s2047_s21   ;;  %s2838_s3 = sld [smem:[#allocation19_spill]] }
  0x3d   : > { %s249_s14 = scalar_lea.vmem [#allocation8], %s2223_s29  ;;  %s2241_s16 = scalar_lea.sflag [#allocation9], %s2811_s6 }
  0x3e   : > { %s256_s15 = sshll.u32 %s249_s14, 4  ;;  %p2247_p0 = pneg %p2225_p11  ;;  %s2237_s15 = int_to_ptr.vmem [resolvable:$true] %s256_s15 }
  0x42   : > { %s2234_s13 = scalar_lea.hbm %s2838_s3, %s2219_s11  ;;  %s1854_s12 = scalar_lea.hbm %s2838_s3, 256 }
  0x43   : > { %s1849_s17 = scalar_lea.hbm %s2234_s13, 128  ;;  %p1855_p7 = scmp.lt.u32.totalorder %s2234_s13, %s2838_s3 }
  0x44   : > { %p1850_p13 = scmp.ne.s32.totalorder %s2234_s13, %s1849_s17  ;;  %p1856_p9 = scmp.lt.u32.totalorder %s1854_s12, %s1849_s17 }
  0x45   : > { %p1858_p2 = scmp.lt.u32.totalorder %s1849_s17, %s2234_s13 }
  0x46   : > { %p1852_p3 = pnand %p2247_p0, %p1850_p13  ;;  %p1857_p1 = por %p1856_p9, %p1855_p7 }
  0x48   : > { %p1853_p5 = pneg %p1852_p3  ;;  %p1859_p4 = por %p1858_p2, %p1857_p1 }
  0x4a   : > { %p1860_p6 = pnand %p1859_p4, %p1853_p5 }
  0x4c   : > { %1863 = shalt.err (!%p1860_p6)
}
  0x4d   : > { %s1864_s6 = scalar_lea.vmem %s2237_s15, 128  ;;  %s2052_s27 = smov [#allocation8]  }
  0x4e   : > { %p1865_p8 = scmp.ne.s32.totalorder %s2237_s15, %s1864_s6  ;;  %s1869_s7 = sshll.u32 %s2052_s27, 4  ;;  %s1870_s7 = int_to_ptr.vmem [resolvable:$false] %s1869_s7 }
  0x4f   : > { %s1871_s10 = scalar_lea.vmem %s1870_s7, 256  ;;  %p1872_p3 = scmp.lt.s32.totalorder %s2237_s15, %s1870_s7 }
  0x50   : > { %p1867_p10 = pnand %p1865_p8, %p2247_p0  ;;  %p1873_p12 = scmp.lt.s32.totalorder %s1871_s10, %s1864_s6 }
  0x52   : > { %p1868_p13 = pneg %p1867_p10  ;;  %p1874_p7 = por %p1873_p12, %p1872_p3 }
  0x54   : > { %p1875_p9 = pnand %p1874_p7, %p1868_p13 }
  0x56   : > { %1878 = shalt.err (!%p1875_p9)
}
  0x57   : > { %1706 = dma.hbm_to_vmem [thread:$0]  (!%p2225_p11), %s2234_s13, 128, %s2237_s15, %s2241_s16  }
  0x58   : > { %s2275_s14 = scalar_lea.hbm %s2801_s0, %s2219_s11  ;;  %s213_s6 = scalar_lea.vmem [#allocation2], %s2223_s29 }
  0x59   : > { %s220_s27 = sshll.u32 %s213_s6, 4  ;;  %s2840_s7 = sand.u32 1, %s2043_s20   ;;  %s221_s27 = int_to_ptr.vmem [resolvable:$true] %s220_s27 }
  0x5a   : > { %s210_s10 = scalar_lea.sflag [#allocation3], %s2840_s7  ;;  %s1879_s2 = scalar_lea.hbm %s2275_s14, 128 }
  0x5b   : > { %p1880_p12 = scmp.ne.s32.totalorder %s2275_s14, %s1879_s2  ;;  %s1884_s17 = scalar_lea.hbm %s2801_s0, 256 }
  0x5c   : > { %p1885_p2 = scmp.lt.u32.totalorder %s2275_s14, %s2801_s0  ;;  %p1886_p4 = scmp.lt.u32.totalorder %s1884_s17, %s1879_s2 }
  0x5d   : > { %p1882_p5 = pnand %p1880_p12, %p2247_p0  ;;  %p1888_p8 = scmp.lt.u32.totalorder %s1879_s2, %s2275_s14 }
  0x5e   : > { %p1887_p6 = por %p1886_p4, %p1885_p2 }
  0x5f   : > { %p1883_p1 = pneg %p1882_p5 }
  0x60   : > { %p1889_p10 = por %p1888_p8, %p1887_p6 }
  0x62   : > { %p1890_p13 = pnand %p1889_p10, %p1883_p1 }
  0x64   : > { %1893 = shalt.err (!%p1890_p13)
}
  0x65   : > { %s1894_s6 = scalar_lea.vmem %s221_s27, 128  ;;  %s2053_s7 = smov [#allocation2]  }
  0x66   : > { %p1895_p3 = scmp.ne.s32.totalorder %s221_s27, %s1894_s6  ;;  %s1899_s8 = sshll.u32 %s2053_s7, 4  ;;  %s1900_s8 = int_to_ptr.vmem [resolvable:$false] %s1899_s8 }
  0x67   : > { %s1901_s13 = scalar_lea.vmem %s1900_s8, 256  ;;  %p1902_p12 = scmp.lt.s32.totalorder %s221_s27, %s1900_s8 }
  0x68   : > { %p1897_p7 = pnand %p1895_p3, %p2247_p0  ;;  %p1903_p5 = scmp.lt.s32.totalorder %s1901_s13, %s1894_s6 }
  0x6a   : > { %p1898_p9 = pneg %p1897_p7  ;;  %p1904_p11 = por %p1903_p5, %p1902_p12 }
  0x6c   : > { %p1905_p2 = pnand %p1904_p11, %p1898_p9 }
  0x6e   : > { %1908 = shalt.err (!%p1905_p2)
}
  0x6f   : > { %p2841_p4 = scmp.ne.s32.totalorder %s2837_s28, 0  ;;  %s2301_s15 = scalar_lea.hbm %s2802_s1, %s2219_s11 }
  0x70   : > { %s231_s8 = scalar_lea.vmem [#allocation5], %s2223_s29  ;;  %s2842_s12 = sand.u32 1, %s2047_s21  }
  0x71   : > { %1700 = dma.hbm_to_vmem [thread:$0]  (!%p2841_p4), %s2275_s14, 128, %s221_s27, %s210_s10  }
  0x72   : > { %s238_s17 = sshll.u32 %s231_s8, 4  ;;  %s228_s6 = scalar_lea.sflag [#allocation6], %s2842_s12  ;;  %s239_s17 = int_to_ptr.vmem [resolvable:$true] %s238_s17 }
  0x73   : > { %s1909_s7 = scalar_lea.hbm %s2301_s15, 128  ;;  %s1914_s10 = scalar_lea.hbm %s2802_s1, 256 }
  0x74   : > { %p1910_p11 = scmp.ne.s32.totalorder %s2301_s15, %s1909_s7  ;;  %p1915_p8 = scmp.lt.u32.totalorder %s2301_s15, %s2802_s1 }
  0x75   : > { %p1916_p10 = scmp.lt.u32.totalorder %s1914_s10, %s1909_s7  ;;  %p1918_p3 = scmp.lt.u32.totalorder %s1909_s7, %s2301_s15 }
  0x76   : > { %p1912_p1 = pnand %p1910_p11, %p2247_p0 }
  0x77   : > { %p1917_p13 = por %p1916_p10, %p1915_p8 }
  0x78   : > { %p1913_p6 = pneg %p1912_p1 }
  0x79   : > { %p1919_p7 = por %p1918_p3, %p1917_p13 }
  0x7b   : > { %p1920_p9 = pnand %p1919_p7, %p1913_p6 }
  0x7d   : > { %1923 = shalt.err (!%p1920_p9)
}
  0x7e   : > { %s1924_s3 = scalar_lea.vmem %s239_s17, 128  ;;  %s2054_s8 = smov [#allocation5]  }
  0x7f   : > { %p1925_p12 = scmp.ne.s32.totalorder %s239_s17, %s1924_s3  ;;  %s1929_s12 = sshll.u32 %s2054_s8, 4  ;;  %s1930_s12 = int_to_ptr.vmem [resolvable:$false] %s1929_s12 }
  0x80   : > { %s1931_s14 = scalar_lea.vmem %s1930_s12, 256  ;;  %p1932_p11 = scmp.lt.s32.totalorder %s239_s17, %s1930_s12 }
  0x81   : > { %p1927_p5 = pnand %p1925_p12, %p2247_p0  ;;  %p1933_p1 = scmp.lt.s32.totalorder %s1931_s14, %s1924_s3 }
  0x83   : > { %p1928_p2 = pneg %p1927_p5  ;;  %p1934_p4 = por %p1933_p1, %p1932_p11 }
  0x85   : > { %p1935_p8 = pnand %p1934_p4, %p1928_p2 }
  0x87   : > { %1938 = shalt.err (!%p1935_p8)
}
  0x88   : > { %p2843_p10 = scmp.ne.s32.totalorder %s2837_s28, 0  ;;  %s2327_s10 = scalar_lea.hbm %s2805_s4, %s2219_s11 }
  0x89   : > { %s267_s13 = scalar_lea.vmem [#allocation10], %s2223_s29  ;;  %s1939_s3 = scalar_lea.hbm %s2327_s10, 128 }
  0x8a   : > { %1703 = dma.hbm_to_vmem [thread:$0]  (!%p2843_p10), %s2301_s15, 128, %s239_s17, %s228_s6  }
  0x8b   : > { %s274_s2 = sshll.u32 %s267_s13, 4  ;;  %p1940_p4 = scmp.ne.s32.totalorder %s2327_s10, %s1939_s3  ;;  %s275_s2 = int_to_ptr.vmem [resolvable:$true] %s274_s2 }
  0x8c   : > { %s1944_s15 = scalar_lea.hbm %s2805_s4, 256  ;;  %p1945_p3 = scmp.lt.u32.totalorder %s2327_s10, %s2805_s4 }
  0x8d   : > { %p1942_p6 = pnand %p1940_p4, %p2247_p0  ;;  %p1946_p7 = scmp.lt.u32.totalorder %s1944_s15, %s1939_s3 }
  0x8e   : > { %p1948_p12 = scmp.lt.u32.totalorder %s1939_s3, %s2327_s10 }
  0x8f   : > { %p1943_p13 = pneg %p1942_p6  ;;  %p1947_p9 = por %p1946_p7, %p1945_p3 }
  0x91   : > { %p1949_p5 = por %p1948_p12, %p1947_p9 }
  0x93   : > { %p1950_p2 = pnand %p1949_p5, %p1943_p13 }
  0x95   : > { %1953 = shalt.err (!%p1950_p2)
}
  0x96   : > { %s1954_s11 = scalar_lea.vmem %s275_s2, 128  ;;  %s2055_s29 = smov [#allocation10]  }
  0x97   : > { %p1955_p11 = scmp.ne.s32.totalorder %s275_s2, %s1954_s11  ;;  %s1959_s14 = sshll.u32 %s2055_s29, 4  ;;  %s1960_s14 = int_to_ptr.vmem [resolvable:$false] %s1959_s14 }
  0x98   : > { %s1961_s7 = scalar_lea.vmem %s1960_s14, 256  ;;  %p1962_p4 = scmp.lt.s32.totalorder %s275_s2, %s1960_s14 }
  0x99   : > { %p1957_p1 = pnand %p1955_p11, %p2247_p0  ;;  %p1963_p6 = scmp.lt.s32.totalorder %s1961_s7, %s1954_s11 }
  0x9b   : > { %p1958_p8 = pneg %p1957_p1  ;;  %p1964_p10 = por %p1963_p6, %p1962_p4 }
  0x9d   : > { %p1965_p3 = pnand %p1964_p10, %p1958_p8 }
  0x9f   : > { %1968 = shalt.err (!%p1965_p3)
}
  0xa0   : > { %p2844_p7 = scmp.ne.s32.totalorder %s2837_s28, 0  ;;  %p2845_p13 = scmp.ne.s32.totalorder %s2831_s26, 0 }
  0xa1   : > { %s2351_s23 = sand.u32 (!%p2845_p13), 1, %s2039_s19   ;;  %p2846_p0 = scmp.ne.s32.totalorder (!%p2845_p13), %s2829_s24, 0 }
  0xa2   : > { %1709 = dma.hbm_to_vmem [thread:$0]  (!%p2844_p7), %s2327_s10, 128, %s275_s2, %s2241_s16  }
  0xa3   : > { %283 = sbr.rel (%p2845_p13) target bundleno = 15386 (0x3c1a), region = 40  ;;  %s2354_s27 = sshll.u32 (!%p2845_p13), %s2351_s23, 3 }
  0xa4   : > { %s286_s13 = scalar_lea.sflag (!%p2845_p13), [#allocation3], %s2351_s23  ;;  %s289_s3 = scalar_lea.vmem (!%p2845_p13), [#allocation2], %s2354_s27 }
  0xaa   : > { %2014 = dma.done.wait (%p2846_p0), %s286_s13, 128  }
  0xab   : > { %2016 = vsyncadd (%p2846_p0), %s286_s13, 4294967168  ;;  %s294_s26 = sand.u32 1, %s2143_s22   ;;  %s298_s16 = scalar_lea.vmem [#allocation5], %s2354_s27 }
  0xac   : > { %s295_s28 = scalar_lea.sflag [#allocation6], %s294_s26 }
  0xad   : > { %2018 = dma.done.wait (%p2846_p0), %s295_s28, 128  }
  0xae   : > { %2020 = vsyncadd (%p2846_p0), %s295_s28, 4294967168  ;;  %p2847_p10 = scmp.eq.s32.totalorder %s2143_s22, 0 }
  0xb0   : > { %2022 = dma.done.wait (%p2847_p10), [#allocation6], 256   ;;  %p2848_p9 = pmov %p2847_p10 }
  0xb1   : > { %s308_s10 = scalar_lea.sflag [#allocation9], %s294_s26  ;;  %s311_s2 = scalar_lea.vmem [#allocation8], %s2354_s27 }
  0xb2   : > { %2024 = vsyncadd (%p2848_p9), [#allocation6], 4294967040 }
  0xb3   : > { %2026 = dma.done.wait (%p2846_p0), %s308_s10, 256  }
  0xb4   : > { %2028 = vsyncadd (%p2846_p0), %s308_s10, 4294967040  ;;  %vm367_vm0 = vcmask 130048   ;;  %v363_v0 = vld [vmem:[%s298_s16] sm:$0xff]  ;;  %v441_v2 = vlaneseq  ;;  %v364_v13 = vld [vmem:[#allocation7] sm:$0xff]  ;;  %v2056_v16 = vmov 0.0|0.0   ;;  %vm2057_vm3 = vmmov 0  }
  0xb5   : > { %v443_v1 = vsel %vm367_vm0, %v363_v0, -inf  ;;  %v365_v14 = vld [vmem:[#allocation7 + $0x8] sm:$0xff]  ;;  %1670 = vmatprep.subr.bf16.mxu0 %v2056_v16  ;;  %1673 = vmatprep.subr.bf16.mxu1 %v2056_v16  ;;  %v366_v17 = vld [vmem:[%s311_s2] sm:$0xff]  ;;  %v2058_v18 = vmov 0.0   ;;  %s320_s24 = scalar_lea.vmem [#allocation10], %s2354_s27  ;;  %s1637_s8 = sshll.u32 %s2143_s22, 7 }
  0xb6   : > { %444 = vmax.xlane.f32.xlu0 %v443_v1  ;;  %v2378_v3 = vand.u32 127, %v441_v2  ;;  %v1671_v15 = vpack.c.bf16 %v365_v14, %v364_v13  ;;  %1653 = vmatprep.mubr.msk.f32.mxu0 %vm2057_vm3, %v2058_v18  ;;  %v362_v47 = vld [vmem:[%s289_s3] sm:$0xff]  ;;  %s361_s12 = scalar_lea.vmem [#allocation11], %s2354_s27  ;;  %s2757_s11 = scalar_lea.hbm %s2806_s5, %s1637_s8 }
  0xb7   : > { %1660 = vmatprep.mubr.msk.f32.mxu1 %vm2057_vm3, %v2058_v18  ;;  %s1466_s15 = sshll.u32 %s361_s12, 4  ;;  %s1453_s22 = scalar_lea.sflag [#allocation4], %s2351_s23  ;;  %s2759_s15 = int_to_ptr.vmem [resolvable:$true] %s1466_s15 }
  0xb8   : > { %1672 = vmatpush3.bf16.msra.mxu0 %v1671_v15  ;;  %1675 = vmatpush3.bf16.msra.mxu1 %v1671_v15  ;;  %s1969_s29 = scalar_lea.vmem %s2759_s15, 128  ;;  %p2861_p5 = scmp.ne.s32.totalorder %s2836_s9, 0 }
  0xb9   : > { %1676 = vmatprep.subr.bf16.mxu0 %v2056_v16  ;;  %p1970_p12 = scmp.ne.s32.totalorder %s2759_s15, %s1969_s29  ;;  %s2091_s14 = smov [#allocation11]  }
  0xba   : > { %s1973_s7 = sshll.u32 %s2091_s14, 4  ;;  %s1974_s7 = int_to_ptr.vmem [resolvable:$false] %s1973_s7 }
  0xbb   : > { %1654 = vmatmul.mubr.msk.f32.vlgmr.msra.gmra.mrb[0].mxu0 %vm367_vm0, %v366_v17  ;;  %p1971_p2 = pnand %p1970_p12, %p2861_p5  ;;  %s1975_s27 = scalar_lea.vmem %s1974_s7, 256 }
  0xbc   : > { %1678 = vmatpush3.bf16.msra.mxu0 %v1671_v15  ;;  %1667 = vmatprep.mubr.msk.f32.mxu0 %vm2057_vm3, %v2058_v18  ;;  %p1976_p1 = scmp.lt.s32.totalorder %s2759_s15, %s1974_s7  ;;  %p1977_p8 = scmp.lt.s32.totalorder %s1975_s27, %s1969_s29 }
  0xbd   : > { %p1972_p11 = pneg %p1971_p2 }
  0xbe   : > { %p1978_p4 = por %p1977_p8, %p1976_p1 }
  0xc0   : > { %p1979_p6 = pnand %p1978_p4, %p1972_p11 }
 0x143   : > { %v445_v4 = vpop.xlane.xlu0 %444 }
 0x144   : > { %vm446_vm1 = vcmp.eq.f32.partialorder %v363_v0, %v445_v4 }
 0x145   : > { %v447_v5 = vsel %vm446_vm1, %v2378_v3, 1073741824 }
 0x146   : > { %v448_v6 = vsel %vm367_vm0, %v447_v5, 2147483647 }
 0x147   : > { %v450_v7 = vshra.s32 %v448_v6, 16  ;;  %v449_v9 = vand.u32 65535, %v448_v6 }
 0x149   : > { %v452_v8 = vcvt.s32.f32 %v450_v7  ;;  %v451_v11 = vcvt.s32.f32 %v449_v9 }
 0x14b   : > { %453 = vmin.xlane.f32.xlu0 %v452_v8 }
 0x18e   : > { %v437_v27 = vpop.f32.mrb[0].mxu0 }
 0x18f   : > { %v1655_v28 = vpop.f32.mrb[1].mxu0 }
 0x1d8   : > { %v454_v10 = vpop.xlane.xlu0 %453 }
 0x1d9   : > { %vm455_vm2 = vcmp.eq.f32.partialorder %v452_v8, %v454_v10  ;;  %v460_v19 = vcvt.f32.s32 %v454_v10 }
 0x1da   : > { %v456_v12 = vsel %vm455_vm2, %v451_v11, inf }
 0x1db   : > { %457 = vmin.xlane.f32.xlu1 %v456_v12  ;;  %v461_v21 = vshll.u32 %v460_v19, 16 }
 0x268   : > { %v458_v20 = vpop.xlane.xlu1 %457 }
 0x269   : > { %v459_v22 = vcvt.f32.s32 %v458_v20 }
 0x26b   : > { %v462_v23 = vadd.s32 %v461_v21, %v459_v22 }
 0x26d   : > { %vm463_vm4 = vcmp.eq.s32.totalorder %v2378_v3, %v462_v23 }
 0x26e   : > { %v1631_v24 = vsel %vm463_vm4, 1.0, %v2058_v18  ;;  %v543_v25 = vsel %vm463_vm4, -inf, %v363_v0 }
 0x26f   : > { %1661 = vmatmul.mubr.msk.f32.vlgmr.msra.gmra.mrb[0].mxu1 %vm367_vm0, %v1631_v24  ;;  %v544_v26 = vsel %vm367_vm0, %v543_v25, -inf }
 0x270   : > { %545 = vmax.xlane.f32.xlu1 %v544_v26 }
 0x2fd   : > { %v546_v29 = vpop.xlane.xlu1 %545 }
 0x2fe   : > { %vm547_vm5 = vcmp.eq.f32.partialorder %v543_v25, %v546_v29 }
 0x2ff   : > { %v548_v30 = vsel %vm547_vm5, %v2378_v3, 1073741824 }
 0x300   : > { %v549_v31 = vsel %vm367_vm0, %v548_v30, 2147483647 }
 0x301   : > { %v551_v32 = vshra.s32 %v549_v31, 16  ;;  %v550_v37 = vand.u32 65535, %v549_v31 }
 0x303   : > { %v553_v33 = vcvt.s32.f32 %v551_v32  ;;  %v552_v39 = vcvt.s32.f32 %v550_v37 }
 0x305   : > { %554 = vmin.xlane.f32.xlu0 %v553_v33 }
 0x342   : > { %v535_v34 = vpop.f32.mrb[0].mxu1 }
 0x343   : > { %v539_v35 = vsub.f32 %v535_v34, %v437_v27  ;;  %v1662_v36 = vpop.f32.mrb[1].mxu1 }
 0x345   : > { %v540_v49 = vmul.f32 %v539_v35, %v362_v47 }
 0x347   : > { %v541_v53 = vand.u32 2147483647, %v540_v49 }
 0x392   : > { %v555_v38 = vpop.xlane.xlu0 %554 }
 0x393   : > { %vm556_vm6 = vcmp.eq.f32.partialorder %v553_v33, %v555_v38  ;;  %v561_v41 = vcvt.f32.s32 %v555_v38 }
 0x394   : > { %v557_v40 = vsel %vm556_vm6, %v552_v39, inf }
 0x395   : > { %558 = vmin.xlane.f32.xlu1 %v557_v40  ;;  %v562_v43 = vshll.u32 %v561_v41, 16 }
 0x422   : > { %v559_v42 = vpop.xlane.xlu1 %558 }
 0x423   : > { %v560_v44 = vcvt.f32.s32 %v559_v42 }
 0x425   : > { %v563_v45 = vadd.s32 %v562_v43, %v560_v44 }
 0x427   : > { %vm564_vm7 = vcmp.eq.s32.totalorder %v2378_v3, %v563_v45 }
 0x428   : > { %v1633_v46 = vsel %vm564_vm7, 1.0, %v2058_v18 }
 0x429   : > { %1668 = vmatmul.mubr.msk.f32.vlgmr.msra.gmra.mrb[2].mxu0 %vm367_vm0, %v1633_v46 }
 0x4fc   : > { %v636_v48 = vpop.f32.mrb[2].mxu0 }
 0x4fd   : > { %v640_v50 = vsub.f32 %v636_v48, %v437_v27  ;;  %v1669_v51 = vpop.f32.mrb[3].mxu0 }
 0x4ff   : > { %v641_v52 = vmul.f32 %v640_v50, %v362_v47 }
 0x501   : > { %v642_v54 = vand.u32 2147483647, %v641_v52 }
 0x503   : > { %v643_v55 = vadd.f32 %v642_v54, %v541_v53 }
 0x505   : > { %v645_v56 = vmul.f32 0.5, %v643_v55 }
 0x507   : > { %650 = vmax.xlane.f32.xlu0 %v645_v56 }
 0x594   : > { %v651_v57 = vpop.xlane.xlu0 %650 }
 0x595   : > { %vm652_vm8 = vcmp.eq.f32.partialorder %v645_v56, %v651_v57 }
 0x596   : > { %v653_v58 = vsel %vm652_vm8, %v2378_v3, 1073741824 }
 0x597   : > { %v655_v59 = vshra.s32 %v653_v58, 16  ;;  %v654_v61 = vand.u32 65535, %v653_v58 }
 0x599   : > { %v657_v60 = vcvt.s32.f32 %v655_v59  ;;  %v656_v63 = vcvt.s32.f32 %v654_v61 }
 0x59b   : > { %658 = vmin.xlane.f32.xlu1 %v657_v60 }
 0x628   : > { %v659_v62 = vpop.xlane.xlu1 %658 }
 0x629   : > { %vm660_vm9 = vcmp.eq.f32.partialorder %v657_v60, %v659_v62  ;;  %v665_v1 = vcvt.f32.s32 %v659_v62 }
 0x62a   : > { %v661_v0 = vsel %vm660_vm9, %v656_v63, inf }
 0x62b   : > { %662 = vmin.xlane.f32.xlu0 %v661_v0  ;;  %v666_v4 = vshll.u32 %v665_v1, 16 }
 0x6b8   : > { %v663_v2 = vpop.xlane.xlu0 %662 }
 0x6b9   : > { %v664_v5 = vcvt.f32.s32 %v663_v2 }
 0x6bb   : > { %v2398_v6 = vadd.s32 %v666_v4, %v664_v5 }
 0x6bd   : > { %vm668_vm10 = vcmp.eq.s32.totalorder %v2378_v3, %v2398_v6 }
 0x6be   : > { %v675_v7 = vsel %vm668_vm10, -inf, %v645_v56 }
 0x6bf   : > { %676 = vmax.xlane.f32.xlu1 %v675_v7 }
 0x74c   : > { %v677_v8 = vpop.xlane.xlu1 %676 }
 0x74d   : > { %vm678_vm11 = vcmp.eq.f32.partialorder %v675_v7, %v677_v8 }
 0x74e   : > { %v679_v9 = vsel %vm678_vm11, %v2378_v3, 1073741824 }
 0x74f   : > { %v681_v10 = vshra.s32 %v679_v9, 16  ;;  %v680_v12 = vand.u32 65535, %v679_v9 }
 0x751   : > { %v683_v11 = vcvt.s32.f32 %v681_v10  ;;  %v682_v14 = vcvt.s32.f32 %v680_v12 }
 0x753   : > { %684 = vmin.xlane.f32.xlu0 %v683_v11 }
 0x7e0   : > { %v685_v13 = vpop.xlane.xlu0 %684 }
 0x7e1   : > { %vm686_vm12 = vcmp.eq.f32.partialorder %v683_v11, %v685_v13  ;;  %v691_v16 = vcvt.f32.s32 %v685_v13 }
 0x7e2   : > { %v687_v15 = vsel %vm686_vm12, %v682_v14, inf }
 0x7e3   : > { %688 = vmin.xlane.f32.xlu1 %v687_v15  ;;  %v692_v19 = vshll.u32 %v691_v16, 16 }
 0x870   : > { %v689_v17 = vpop.xlane.xlu1 %688 }
 0x871   : > { %v690_v20 = vcvt.f32.s32 %v689_v17 }
 0x873   : > { %v2406_v21 = vadd.s32 %v692_v19, %v690_v20 }
 0x875   : > { %vm694_vm13 = vcmp.eq.s32.totalorder %v2378_v3, %v2406_v21 }
 0x876   : > { %v700_v22 = vsel %vm694_vm13, -inf, %v675_v7 }
 0x877   : > { %701 = vmax.xlane.f32.xlu0 %v700_v22 }
 0x904   : > { %v702_v23 = vpop.xlane.xlu0 %701 }
 0x905   : > { %vm703_vm14 = vcmp.eq.f32.partialorder %v700_v22, %v702_v23 }
 0x906   : > { %v704_v24 = vsel %vm703_vm14, %v2378_v3, 1073741824 }
 0x907   : > { %v706_v25 = vshra.s32 %v704_v24, 16  ;;  %v705_v27 = vand.u32 65535, %v704_v24 }
 0x909   : > { %v708_v26 = vcvt.s32.f32 %v706_v25  ;;  %v707_v29 = vcvt.s32.f32 %v705_v27 }
 0x90b   : > { %709 = vmin.xlane.f32.xlu1 %v708_v26 }
 0x998   : > { %v710_v28 = vpop.xlane.xlu1 %709 }
 0x999   : > { %vm711_vm15 = vcmp.eq.f32.partialorder %v708_v26, %v710_v28  ;;  %v716_v31 = vcvt.f32.s32 %v710_v28 }
 0x99a   : > { %v712_v30 = vsel %vm711_vm15, %v707_v29, inf }
 0x99b   : > { %713 = vmin.xlane.f32.xlu0 %v712_v30  ;;  %v717_v33 = vshll.u32 %v716_v31, 16 }
 0xa28   : > { %v714_v32 = vpop.xlane.xlu0 %713 }
 0xa29   : > { %v715_v34 = vcvt.f32.s32 %v714_v32 }
 0xa2b   : > { %v2414_v35 = vadd.s32 %v717_v33, %v715_v34 }
 0xa2d   : > { %vm719_vm0 = vcmp.eq.s32.totalorder %v2378_v3, %v2414_v35 }
 0xa2e   : > { %v725_v36 = vsel %vm719_vm0, -inf, %v700_v22 }
 0xa2f   : > { %726 = vmax.xlane.f32.xlu1 %v725_v36 }
 0xabc   : > { %v727_v37 = vpop.xlane.xlu1 %726 }
 0xabd   : > { %vm728_vm1 = vcmp.eq.f32.partialorder %v725_v36, %v727_v37 }
 0xabe   : > { %v729_v38 = vsel %vm728_vm1, %v2378_v3, 1073741824 }
 0xabf   : > { %v731_v39 = vshra.s32 %v729_v38, 16  ;;  %v730_v41 = vand.u32 65535, %v729_v38 }
 0xac1   : > { %v733_v40 = vcvt.s32.f32 %v731_v39  ;;  %v732_v43 = vcvt.s32.f32 %v730_v41 }
 0xac3   : > { %734 = vmin.xlane.f32.xlu0 %v733_v40 }
 0xb50   : > { %v735_v42 = vpop.xlane.xlu0 %734 }
 0xb51   : > { %vm736_vm2 = vcmp.eq.f32.partialorder %v733_v40, %v735_v42  ;;  %v741_v45 = vcvt.f32.s32 %v735_v42 }
 0xb52   : > { %v737_v44 = vsel %vm736_vm2, %v732_v43, inf }
 0xb53   : > { %738 = vmin.xlane.f32.xlu1 %v737_v44  ;;  %v742_v47 = vshll.u32 %v741_v45, 16 }
 0xbe0   : > { %v739_v46 = vpop.xlane.xlu1 %738 }
 0xbe1   : > { %v740_v48 = vcvt.f32.s32 %v739_v46 }
 0xbe3   : > { %v2422_v49 = vadd.s32 %v742_v47, %v740_v48 }
 0xbe5   : > { %vm744_vm3 = vcmp.eq.s32.totalorder %v2378_v3, %v2422_v49 }
 0xbe6   : > { %v750_v50 = vsel %vm744_vm3, -inf, %v725_v36 }
 0xbe7   : > { %751 = vmax.xlane.f32.xlu0 %v750_v50 }
 0xc74   : > { %v752_v51 = vpop.xlane.xlu0 %751 }
 0xc75   : > { %vm753_vm4 = vcmp.eq.f32.partialorder %v750_v50, %v752_v51 }
 0xc76   : > { %v754_v52 = vsel %vm753_vm4, %v2378_v3, 1073741824 }
 0xc77   : > { %v756_v53 = vshra.s32 %v754_v52, 16  ;;  %v755_v55 = vand.u32 65535, %v754_v52 }
 0xc79   : > { %v758_v54 = vcvt.s32.f32 %v756_v53  ;;  %v757_v57 = vcvt.s32.f32 %v755_v55 }
 0xc7b   : > { %759 = vmin.xlane.f32.xlu1 %v758_v54 }
 0xd08   : > { %v760_v56 = vpop.xlane.xlu1 %759 }
 0xd09   : > { %vm761_vm5 = vcmp.eq.f32.partialorder %v758_v54, %v760_v56  ;;  %v766_v59 = vcvt.f32.s32 %v760_v56 }
 0xd0a   : > { %v762_v58 = vsel %vm761_vm5, %v757_v57, inf }
 0xd0b   : > { %763 = vmin.xlane.f32.xlu0 %v762_v58  ;;  %v767_v61 = vshll.u32 %v766_v59, 16 }
 0xd98   : > { %v764_v60 = vpop.xlane.xlu0 %763 }
 0xd99   : > { %v765_v62 = vcvt.f32.s32 %v764_v60 }
 0xd9b   : > { %v2430_v63 = vadd.s32 %v767_v61, %v765_v62 }
 0xd9d   : > { %vm769_vm6 = vcmp.eq.s32.totalorder %v2378_v3, %v2430_v63 }
 0xd9e   : > { %v775_v0 = vsel %vm769_vm6, -inf, %v750_v50 }
 0xd9f   : > { %776 = vmax.xlane.f32.xlu1 %v775_v0 }
 0xe2c   : > { %v777_v1 = vpop.xlane.xlu1 %776 }
 0xe2d   : > { %vm778_vm7 = vcmp.eq.f32.partialorder %v775_v0, %v777_v1 }
 0xe2e   : > { %v779_v2 = vsel %vm778_vm7, %v2378_v3, 1073741824 }
 0xe2f   : > { %v781_v4 = vshra.s32 %v779_v2, 16  ;;  %v780_v7 = vand.u32 65535, %v779_v2 }
 0xe31   : > { %v783_v5 = vcvt.s32.f32 %v781_v4  ;;  %v782_v9 = vcvt.s32.f32 %v780_v7 }
 0xe33   : > { %784 = vmin.xlane.f32.xlu0 %v783_v5 }
 0xec0   : > { %v785_v8 = vpop.xlane.xlu0 %784 }
 0xec1   : > { %vm786_vm8 = vcmp.eq.f32.partialorder %v783_v5, %v785_v8  ;;  %v791_v11 = vcvt.f32.s32 %v785_v8 }
 0xec2   : > { %v787_v10 = vsel %vm786_vm8, %v782_v9, inf }
 0xec3   : > { %788 = vmin.xlane.f32.xlu1 %v787_v10  ;;  %v792_v13 = vshll.u32 %v791_v11, 16 }
 0xf50   : > { %v789_v12 = vpop.xlane.xlu1 %788 }
 0xf51   : > { %v790_v14 = vcvt.f32.s32 %v789_v12 }
 0xf53   : > { %v2438_v15 = vadd.s32 %v792_v13, %v790_v14 }
 0xf55   : > { %vm794_vm9 = vcmp.eq.s32.totalorder %v2378_v3, %v2438_v15 }
 0xf56   : > { %v800_v16 = vsel %vm794_vm9, -inf, %v775_v0 }
 0xf57   : > { %801 = vmax.xlane.f32.xlu0 %v800_v16 }
 0xfe4   : > { %v802_v17 = vpop.xlane.xlu0 %801 }
 0xfe5   : > { %vm803_vm11 = vcmp.eq.f32.partialorder %v800_v16, %v802_v17 }
 0xfe6   : > { %v804_v19 = vsel %vm803_vm11, %v2378_v3, 1073741824 }
 0xfe7   : > { %v806_v20 = vshra.s32 %v804_v19, 16  ;;  %v805_v23 = vand.u32 65535, %v804_v19 }
 0xfe9   : > { %v808_v22 = vcvt.s32.f32 %v806_v20  ;;  %v807_v25 = vcvt.s32.f32 %v805_v23 }
 0xfeb   : > { %809 = vmin.xlane.f32.xlu1 %v808_v22 }
0x1078   : > { %v810_v24 = vpop.xlane.xlu1 %809 }
0x1079   : > { %vm811_vm12 = vcmp.eq.f32.partialorder %v808_v22, %v810_v24  ;;  %v816_v27 = vcvt.f32.s32 %v810_v24 }
0x107a   : > { %v812_v26 = vsel %vm811_vm12, %v807_v25, inf }
0x107b   : > { %813 = vmin.xlane.f32.xlu0 %v812_v26  ;;  %v817_v29 = vshll.u32 %v816_v27, 16 }
0x1108   : > { %v814_v28 = vpop.xlane.xlu0 %813 }
0x1109   : > { %v815_v30 = vcvt.f32.s32 %v814_v28 }
0x110b   : > { %v2446_v31 = vadd.s32 %v817_v29, %v815_v30 }
0x110d   : > { %vm819_vm14 = vcmp.eq.s32.totalorder %v2378_v3, %v2446_v31 }
0x110e   : > { %v825_v32 = vsel %vm819_vm14, -inf, %v800_v16 }
0x110f   : > { %826 = vmax.xlane.f32.xlu1 %v825_v32 }
0x119c   : > { %v827_v33 = vpop.xlane.xlu1 %826 }
0x119d   : > { %vm828_vm15 = vcmp.eq.f32.partialorder %v825_v32, %v827_v33 }
0x119e   : > { %v829_v34 = vsel %vm828_vm15, %v2378_v3, 1073741824 }
0x119f   : > { %v831_v36 = vshra.s32 %v829_v34, 16  ;;  %v830_v38 = vand.u32 65535, %v829_v34 }
0x11a1   : > { %v833_v37 = vcvt.s32.f32 %v831_v36  ;;  %v832_v40 = vcvt.s32.f32 %v830_v38 }
0x11a3   : > { %834 = vmin.xlane.f32.xlu0 %v833_v37 }
0x1230   : > { %v835_v39 = vpop.xlane.xlu0 %834 }
0x1231   : > { %vm836_vm1 = vcmp.eq.f32.partialorder %v833_v37, %v835_v39  ;;  %v841_v42 = vcvt.f32.s32 %v835_v39 }
0x1232   : > { %v837_v41 = vsel %vm836_vm1, %v832_v40, inf }
0x1233   : > { %838 = vmin.xlane.f32.xlu1 %v837_v41  ;;  %v842_v44 = vshll.u32 %v841_v42, 16 }
0x12c0   : > { %v839_v43 = vpop.xlane.xlu1 %838 }
0x12c1   : > { %v840_v45 = vcvt.f32.s32 %v839_v43 }
0x12c3   : > { %v2454_v46 = vadd.s32 %v842_v44, %v840_v45 }
0x12c5   : > { %vm844_vm2 = vcmp.eq.s32.totalorder %v2378_v3, %v2454_v46 }
0x12c6   : > { %v850_v47 = vsel %vm844_vm2, -inf, %v825_v32 }
0x12c7   : > { %851 = vmax.xlane.f32.xlu0 %v850_v47 }
0x1354   : > { %v852_v48 = vpop.xlane.xlu0 %851 }
0x1355   : > { %vm853_vm4 = vcmp.eq.f32.partialorder %v850_v47, %v852_v48 }
0x1356   : > { %v854_v50 = vsel %vm853_vm4, %v2378_v3, 1073741824 }
0x1357   : > { %v856_v51 = vshra.s32 %v854_v50, 16  ;;  %v855_v53 = vand.u32 65535, %v854_v50 }
0x1359   : > { %v858_v52 = vcvt.s32.f32 %v856_v51  ;;  %v857_v55 = vcvt.s32.f32 %v855_v53 }
0x135b   : > { %859 = vmin.xlane.f32.xlu1 %v858_v52 }
0x13e8   : > { %v860_v54 = vpop.xlane.xlu1 %859 }
0x13e9   : > { %vm861_vm5 = vcmp.eq.f32.partialorder %v858_v52, %v860_v54  ;;  %v866_v57 = vcvt.f32.s32 %v860_v54 }
0x13ea   : > { %v862_v56 = vsel %vm861_vm5, %v857_v55, inf }
0x13eb   : > { %863 = vmin.xlane.f32.xlu0 %v862_v56  ;;  %v867_v59 = vshll.u32 %v866_v57, 16 }
0x1478   : > { %v864_v58 = vpop.xlane.xlu0 %863 }
0x1479   : > { %v865_v60 = vcvt.f32.s32 %v864_v58 }
0x147b   : > { %v2462_v61 = vadd.s32 %v867_v59, %v865_v60 }
0x147d   : > { %vm869_vm7 = vcmp.eq.s32.totalorder %v2378_v3, %v2462_v61 }
0x147e   : > { %v875_v62 = vsel %vm869_vm7, -inf, %v850_v47 }
0x147f   : > { %876 = vmax.xlane.f32.xlu1 %v875_v62 }
0x150c   : > { %v877_v0 = vpop.xlane.xlu1 %876 }
0x150d   : > { %vm878_vm8 = vcmp.eq.f32.partialorder %v875_v62, %v877_v0 }
0x150e   : > { %v879_v1 = vsel %vm878_vm8, %v2378_v3, 1073741824 }
0x150f   : > { %v881_v2 = vshra.s32 %v879_v1, 16  ;;  %v880_v5 = vand.u32 65535, %v879_v1 }
0x1511   : > { %v883_v4 = vcvt.s32.f32 %v881_v2  ;;  %v882_v8 = vcvt.s32.f32 %v880_v5 }
0x1513   : > { %884 = vmin.xlane.f32.xlu0 %v883_v4 }
0x15a0   : > { %v885_v7 = vpop.xlane.xlu0 %884 }
0x15a1   : > { %vm886_vm11 = vcmp.eq.f32.partialorder %v883_v4, %v885_v7  ;;  %v891_v10 = vcvt.f32.s32 %v885_v7 }
0x15a2   : > { %v887_v9 = vsel %vm886_vm11, %v882_v8, inf }
0x15a3   : > { %888 = vmin.xlane.f32.xlu1 %v887_v9  ;;  %v892_v12 = vshll.u32 %v891_v10, 16 }
0x1630   : > { %v889_v11 = vpop.xlane.xlu1 %888 }
0x1631   : > { %v890_v13 = vcvt.f32.s32 %v889_v11 }
0x1633   : > { %v2470_v14 = vadd.s32 %v892_v12, %v890_v13 }
0x1635   : > { %vm894_vm12 = vcmp.eq.s32.totalorder %v2378_v3, %v2470_v14 }
0x1636   : > { %v900_v16 = vsel %vm894_vm12, -inf, %v875_v62 }
0x1637   : > { %901 = vmax.xlane.f32.xlu0 %v900_v16 }
0x16c4   : > { %v902_v17 = vpop.xlane.xlu0 %901 }
0x16c5   : > { %vm903_vm15 = vcmp.eq.f32.partialorder %v900_v16, %v902_v17 }
0x16c6   : > { %v904_v19 = vsel %vm903_vm15, %v2378_v3, 1073741824 }
0x16c7   : > { %v906_v20 = vshra.s32 %v904_v19, 16  ;;  %v905_v23 = vand.u32 65535, %v904_v19 }
0x16c9   : > { %v908_v22 = vcvt.s32.f32 %v906_v20  ;;  %v907_v25 = vcvt.s32.f32 %v905_v23 }
0x16cb   : > { %909 = vmin.xlane.f32.xlu1 %v908_v22 }
0x1758   : > { %v910_v24 = vpop.xlane.xlu1 %909 }
0x1759   : > { %vm911_vm1 = vcmp.eq.f32.partialorder %v908_v22, %v910_v24  ;;  %v916_v27 = vcvt.f32.s32 %v910_v24 }
0x175a   : > { %v912_v26 = vsel %vm911_vm1, %v907_v25, inf }
0x175b   : > { %913 = vmin.xlane.f32.xlu0 %v912_v26  ;;  %v917_v29 = vshll.u32 %v916_v27, 16 }
0x17e8   : > { %v914_v28 = vpop.xlane.xlu0 %913 }
0x17e9   : > { %v915_v30 = vcvt.f32.s32 %v914_v28 }
0x17eb   : > { %v2478_v32 = vadd.s32 %v917_v29, %v915_v30 }
0x17ed   : > { %vm919_vm4 = vcmp.eq.s32.totalorder %v2378_v3, %v2478_v32 }
0x17ee   : > { %v925_v33 = vsel %vm919_vm4, -inf, %v900_v16 }
0x17ef   : > { %926 = vmax.xlane.f32.xlu1 %v925_v33 }
0x187c   : > { %v927_v34 = vpop.xlane.xlu1 %926 }
0x187d   : > { %vm928_vm5 = vcmp.eq.f32.partialorder %v925_v33, %v927_v34 }
0x187e   : > { %v929_v36 = vsel %vm928_vm5, %v2378_v3, 1073741824 }
0x187f   : > { %v931_v37 = vshra.s32 %v929_v36, 16  ;;  %v930_v39 = vand.u32 65535, %v929_v36 }
0x1881   : > { %v933_v38 = vcvt.s32.f32 %v931_v37  ;;  %v932_v41 = vcvt.s32.f32 %v930_v39 }
0x1883   : > { %934 = vmin.xlane.f32.xlu0 %v933_v38 }
0x1910   : > { %v935_v40 = vpop.xlane.xlu0 %934 }
0x1911   : > { %vm936_vm8 = vcmp.eq.f32.partialorder %v933_v38, %v935_v40  ;;  %v941_v43 = vcvt.f32.s32 %v935_v40 }
0x1912   : > { %v937_v42 = vsel %vm936_vm8, %v932_v41, inf }
0x1913   : > { %938 = vmin.xlane.f32.xlu1 %v937_v42  ;;  %v942_v45 = vshll.u32 %v941_v43, 16 }
0x19a0   : > { %v939_v44 = vpop.xlane.xlu1 %938 }
0x19a1   : > { %v940_v47 = vcvt.f32.s32 %v939_v44 }
0x19a3   : > { %v2486_v48 = vadd.s32 %v942_v45, %v940_v47 }
0x19a5   : > { %vm944_vm11 = vcmp.eq.s32.totalorder %v2378_v3, %v2486_v48 }
0x19a6   : > { %v950_v50 = vsel %vm944_vm11, -inf, %v925_v33 }
0x19a7   : > { %951 = vmax.xlane.f32.xlu0 %v950_v50 }
0x1a34   : > { %v952_v51 = vpop.xlane.xlu0 %951 }
0x1a35   : > { %vm953_vm15 = vcmp.eq.f32.partialorder %v950_v50, %v952_v51 }
0x1a36   : > { %v954_v52 = vsel %vm953_vm15, %v2378_v3, 1073741824 }
0x1a37   : > { %v956_v53 = vshra.s32 %v954_v52, 16  ;;  %v955_v55 = vand.u32 65535, %v954_v52 }
0x1a39   : > { %v958_v54 = vcvt.s32.f32 %v956_v53  ;;  %v957_v57 = vcvt.s32.f32 %v955_v55 }
0x1a3b   : > { %959 = vmin.xlane.f32.xlu1 %v958_v54 }
0x1ac8   : > { %v960_v56 = vpop.xlane.xlu1 %959 }
0x1ac9   : > { %vm961_vm1 = vcmp.eq.f32.partialorder %v958_v54, %v960_v56  ;;  %v966_v59 = vcvt.f32.s32 %v960_v56 }
0x1aca   : > { %v962_v58 = vsel %vm961_vm1, %v957_v57, inf }
0x1acb   : > { %963 = vmin.xlane.f32.xlu0 %v962_v58  ;;  %v967_v62 = vshll.u32 %v966_v59, 16 }
0x1b58   : > { %v964_v60 = vpop.xlane.xlu0 %963 }
0x1b59   : > { %v965_v0 = vcvt.f32.s32 %v964_v60 }
0x1b5b   : > { %v2494_v1 = vadd.s32 %v967_v62, %v965_v0 }
0x1b5d   : > { %vm969_vm5 = vcmp.eq.s32.totalorder %v2378_v3, %v2494_v1 }
0x1b5e   : > { %v975_v2 = vsel %vm969_vm5, -inf, %v950_v50 }
0x1b5f   : > { %976 = vmax.xlane.f32.xlu1 %v975_v2 }
0x1bec   : > { %v977_v4 = vpop.xlane.xlu1 %976 }
0x1bed   : > { %vm978_vm8 = vcmp.eq.f32.partialorder %v975_v2, %v977_v4 }
0x1bee   : > { %v979_v5 = vsel %vm978_vm8, %v2378_v3, 1073741824 }
0x1bef   : > { %v981_v7 = vshra.s32 %v979_v5, 16  ;;  %v980_v9 = vand.u32 65535, %v979_v5 }
0x1bf1   : > { %v983_v8 = vcvt.s32.f32 %v981_v7  ;;  %v982_v11 = vcvt.s32.f32 %v980_v9 }
0x1bf3   : > { %984 = vmin.xlane.f32.xlu0 %v983_v8 }
0x1c80   : > { %v985_v10 = vpop.xlane.xlu0 %984 }
0x1c81   : > { %vm986_vm15 = vcmp.eq.f32.partialorder %v983_v8, %v985_v10  ;;  %v991_v13 = vcvt.f32.s32 %v985_v10 }
0x1c82   : > { %v987_v12 = vsel %vm986_vm15, %v982_v11, inf }
0x1c83   : > { %988 = vmin.xlane.f32.xlu1 %v987_v12  ;;  %v992_v17 = vshll.u32 %v991_v13, 16 }
0x1d10   : > { %v989_v16 = vpop.xlane.xlu1 %988 }
0x1d11   : > { %v990_v19 = vcvt.f32.s32 %v989_v16 }
0x1d13   : > { %v2502_v20 = vadd.s32 %v992_v17, %v990_v19 }
0x1d15   : > { %vm2815_vm1 = vcmp.eq.s32.totalorder %v2378_v3, %v2502_v20 }
0x1d16   : > { %v1000_v22 = vsel %vm2815_vm1, -inf, %v975_v2 }
0x1d17   : > { %1001 = vmax.xlane.f32.xlu0 %v1000_v22 }
0x1da4   : > { %v1002_v23 = vpop.xlane.xlu0 %1001 }
0x1da5   : > { %vm1003_vm8 = vcmp.eq.f32.partialorder %v1000_v22, %v1002_v23 }
0x1da6   : > { %v1004_v24 = vsel %vm1003_vm8, %v2378_v3, 1073741824 }
0x1da7   : > { %v1006_v25 = vshra.s32 %v1004_v24, 16  ;;  %v1005_v27 = vand.u32 65535, %v1004_v24 }
0x1da9   : > { %v1008_v26 = vcvt.s32.f32 %v1006_v25  ;;  %v1007_v29 = vcvt.s32.f32 %v1005_v27 }
0x1dab   : > { %1009 = vmin.xlane.f32.xlu1 %v1008_v26 }
0x1e38   : > { %v1010_v28 = vpop.xlane.xlu1 %1009 }
0x1e39   : > { %vm1011_vm15 = vcmp.eq.f32.partialorder %v1008_v26, %v1010_v28  ;;  %v1016_v33 = vcvt.f32.s32 %v1010_v28 }
0x1e3a   : > { %v1012_v30 = vsel %vm1011_vm15, %v1007_v29, inf }
0x1e3b   : > { %1013 = vmin.xlane.f32.xlu0 %v1012_v30  ;;  %v1017_v36 = vshll.u32 %v1016_v33, 16 }
0x1ec8   : > { %v1014_v34 = vpop.xlane.xlu0 %1013 }
0x1ec9   : > { %v1015_v37 = vcvt.f32.s32 %v1014_v34 }
0x1ecb   : > { %v2510_v38 = vadd.s32 %v1017_v36, %v1015_v37 }
0x1ecd   : > { %vm2816_vm1 = vcmp.eq.s32.totalorder %v2378_v3, %v2510_v38 }
0x1ece   : > { %v1025_v39 = vsel %vm2816_vm1, -inf, %v1000_v22 }
0x1ecf   : > { %1026 = vmax.xlane.f32.xlu1 %v1025_v39 }
0x1f5c   : > { %v1027_v40 = vpop.xlane.xlu1 %1026 }
0x1f5d   : > { %vm1028_vm8 = vcmp.eq.f32.partialorder %v1025_v39, %v1027_v40 }
0x1f5e   : > { %v1029_v41 = vsel %vm1028_vm8, %v2378_v3, 1073741824 }
0x1f5f   : > { %v1031_v42 = vshra.s32 %v1029_v41, 16  ;;  %v1030_v44 = vand.u32 65535, %v1029_v41 }
0x1f61   : > { %v1033_v43 = vcvt.s32.f32 %v1031_v42  ;;  %v1032_v47 = vcvt.s32.f32 %v1030_v44 }
0x1f63   : > { %1034 = vmin.xlane.f32.xlu0 %v1033_v43 }
0x1ff0   : > { %v1035_v45 = vpop.xlane.xlu0 %1034 }
0x1ff1   : > { %vm1036_vm15 = vcmp.eq.f32.partialorder %v1033_v43, %v1035_v45  ;;  %v1041_v51 = vcvt.f32.s32 %v1035_v45 }
0x1ff2   : > { %v1037_v50 = vsel %vm1036_vm15, %v1032_v47, inf }
0x1ff3   : > { %1038 = vmin.xlane.f32.xlu1 %v1037_v50  ;;  %v1042_v53 = vshll.u32 %v1041_v51, 16 }
0x2080   : > { %v1039_v52 = vpop.xlane.xlu1 %1038 }
0x2081   : > { %v1040_v54 = vcvt.f32.s32 %v1039_v52 }
0x2083   : > { %v2518_v55 = vadd.s32 %v1042_v53, %v1040_v54 }
0x2085   : > { %vm2817_vm1 = vcmp.eq.s32.totalorder %v2378_v3, %v2518_v55 }
0x2086   : > { %v1050_v56 = vsel %vm2817_vm1, -inf, %v1025_v39 }
0x2087   : > { %1051 = vmax.xlane.f32.xlu0 %v1050_v56 }
0x2114   : > { %v1052_v57 = vpop.xlane.xlu0 %1051 }
0x2115   : > { %vm1053_vm8 = vcmp.eq.f32.partialorder %v1050_v56, %v1052_v57 }
0x2116   : > { %v1054_v58 = vsel %vm1053_vm8, %v2378_v3, 1073741824 }
0x2117   : > { %v1056_v59 = vshra.s32 %v1054_v58, 16  ;;  %v1055_v62 = vand.u32 65535, %v1054_v58 }
0x2119   : > { %v1058_v60 = vcvt.s32.f32 %v1056_v59  ;;  %v1057_v2 = vcvt.s32.f32 %v1055_v62 }
0x211b   : > { %1059 = vmin.xlane.f32.xlu1 %v1058_v60 }
0x21a8   : > { %v1060_v0 = vpop.xlane.xlu1 %1059 }
0x21a9   : > { %vm1061_vm15 = vcmp.eq.f32.partialorder %v1058_v60, %v1060_v0  ;;  %v1066_v5 = vcvt.f32.s32 %v1060_v0 }
0x21aa   : > { %v1062_v4 = vsel %vm1061_vm15, %v1057_v2, inf }
0x21ab   : > { %1063 = vmin.xlane.f32.xlu0 %v1062_v4  ;;  %v1067_v8 = vshll.u32 %v1066_v5, 16 }
0x2238   : > { %v1064_v7 = vpop.xlane.xlu0 %1063 }
0x2239   : > { %v1065_v9 = vcvt.f32.s32 %v1064_v7 }
0x223b   : > { %v2526_v10 = vadd.s32 %v1067_v8, %v1065_v9 }
0x223d   : > { %vm2818_vm1 = vcmp.eq.s32.totalorder %v2378_v3, %v2526_v10 }
0x223e   : > { %v1075_v11 = vsel %vm2818_vm1, -inf, %v1050_v56 }
0x223f   : > { %1076 = vmax.xlane.f32.xlu1 %v1075_v11 }
0x22cc   : > { %v1077_v12 = vpop.xlane.xlu1 %1076 }
0x22cd   : > { %vm1078_vm8 = vcmp.eq.f32.partialorder %v1075_v11, %v1077_v12 }
0x22ce   : > { %v1079_v13 = vsel %vm1078_vm8, %v2378_v3, 1073741824 }
0x22cf   : > { %v1081_v16 = vshra.s32 %v1079_v13, 16  ;;  %v1080_v19 = vand.u32 65535, %v1079_v13 }
0x22d1   : > { %v1083_v17 = vcvt.s32.f32 %v1081_v16  ;;  %v1082_v23 = vcvt.s32.f32 %v1080_v19 }
0x22d3   : > { %1084 = vmin.xlane.f32.xlu0 %v1083_v17 }
0x2360   : > { %v1085_v22 = vpop.xlane.xlu0 %1084 }
0x2361   : > { %vm1086_vm15 = vcmp.eq.f32.partialorder %v1083_v17, %v1085_v22  ;;  %v1091_v25 = vcvt.f32.s32 %v1085_v22 }
0x2362   : > { %v1087_v24 = vsel %vm1086_vm15, %v1082_v23, inf }
0x2363   : > { %1088 = vmin.xlane.f32.xlu1 %v1087_v24  ;;  %v1092_v27 = vshll.u32 %v1091_v25, 16 }
0x23f0   : > { %v1089_v26 = vpop.xlane.xlu1 %1088 }
0x23f1   : > { %v1090_v28 = vcvt.f32.s32 %v1089_v26 }
0x23f3   : > { %v2534_v29 = vadd.s32 %v1092_v27, %v1090_v28 }
0x23f5   : > { %vm2819_vm1 = vcmp.eq.s32.totalorder %v2378_v3, %v2534_v29 }
0x23f6   : > { %v1100_v30 = vsel %vm2819_vm1, -inf, %v1075_v11 }
0x23f7   : > { %1101 = vmax.xlane.f32.xlu0 %v1100_v30 }
0x2484   : > { %v1102_v33 = vpop.xlane.xlu0 %1101 }
0x2485   : > { %vm1103_vm8 = vcmp.eq.f32.partialorder %v1100_v30, %v1102_v33 }
0x2486   : > { %v1104_v34 = vsel %vm1103_vm8, %v2378_v3, 1073741824 }
0x2487   : > { %v1106_v36 = vshra.s32 %v1104_v34, 16  ;;  %v1105_v39 = vand.u32 65535, %v1104_v34 }
0x2489   : > { %v1108_v37 = vcvt.s32.f32 %v1106_v36  ;;  %v1107_v41 = vcvt.s32.f32 %v1105_v39 }
0x248b   : > { %1109 = vmin.xlane.f32.xlu1 %v1108_v37 }
0x2518   : > { %v1110_v40 = vpop.xlane.xlu1 %1109 }
0x2519   : > { %vm1111_vm15 = vcmp.eq.f32.partialorder %v1108_v37, %v1110_v40  ;;  %v1116_v43 = vcvt.f32.s32 %v1110_v40 }
0x251a   : > { %v1112_v42 = vsel %vm1111_vm15, %v1107_v41, inf }
0x251b   : > { %1113 = vmin.xlane.f32.xlu0 %v1112_v42  ;;  %v1117_v45 = vshll.u32 %v1116_v43, 16 }
0x25a8   : > { %v1114_v44 = vpop.xlane.xlu0 %1113 }
0x25a9   : > { %v1115_v47 = vcvt.f32.s32 %v1114_v44 }
0x25ab   : > { %v2542_v50 = vadd.s32 %v1117_v45, %v1115_v47 }
0x25ad   : > { %vm2820_vm1 = vcmp.eq.s32.totalorder %v2378_v3, %v2542_v50 }
0x25ae   : > { %v1125_v51 = vsel %vm2820_vm1, -inf, %v1100_v30 }
0x25af   : > { %1126 = vmax.xlane.f32.xlu1 %v1125_v51 }
0x263c   : > { %v1127_v52 = vpop.xlane.xlu1 %1126 }
0x263d   : > { %vm1128_vm8 = vcmp.eq.f32.partialorder %v1125_v51, %v1127_v52 }
0x263e   : > { %v1129_v53 = vsel %vm1128_vm8, %v2378_v3, 1073741824 }
0x263f   : > { %v1131_v54 = vshra.s32 %v1129_v53, 16  ;;  %v1130_v57 = vand.u32 65535, %v1129_v53 }
0x2641   : > { %v1133_v56 = vcvt.s32.f32 %v1131_v54  ;;  %v1132_v59 = vcvt.s32.f32 %v1130_v57 }
0x2643   : > { %1134 = vmin.xlane.f32.xlu0 %v1133_v56 }
0x26d0   : > { %v1135_v58 = vpop.xlane.xlu0 %1134 }
0x26d1   : > { %vm1136_vm15 = vcmp.eq.f32.partialorder %v1133_v56, %v1135_v58  ;;  %v1141_v62 = vcvt.f32.s32 %v1135_v58 }
0x26d2   : > { %v1137_v60 = vsel %vm1136_vm15, %v1132_v59, inf }
0x26d3   : > { %1138 = vmin.xlane.f32.xlu1 %v1137_v60  ;;  %v1142_v2 = vshll.u32 %v1141_v62, 16 }
0x2760   : > { %v1139_v0 = vpop.xlane.xlu1 %1138 }
0x2761   : > { %v1140_v4 = vcvt.f32.s32 %v1139_v0 }
0x2763   : > { %v2550_v5 = vadd.s32 %v1142_v2, %v1140_v4 }
0x2765   : > { %vm2821_vm1 = vcmp.eq.s32.totalorder %v2378_v3, %v2550_v5 }
0x2766   : > { %v1150_v7 = vsel %vm2821_vm1, -inf, %v1125_v51 }
0x2767   : > { %1151 = vmax.xlane.f32.xlu0 %v1150_v7 }
0x27f4   : > { %v1152_v8 = vpop.xlane.xlu0 %1151 }
0x27f5   : > { %vm1153_vm8 = vcmp.eq.f32.partialorder %v1150_v7, %v1152_v8 }
0x27f6   : > { %v1154_v9 = vsel %vm1153_vm8, %v2378_v3, 1073741824 }
0x27f7   : > { %v1156_v11 = vshra.s32 %v1154_v9, 16  ;;  %v1155_v13 = vand.u32 65535, %v1154_v9 }
0x27f9   : > { %v1158_v12 = vcvt.s32.f32 %v1156_v11  ;;  %v1157_v17 = vcvt.s32.f32 %v1155_v13 }
0x27fb   : > { %1159 = vmin.xlane.f32.xlu1 %v1158_v12 }
0x2888   : > { %v1160_v16 = vpop.xlane.xlu1 %1159 }
0x2889   : > { %vm1161_vm15 = vcmp.eq.f32.partialorder %v1158_v12, %v1160_v16  ;;  %v1166_v22 = vcvt.f32.s32 %v1160_v16 }
0x288a   : > { %v1162_v19 = vsel %vm1161_vm15, %v1157_v17, inf }
0x288b   : > { %1163 = vmin.xlane.f32.xlu0 %v1162_v19  ;;  %v1167_v24 = vshll.u32 %v1166_v22, 16 }
0x2918   : > { %v1164_v23 = vpop.xlane.xlu0 %1163 }
0x2919   : > { %v1165_v25 = vcvt.f32.s32 %v1164_v23 }
0x291b   : > { %v2558_v26 = vadd.s32 %v1167_v24, %v1165_v25 }
0x291d   : > { %vm2822_vm1 = vcmp.eq.s32.totalorder %v2378_v3, %v2558_v26 }
0x291e   : > { %v1175_v27 = vsel %vm2822_vm1, -inf, %v1150_v7 }
0x291f   : > { %1176 = vmax.xlane.f32.xlu1 %v1175_v27 }
0x29ac   : > { %v1177_v28 = vpop.xlane.xlu1 %1176 }
0x29ad   : > { %vm1178_vm8 = vcmp.eq.f32.partialorder %v1175_v27, %v1177_v28 }
0x29ae   : > { %v1179_v30 = vsel %vm1178_vm8, %v2378_v3, 1073741824 }
0x29af   : > { %v1181_v33 = vshra.s32 %v1179_v30, 16  ;;  %v1180_v36 = vand.u32 65535, %v1179_v30 }
0x29b1   : > { %v1183_v34 = vcvt.s32.f32 %v1181_v33  ;;  %v1182_v39 = vcvt.s32.f32 %v1180_v36 }
0x29b3   : > { %1184 = vmin.xlane.f32.xlu0 %v1183_v34 }
0x2a40   : > { %v1185_v37 = vpop.xlane.xlu0 %1184 }
0x2a41   : > { %vm1186_vm15 = vcmp.eq.f32.partialorder %v1183_v34, %v1185_v37  ;;  %v1191_v41 = vcvt.f32.s32 %v1185_v37 }
0x2a42   : > { %v1187_v40 = vsel %vm1186_vm15, %v1182_v39, inf }
0x2a43   : > { %1188 = vmin.xlane.f32.xlu1 %v1187_v40  ;;  %v1192_v43 = vshll.u32 %v1191_v41, 16 }
0x2ad0   : > { %v1189_v42 = vpop.xlane.xlu1 %1188 }
0x2ad1   : > { %v1190_v44 = vcvt.f32.s32 %v1189_v42 }
0x2ad3   : > { %v2566_v45 = vadd.s32 %v1192_v43, %v1190_v44 }
0x2ad5   : > { %vm2823_vm1 = vcmp.eq.s32.totalorder %v2378_v3, %v2566_v45 }
0x2ad6   : > { %v1200_v47 = vsel %vm2823_vm1, -inf, %v1175_v27 }
0x2ad7   : > { %1201 = vmax.xlane.f32.xlu0 %v1200_v47 }
0x2b64   : > { %v1202_v51 = vpop.xlane.xlu0 %1201 }
0x2b65   : > { %vm1203_vm8 = vcmp.eq.f32.partialorder %v1200_v47, %v1202_v51 }
0x2b66   : > { %v1204_v52 = vsel %vm1203_vm8, %v2378_v3, 1073741824 }
0x2b67   : > { %v1206_v53 = vshra.s32 %v1204_v52, 16  ;;  %v1205_v56 = vand.u32 65535, %v1204_v52 }
0x2b69   : > { %v1208_v54 = vcvt.s32.f32 %v1206_v53  ;;  %v1207_v58 = vcvt.s32.f32 %v1205_v56 }
0x2b6b   : > { %1209 = vmin.xlane.f32.xlu1 %v1208_v54 }
0x2bf8   : > { %v1210_v57 = vpop.xlane.xlu1 %1209 }
0x2bf9   : > { %vm1211_vm15 = vcmp.eq.f32.partialorder %v1208_v54, %v1210_v57  ;;  %v1216_v60 = vcvt.f32.s32 %v1210_v57 }
0x2bfa   : > { %v1212_v59 = vsel %vm1211_vm15, %v1207_v58, inf }
0x2bfb   : > { %1213 = vmin.xlane.f32.xlu0 %v1212_v59  ;;  %v1217_v0 = vshll.u32 %v1216_v60, 16 }
0x2c88   : > { %v1214_v62 = vpop.xlane.xlu0 %1213 }
0x2c89   : > { %v1215_v2 = vcvt.f32.s32 %v1214_v62 }
0x2c8b   : > { %v2574_v4 = vadd.s32 %v1217_v0, %v1215_v2 }
0x2c8d   : > { %vm2824_vm1 = vcmp.eq.s32.totalorder %v2378_v3, %v2574_v4 }
0x2c8e   : > { %v1225_v7 = vsel %vm2824_vm1, -inf, %v1200_v47 }
0x2c8f   : > { %1226 = vmax.xlane.f32.xlu1 %v1225_v7 }
0x2d1c   : > { %v1227_v8 = vpop.xlane.xlu1 %1226 }
0x2d1d   : > { %vm1228_vm8 = vcmp.eq.f32.partialorder %v1225_v7, %v1227_v8 }
0x2d1e   : > { %v1229_v9 = vsel %vm1228_vm8, %v2378_v3, 1073741824 }
0x2d1f   : > { %v1231_v11 = vshra.s32 %v1229_v9, 16  ;;  %v1230_v13 = vand.u32 65535, %v1229_v9 }
0x2d21   : > { %v1233_v12 = vcvt.s32.f32 %v1231_v11  ;;  %v1232_v17 = vcvt.s32.f32 %v1230_v13 }
0x2d23   : > { %1234 = vmin.xlane.f32.xlu0 %v1233_v12 }
0x2db0   : > { %v1235_v16 = vpop.xlane.xlu0 %1234 }
0x2db1   : > { %vm1236_vm15 = vcmp.eq.f32.partialorder %v1233_v12, %v1235_v16  ;;  %v1241_v22 = vcvt.f32.s32 %v1235_v16  ;;  %v2059_v12 = vmov 0  }
0x2db2   : > { %v1237_v19 = vsel %vm1236_vm15, %v1232_v17, inf  ;;  %1788 = vset.pattern.permute.xlu1 %v2059_v12  ;;  %v2079_v12 = vmov 20  }
0x2db3   : > { %1238 = vmin.xlane.f32.xlu1 %v1237_v19  ;;  %v1242_v24 = vshll.u32 %v1241_v22, 16  ;;  %v646_v22 = vld [vmem:[%s320_s24] sm:$0xff] }
0x2e40   : > { %v1239_v23 = vpop.xlane.xlu1 %1238 }
0x2e41   : > { %v1240_v25 = vcvt.f32.s32 %v1239_v23 }
0x2e43   : > { %v2582_v27 = vadd.s32 %v1242_v24, %v1240_v25  ;;  %v2060_v24 = vmov 2   ;;  %v2061_v25 = vmov 3  }
0x2e45   : > { %vm2825_vm1 = vcmp.eq.s32.totalorder %v2378_v3, %v2582_v27 }
0x2e46   : > { %v1250_v28 = vsel %vm2825_vm1, -inf, %v1225_v7 }
0x2e47   : > { %1251 = vmax.xlane.f32.xlu0 %v1250_v28 }
0x2ed4   : > { %v1252_v30 = vpop.xlane.xlu0 %1251 }
0x2ed5   : > { %vm1253_vm8 = vcmp.eq.f32.partialorder %v1250_v28, %v1252_v30  ;;  %v2063_v30 = vmov 5  }
0x2ed6   : > { %v1254_v33 = vsel %vm1253_vm8, %v2378_v3, 1073741824 }
0x2ed7   : > { %v1256_v34 = vshra.s32 %v1254_v33, 16  ;;  %v1255_v37 = vand.u32 65535, %v1254_v33  ;;  %v2065_v33 = vmov 7  }
0x2ed9   : > { %v1258_v36 = vcvt.s32.f32 %v1256_v34  ;;  %v1257_v40 = vcvt.s32.f32 %v1255_v37  ;;  %v2066_v34 = vmov 8  }
0x2edb   : > { %1259 = vmin.xlane.f32.xlu1 %v1258_v36 }
0x2f68   : > { %v1260_v39 = vpop.xlane.xlu1 %1259 }
0x2f69   : > { %vm1261_vm15 = vcmp.eq.f32.partialorder %v1258_v36, %v1260_v39  ;;  %v1266_v42 = vcvt.f32.s32 %v1260_v39  ;;  %v2067_v36 = vmov 9  }
0x2f6a   : > { %v1262_v41 = vsel %vm1261_vm15, %v1257_v40, inf }
0x2f6b   : > { %1263 = vmin.xlane.f32.xlu0 %v1262_v41  ;;  %v1267_v44 = vshll.u32 %v1266_v42, 16  ;;  %v2068_v42 = vmov 10  }
0x2ff8   : > { %v1264_v43 = vpop.xlane.xlu0 %1263 }
0x2ff9   : > { %v1265_v47 = vcvt.f32.s32 %v1264_v43  ;;  %v2069_v43 = vmov 11  }
0x2ffb   : > { %v2590_v51 = vadd.s32 %v1267_v44, %v1265_v47  ;;  %v2070_v44 = vmov 1   ;;  %v2071_v47 = vmov 12  }
0x2ffc   : > { %1789 = vset.pattern.permute.xlu0 %v2070_v44 }
0x2ffd   : > { %vm2826_vm1 = vcmp.eq.s32.totalorder %v2378_v3, %v2590_v51 }
0x2ffe   : > { %v1275_v52 = vsel %vm2826_vm1, -inf, %v1250_v28  ;;  %v2062_v28 = vmov 4  }
0x2fff   : > { %1276 = vmax.xlane.f32.xlu1 %v1275_v52 }
0x308c   : > { %v1277_v53 = vpop.xlane.xlu1 %1276 }
0x308d   : > { %vm1278_vm8 = vcmp.eq.f32.partialorder %v1275_v52, %v1277_v53  ;;  %v2073_v53 = vmov 14  }
0x308e   : > { %v1279_v54 = vsel %vm1278_vm8, %v2378_v3, 1073741824 }
0x308f   : > { %v1281_v56 = vshra.s32 %v1279_v54, 16  ;;  %v1280_v58 = vand.u32 65535, %v1279_v54  ;;  %v2074_v54 = vmov 15  }
0x3091   : > { %v1283_v57 = vcvt.s32.f32 %v1281_v56  ;;  %v1282_v60 = vcvt.s32.f32 %v1280_v58  ;;  %v2075_v56 = vmov 16   ;;  %v2077_v58 = vmov 18  }
0x3093   : > { %1284 = vmin.xlane.f32.xlu0 %v1283_v57 }
0x3120   : > { %v1285_v59 = vpop.xlane.xlu0 %1284 }
0x3121   : > { %vm1286_vm15 = vcmp.eq.f32.partialorder %v1283_v57, %v1285_v59  ;;  %v1291_v0 = vcvt.f32.s32 %v1285_v59  ;;  %v2076_v57 = vmov 17  }
0x3122   : > { %v1287_v62 = vsel %vm1286_vm15, %v1282_v60, inf  ;;  %vm647_vm15 = vcmp.gt.f32.partialorder %v646_v22, 0.8 }
0x3123   : > { %1288 = vmin.xlane.f32.xlu1 %v1287_v62  ;;  %v1292_v7 = vshll.u32 %v1291_v0, 16  ;;  %v2612_v23 = vsel %vm647_vm15, 1.0, %v2058_v18  ;;  %v2064_v18 = vmov 6  }
0x31b0   : > { %v1289_v2 = vpop.xlane.xlu1 %1288 }
0x31b1   : > { %v1290_v8 = vcvt.f32.s32 %v1289_v2 }
0x31b3   : > { %v2598_v9 = vadd.s32 %v1292_v7, %v1290_v8  ;;  %v2078_v8 = vmov 19  }
0x31b5   : > { %vm1294_vm1 = vcmp.eq.s32.totalorder %v2378_v3, %v2598_v9 }
0x31b6   : > { %v2605_v11 = vsel %vm1294_vm1, -inf, %v1275_v52  ;;  %v2072_v52 = vmov 13  }
0x31b7   : > { %1301 = vmax.xlane.f32.xlu0 %v2605_v11 }
0x3244   : > { %v1302_v13 = vpop.xlane.xlu0 %1301 }
0x3245   : > { %vm1303_vm8 = vcmp.eq.f32.partialorder %v2605_v11, %v1302_v13 }
0x3246   : > { %v1304_v16 = vsel %vm1303_vm8, %v2378_v3, 1073741824 }
0x3247   : > { %v1306_v17 = vshra.s32 %v1304_v16, 16  ;;  %v1305_v37 = vand.u32 65535, %v1304_v16 }
0x3249   : > { %v1308_v19 = vcvt.s32.f32 %v1306_v17  ;;  %v1307_v40 = vcvt.s32.f32 %v1305_v37 }
0x324b   : > { %1309 = vmin.xlane.f32.xlu1 %v1308_v19 }
0x325c   : > { %671 = vperm.xlu1 %1788, %v2612_v23  }
0x3260   : > { %1790 = vset.pattern.permute.xlu1 %v2060_v24 }
0x3261   : > { %721 = vperm.xlu1 %1790, %v2612_v23  }
0x3265   : > { %1791 = vset.pattern.permute.xlu1 %v2061_v25 }
0x3266   : > { %746 = vperm.xlu1 %1791, %v2612_v23  }
0x326a   : > { %1792 = vset.pattern.permute.xlu1 %v2062_v28 }
0x326b   : > { %771 = vperm.xlu1 %1792, %v2612_v23  }
0x326f   : > { %1793 = vset.pattern.permute.xlu1 %v2063_v30 }
0x3270   : > { %796 = vperm.xlu1 %1793, %v2612_v23  }
0x3274   : > { %1794 = vset.pattern.permute.xlu1 %v2064_v18 }
0x3275   : > { %821 = vperm.xlu1 %1794, %v2612_v23  }
0x3279   : > { %1795 = vset.pattern.permute.xlu1 %v2065_v33 }
0x327a   : > { %846 = vperm.xlu1 %1795, %v2612_v23  }
0x327e   : > { %1796 = vset.pattern.permute.xlu1 %v2066_v34 }
0x327f   : > { %871 = vperm.xlu1 %1796, %v2612_v23  }
0x3283   : > { %1797 = vset.pattern.permute.xlu1 %v2067_v36 }
0x3284   : > { %896 = vperm.xlu1 %1797, %v2612_v23  }
0x3288   : > { %1798 = vset.pattern.permute.xlu1 %v2068_v42 }
0x3289   : > { %921 = vperm.xlu1 %1798, %v2612_v23  }
0x328d   : > { %1799 = vset.pattern.permute.xlu1 %v2069_v43 }
0x328e   : > { %946 = vperm.xlu1 %1799, %v2612_v23  }
0x3292   : > { %1800 = vset.pattern.permute.xlu1 %v2071_v47 }
0x3293   : > { %971 = vperm.xlu1 %1800, %v2612_v23  }
0x3297   : > { %1801 = vset.pattern.permute.xlu1 %v2072_v52 }
0x3298   : > { %996 = vperm.xlu1 %1801, %v2612_v23  }
0x329c   : > { %1802 = vset.pattern.permute.xlu1 %v2073_v53 }
0x329d   : > { %1021 = vperm.xlu1 %1802, %v2612_v23  }
0x32a1   : > { %1803 = vset.pattern.permute.xlu1 %v2074_v54 }
0x32a2   : > { %1046 = vperm.xlu1 %1803, %v2612_v23  }
0x32a6   : > { %1804 = vset.pattern.permute.xlu1 %v2075_v56 }
0x32a7   : > { %1071 = vperm.xlu1 %1804, %v2612_v23  }
0x32ab   : > { %1805 = vset.pattern.permute.xlu1 %v2076_v57 }
0x32ac   : > { %1096 = vperm.xlu1 %1805, %v2612_v23  }
0x32b0   : > { %1806 = vset.pattern.permute.xlu1 %v2077_v58 }
0x32b1   : > { %1121 = vperm.xlu1 %1806, %v2612_v23  }
0x32b5   : > { %1808 = vset.pattern.permute.xlu1 %v2079_v12  ;;  %v2084_v12 = vmov 24  }
0x32b6   : > { %1171 = vperm.xlu1 %1808, %v2612_v23  }
0x32d8   : > { %v1310_v39 = vpop.xlane.xlu1 %1309 }
0x32d9   : > { %vm1311_vm8 = vcmp.eq.f32.partialorder %v1308_v19, %v1310_v39  ;;  %v1316_v59 = vcvt.f32.s32 %v1310_v39 }
0x32da   : > { %v1312_v41 = vsel %vm1311_vm8, %v1307_v40, inf }
0x32db   : > { %1313 = vmin.xlane.f32.xlu0 %v1312_v41  ;;  %v1317_v62 = vshll.u32 %v1316_v59, 16  ;;  %v2081_v59 = vmov 22  }
0x32dc   : > { %v672_v13 = vpop.permute.xlu1 %671 }
0x32dd   : > { %v674_v43 = vsel %vm668_vm10, %v672_v13, 1.0  ;;  %vm2849_vm10 = vcmp.eq.s32.totalorder %v2378_v3, %v2502_v20  ;;  %v2085_v13 = vmov 26  }
0x32e0   : > { %v722_v16 = vpop.permute.xlu1 %721 }
0x32e5   : > { %v747_v17 = vpop.permute.xlu1 %746 }
0x32ea   : > { %v772_v19 = vpop.permute.xlu1 %771 }
0x32ef   : > { %v797_v22 = vpop.permute.xlu1 %796 }
0x32f4   : > { %v822_v24 = vpop.permute.xlu1 %821 }
0x32f9   : > { %v847_v25 = vpop.permute.xlu1 %846 }
0x32fe   : > { %v872_v28 = vpop.permute.xlu1 %871 }
0x3368   : > { %v1314_v60 = vpop.xlane.xlu0 %1313 }
0x3369   : > { %v1315_v0 = vcvt.f32.s32 %v1314_v60 }
0x336b   : > { %v2632_v2 = vadd.s32 %v1317_v62, %v1315_v0 }
0x336d   : > { %vm1319_vm15 = vcmp.eq.s32.totalorder %v2378_v3, %v2632_v2 }
0x336e   : > { %v2640_v7 = vsel %vm1319_vm15, -inf, %v2605_v11  ;;  %v897_v11 = vpop.permute.xlu1 %896 }
0x336f   : > { %1326 = vmax.xlane.f32.xlu0 %v2640_v7 }
0x3372   : > { %v922_v30 = vpop.permute.xlu1 %921 }
0x3376   : > { %v947_v18 = vpop.permute.xlu1 %946 }
0x337a   : > { %v972_v33 = vpop.permute.xlu1 %971 }
0x337e   : > { %v997_v34 = vpop.permute.xlu1 %996 }
0x3382   : > { %v1022_v36 = vpop.permute.xlu1 %1021 }
0x3385   : > { %696 = vperm.xlu0 %1789, %v2612_v23  }
0x3386   : > { %v1047_v42 = vpop.permute.xlu1 %1046 }
0x3389   : > { %1807 = vset.pattern.permute.xlu0 %v2078_v8 }
0x338a   : > { %v1072_v54 = vpop.permute.xlu1 %1071 }
0x338e   : > { %v1097_v57 = vpop.permute.xlu1 %1096 }
0x3392   : > { %v1122_v58 = vpop.permute.xlu1 %1121 }
0x33fc   : > { %v1327_v37 = vpop.xlane.xlu0 %1326 }
0x33fd   : > { %vm1328_vm8 = vcmp.eq.f32.partialorder %v2640_v7, %v1327_v37 }
0x33fe   : > { %v1329_v39 = vsel %vm1328_vm8, %v2378_v3, 1073741824  ;;  %vm2860_vm8 = vcmp.eq.s32.totalorder %v2378_v3, %v2590_v51  ;;  %v2087_v51 = vmov 28  }
0x33ff   : > { %v1331_v40 = vshra.s32 %v1329_v39, 16 }
0x3401   : > { %v1333_v41 = vcvt.s32.f32 %v1331_v40 }
0x3403   : > { %1334 = vmin.xlane.f32.xlu0 %v1333_v41 }
0x3404   : > { %v697_v44 = vpop.permute.xlu0 %696 }
0x3405   : > { %v699_v47 = vsel %vm694_vm13, %v697_v44, %v674_v43  ;;  %vm2850_vm13 = vcmp.eq.s32.totalorder %v2378_v3, %v2510_v38  ;;  %v2080_v38 = vmov 21  }
0x3406   : > { %v724_v52 = vsel %vm719_vm0, %v722_v16, %v699_v47  ;;  %vm2851_vm0 = vcmp.eq.s32.totalorder %v2378_v3, %v2518_v55  ;;  %1809 = vset.pattern.permute.xlu1 %v2080_v38  ;;  %v2082_v55 = vmov 23   ;;  %v2086_v16 = vmov 27  }
0x3407   : > { %v749_v53 = vsel %vm744_vm3, %v747_v17, %v724_v52  ;;  %vm2852_vm3 = vcmp.eq.s32.totalorder %v2378_v3, %v2526_v10  ;;  %v2083_v10 = vmov 25   ;;  %v1172_v17 = vpop.permute.xlu1 %1171 }
0x3408   : > { %v774_v56 = vsel %vm769_vm6, %v772_v19, %v749_v53  ;;  %vm2853_vm6 = vcmp.eq.s32.totalorder %v2378_v3, %v2534_v29  ;;  %v1330_v29 = vand.u32 65535, %v1329_v39 }
0x3409   : > { %v799_v6 = vsel %vm794_vm9, %v797_v22, %v774_v56  ;;  %vm2854_vm9 = vcmp.eq.s32.totalorder %v2378_v3, %v2542_v50 }
0x340a   : > { %v824_v21 = vsel %vm819_vm14, %v822_v24, %v799_v6  ;;  %v1332_v60 = vcvt.s32.f32 %v1330_v29 }
0x340b   : > { %v849_v35 = vsel %vm844_vm2, %v847_v25, %v824_v21  ;;  %vm2855_vm2 = vcmp.eq.s32.totalorder %v2378_v3, %v2550_v5 }
0x340c   : > { %v874_v49 = vsel %vm869_vm7, %v872_v28, %v849_v35  ;;  %vm2856_vm7 = vcmp.eq.s32.totalorder %v2378_v3, %v2558_v26 }
0x340d   : > { %v899_v63 = vsel %vm894_vm12, %v897_v11, %v874_v49  ;;  %vm2857_vm12 = vcmp.eq.s32.totalorder %v2378_v3, %v2566_v45 }
0x340e   : > { %v924_v15 = vsel %vm919_vm4, %v922_v30, %v899_v63 }
0x340f   : > { %v949_v31 = vsel %vm944_vm11, %v947_v18, %v924_v15  ;;  %vm2858_vm11 = vcmp.eq.s32.totalorder %v2378_v3, %v2574_v4 }
0x3410   : > { %v974_v46 = vsel %vm969_vm5, %v972_v33, %v949_v31  ;;  %vm2859_vm5 = vcmp.eq.s32.totalorder %v2378_v3, %v2582_v27 }
0x3411   : > { %v999_v61 = vsel %vm2849_vm10, %v997_v34, %v974_v46 }
0x3412   : > { %v1024_v14 = vsel %vm2850_vm13, %v1022_v36, %v999_v61 }
0x3413   : > { %v1049_v32 = vsel %vm2851_vm0, %v1047_v42, %v1024_v14  ;;  %v2088_v14 = vmov 29  }
0x3414   : > { %v1074_v48 = vsel %vm2852_vm3, %v1072_v54, %v1049_v32 }
0x3415   : > { %v1099_v1 = vsel %vm2853_vm6, %v1097_v57, %v1074_v48 }
0x3416   : > { %v1124_v20 = vsel %vm2854_vm9, %v1122_v58, %v1099_v1 }
0x3419   : > { %1146 = vperm.xlu0 %1807, %v2612_v23  }
0x341d   : > { %1810 = vset.pattern.permute.xlu0 %v2081_v59 }
0x341e   : > { %1221 = vperm.xlu0 %1810, %v2612_v23  }
0x3422   : > { %1811 = vset.pattern.permute.xlu0 %v2082_v55 }
0x3423   : > { %1246 = vperm.xlu0 %1811, %v2612_v23  }
0x3427   : > { %1813 = vset.pattern.permute.xlu0 %v2083_v10 }
0x3428   : > { %1296 = vperm.xlu0 %1813, %v2612_v23  }
0x342c   : > { %1816 = vset.pattern.permute.xlu0 %v2087_v51 }
0x3490   : > { %v1335_v50 = vpop.xlane.xlu0 %1334 }
0x3491   : > { %vm1336_vm14 = vcmp.eq.f32.partialorder %v1333_v41, %v1335_v50  ;;  %v1341_v19 = vcvt.f32.s32 %v1335_v50 }
0x3492   : > { %v1337_v62 = vsel %vm1336_vm14, %v1332_v60, inf }
0x3493   : > { %1338 = vmin.xlane.f32.xlu1 %v1337_v62  ;;  %v1342_v5 = vshll.u32 %v1341_v19, 16 }
0x3498   : > { %v1147_v0 = vpop.permute.xlu0 %1146 }
0x3499   : > { %v1149_v8 = vsel %vm2855_vm2, %v1147_v0, %v1124_v20 }
0x349a   : > { %v1174_v11 = vsel %vm2856_vm7, %v1172_v17, %v1149_v8 }
0x349d   : > { %v1222_v22 = vpop.permute.xlu0 %1221 }
0x34a2   : > { %v1247_v18 = vpop.permute.xlu0 %1246 }
0x34a4   : > { %1196 = vperm.xlu1 %1809, %v2612_v23  }
0x34a7   : > { %v1297_v45 = vpop.permute.xlu0 %1296 }
0x34a8   : > { %1812 = vset.pattern.permute.xlu1 %v2084_v12 }
0x34a9   : > { %1271 = vperm.xlu1 %1812, %v2612_v23  }
0x34ad   : > { %1814 = vset.pattern.permute.xlu1 %v2085_v13  ;;  %v2089_v13 = vmov 30  }
0x34ae   : > { %1321 = vperm.xlu1 %1814, %v2612_v23  }
0x34b2   : > { %1815 = vset.pattern.permute.xlu1 %v2086_v16 }
0x34b3   : > { %1346 = vperm.xlu1 %1815, %v2612_v23  }
0x34b7   : > { %1817 = vset.pattern.permute.xlu1 %v2088_v14 }
0x3520   : > { %v1339_v24 = vpop.xlane.xlu1 %1338 }
0x3521   : > { %v1340_v25 = vcvt.f32.s32 %v1339_v24 }
0x3523   : > { %v1343_v28 = vadd.s32 %v1342_v5, %v1340_v25 }
0x3524   : > { %v1197_v30 = vpop.permute.xlu1 %1196 }
0x3525   : > { %v1199_v33 = vsel %vm2857_vm12, %v1197_v30, %v1174_v11  ;;  %vm1344_vm4 = vcmp.eq.s32.totalorder %v2378_v3, %v1343_v28 }
0x3526   : > { %v1224_v34 = vsel %vm2858_vm11, %v1222_v22, %v1199_v33  ;;  %v1350_v36 = vsel %vm1344_vm4, -inf, %v2640_v7 }
0x3527   : > { %v1249_v37 = vsel %vm2859_vm5, %v1247_v18, %v1224_v34  ;;  %1351 = vmax.xlane.f32.xlu0 %v1350_v36 }
0x3528   : > { %v1272_v26 = vpop.permute.xlu1 %1271 }
0x3529   : > { %v1274_v39 = vsel %vm2860_vm8, %v1272_v26, %v1249_v37 }
0x352a   : > { %v1299_v40 = vsel %vm1294_vm1, %v1297_v45, %v1274_v39  ;;  %v2090_v39 = vmov 31  }
0x352d   : > { %v1322_v41 = vpop.permute.xlu1 %1321 }
0x352e   : > { %v1324_v4 = vsel %vm1319_vm15, %v1322_v41, %v1299_v40 }
0x3532   : > { %v1347_v7 = vpop.permute.xlu1 %1346 }
0x3533   : > { %v1349_v42 = vsel %vm1344_vm4, %v1347_v7, %v1324_v4 }
0x35b4   : > { %v1352_v27 = vpop.xlane.xlu0 %1351 }
0x35b5   : > { %vm1353_vm10 = vcmp.eq.f32.partialorder %v1350_v36, %v1352_v27 }
0x35b6   : > { %v1354_v43 = vsel %vm1353_vm10, %v2378_v3, 1073741824 }
0x35b7   : > { %v1356_v44 = vshra.s32 %v1354_v43, 16  ;;  %v1355_v52 = vand.u32 65535, %v1354_v43 }
0x35b9   : > { %v1358_v47 = vcvt.s32.f32 %v1356_v44  ;;  %v1357_v53 = vcvt.s32.f32 %v1355_v52  ;;  %v1820_v52 = vld [vmem:[%s289_s3] sm:$0xff] }
0x35bb   : > { %1359 = vmin.xlane.f32.xlu1 %v1358_v47 }
0x3648   : > { %v1360_v9 = vpop.xlane.xlu1 %1359 }
0x3649   : > { %vm1361_vm1 = vcmp.eq.f32.partialorder %v1358_v47, %v1360_v9  ;;  %v1366_v2 = vcvt.f32.s32 %v1360_v9 }
0x364a   : > { %v1362_v54 = vsel %vm1361_vm1, %v1357_v53, inf }
0x364b   : > { %1363 = vmin.xlane.f32.xlu0 %v1362_v54  ;;  %v1367_v6 = vshll.u32 %v1366_v2, 16 }
0x3661   : > { %1371 = vperm.xlu0 %1816, %v2612_v23  }
0x3665   : > { %1819 = vset.pattern.permute.xlu0 %v2090_v39 }
0x36d8   : > { %v1364_v56 = vpop.xlane.xlu0 %1363 }
0x36d9   : > { %v1365_v21 = vcvt.f32.s32 %v1364_v56 }
0x36db   : > { %v1368_v35 = vadd.s32 %v1367_v6, %v1365_v21 }
0x36dd   : > { %vm1369_vm15 = vcmp.eq.s32.totalorder %v2378_v3, %v1368_v35 }
0x36de   : > { %v1375_v49 = vsel %vm1369_vm15, -inf, %v1350_v36 }
0x36df   : > { %1376 = vmax.xlane.f32.xlu1 %v1375_v49 }
0x36e0   : > { %v1372_v63 = vpop.permute.xlu0 %1371 }
0x36e1   : > { %v1374_v57 = vsel %vm1369_vm15, %v1372_v63, %v1349_v42 }
0x376c   : > { %v1377_v15 = vpop.xlane.xlu1 %1376 }
0x376d   : > { %vm1378_vm13 = vcmp.eq.f32.partialorder %v1375_v49, %v1377_v15 }
0x376e   : > { %v1379_v31 = vsel %vm1378_vm13, %v2378_v3, 1073741824 }
0x376f   : > { %v1381_v46 = vshra.s32 %v1379_v31, 16  ;;  %v1380_v32 = vand.u32 65535, %v1379_v31 }
0x3771   : > { %v1383_v61 = vcvt.s32.f32 %v1381_v46  ;;  %v1382_v58 = vcvt.s32.f32 %v1380_v32 }
0x3773   : > { %1384 = vmin.xlane.f32.xlu1 %v1383_v61 }
0x3800   : > { %v1385_v48 = vpop.xlane.xlu1 %1384 }
0x3801   : > { %vm1386_vm0 = vcmp.eq.f32.partialorder %v1383_v61, %v1385_v48  ;;  %v1391_v20 = vcvt.f32.s32 %v1385_v48 }
0x3802   : > { %v1387_v1 = vsel %vm1386_vm0, %v1382_v58, inf }
0x3803   : > { %1388 = vmin.xlane.f32.xlu1 %v1387_v1  ;;  %v1392_v59 = vshll.u32 %v1391_v20, 16 }
0x3814   : > { %1396 = vperm.xlu1 %1817, %v2612_v23  }
0x3818   : > { %1818 = vset.pattern.permute.xlu1 %v2089_v13 }
0x3890   : > { %v1389_v38 = vpop.xlane.xlu1 %1388 }
0x3891   : > { %v1390_v55 = vcvt.f32.s32 %v1389_v38 }
0x3893   : > { %v1393_v10 = vadd.s32 %v1392_v59, %v1390_v55 }
0x3894   : > { %v1397_v29 = vpop.permute.xlu1 %1396 }
0x3895   : > { %vm1394_vm3 = vcmp.eq.s32.totalorder %v2378_v3, %v1393_v10 }
0x3896   : > { %v1399_v60 = vsel %vm1394_vm3, %v1397_v29, %v1374_v57  ;;  %v1400_v50 = vsel %vm1394_vm3, -inf, %v1375_v49 }
0x3897   : > { %1401 = vmax.xlane.f32.xlu1 %v1400_v50 }
0x3924   : > { %v1402_v62 = vpop.xlane.xlu1 %1401 }
0x3925   : > { %vm1403_vm6 = vcmp.eq.f32.partialorder %v1400_v50, %v1402_v62 }
0x3926   : > { %v1404_v0 = vsel %vm1403_vm6, %v2378_v3, 1073741824 }
0x3927   : > { %v1406_v8 = vshra.s32 %v1404_v0, 16  ;;  %v1405_v16 = vand.u32 65535, %v1404_v0 }
0x3929   : > { %v1408_v12 = vcvt.s32.f32 %v1406_v8  ;;  %v1407_v17 = vcvt.s32.f32 %v1405_v16 }
0x392b   : > { %1409 = vmin.xlane.f32.xlu0 %v1408_v12 }
0x39b8   : > { %v1410_v19 = vpop.xlane.xlu0 %1409 }
0x39b9   : > { %vm1411_vm9 = vcmp.eq.f32.partialorder %v1408_v12, %v1410_v19  ;;  %v1416_v24 = vcvt.f32.s32 %v1410_v19 }
0x39ba   : > { %v1412_v22 = vsel %vm1411_vm9, %v1407_v17, inf }
0x39bb   : > { %1413 = vmin.xlane.f32.xlu1 %v1412_v22  ;;  %v1417_v25 = vshll.u32 %v1416_v24, 16 }
0x39cc   : > { %1421 = vperm.xlu1 %1818, %v2612_v23  }
0x3a48   : > { %v1414_v5 = vpop.xlane.xlu1 %1413 }
0x3a49   : > { %v1415_v28 = vcvt.f32.s32 %v1414_v5 }
0x3a4b   : > { %v1418_v11 = vadd.s32 %v1417_v25, %v1415_v28 }
0x3a4c   : > { %v1422_v30 = vpop.permute.xlu1 %1421 }
0x3a4d   : > { %vm1419_vm14 = vcmp.eq.s32.totalorder %v2378_v3, %v1418_v11 }
0x3a4e   : > { %v1424_v18 = vsel %vm1419_vm14, %v1422_v30, %v1399_v60  ;;  %v1425_v33 = vsel %vm1419_vm14, -inf, %v1400_v50 }
0x3a4f   : > { %1426 = vmax.xlane.f32.xlu0 %v1425_v33 }
0x3adc   : > { %v1427_v34 = vpop.xlane.xlu0 %1426 }
0x3add   : > { %vm1428_vm2 = vcmp.eq.f32.partialorder %v1425_v33, %v1427_v34 }
0x3ade   : > { %v1429_v36 = vsel %vm1428_vm2, %v2378_v3, 1073741824 }
0x3adf   : > { %v1431_v37 = vshra.s32 %v1429_v36, 16  ;;  %v1430_v45 = vand.u32 65535, %v1429_v36 }
0x3ae1   : > { %v1433_v26 = vcvt.s32.f32 %v1431_v37  ;;  %v1432_v40 = vcvt.s32.f32 %v1430_v45 }
0x3ae3   : > { %1434 = vmin.xlane.f32.xlu0 %v1433_v26 }
0x3b70   : > { %v1435_v41 = vpop.xlane.xlu0 %1434 }
0x3b71   : > { %vm1436_vm7 = vcmp.eq.f32.partialorder %v1433_v26, %v1435_v41  ;;  %v1441_v7 = vcvt.f32.s32 %v1435_v41 }
0x3b72   : > { %v1437_v4 = vsel %vm1436_vm7, %v1432_v40, inf }
0x3b73   : > { %1438 = vmin.xlane.f32.xlu0 %v1437_v4  ;;  %v1442_v43 = vshll.u32 %v1441_v7, 16 }
0x3b89   : > { %1446 = vperm.xlu0 %1819, %v2612_v23  }
0x3c00   : > { %v1439_v42 = vpop.xlane.xlu0 %1438 }
0x3c01   : > { %v1440_v27 = vcvt.f32.s32 %v1439_v42 }
0x3c03   : > { %v1443_v44 = vadd.s32 %v1442_v43, %v1440_v27 }
0x3c05   : > { %vm1444_vm12 = vcmp.eq.s32.totalorder %v2378_v3, %v1443_v44 }
0x3c08   : > { %v1447_v47 = vpop.permute.xlu0 %1446 }
0x3c09   : > { %v1449_v51 = vsel %vm1444_vm12, %v1447_v47, %v1424_v18 }
0x3c0a   : > { %v1450_v53 = vmul.f32 %v1820_v52, %v1449_v51 }
0x3c0c   : > { %1451 = vst [vmem:[%s361_s12] sm:$0xff] %v1450_v53 }
0x3c0d   : > { %1982 = shalt.err (!%p1979_p6)
}
0x3c0e   : > { %s1983_s23 = scalar_lea.hbm %s2757_s11, 128  ;;  %s1987_s26 = scalar_lea.hbm %s2806_s5, 256 }
0x3c0f   : > { %p1984_p3 = scmp.ne.s32.totalorder %s2757_s11, %s1983_s23  ;;  %p1988_p0 = scmp.lt.u32.totalorder %s2757_s11, %s2806_s5 }
0x3c10   : > { %p1989_p10 = scmp.lt.u32.totalorder %s1987_s26, %s1983_s23  ;;  %p1991_p12 = scmp.lt.u32.totalorder %s1983_s23, %s2757_s11 }
0x3c11   : > { %p1985_p7 = pnand %p1984_p3, %p2861_p5 }
0x3c12   : > { %p1990_p9 = por %p1989_p10, %p1988_p0 }
0x3c13   : > { %p1986_p13 = pneg %p1985_p7 }
0x3c14   : > { %p1992_p2 = por %p1991_p12, %p1990_p9 }
0x3c16   : > { %p1993_p11 = pnand %p1992_p2, %p1986_p13 }
0x3c18   : > { %1996 = shalt.err (!%p1993_p11)
}
0x3c19   : > { %1691 = dma.vmem_to_hbm [thread:$0]  (%p2861_p5), %s2759_s15, 128, %s2757_s11, %s1453_s22  }
0x3c1a PF: > { %s1478_s10 = sand.u32 1, %s2035_s18   ;;  %p2862_p1 = scmp.ne.s32.totalorder %s2830_s25, 0 }
0x3c1b   : > { %p2863_p8 = scmp.ge.s32.totalorder %s2047_s21, 2  ;;  %s1479_s2 = scalar_lea.sflag [#allocation4], %s1478_s10 }
0x3c1d   : > { %p1711_p4 = pnand %p2863_p8, %p2862_p1 }
0x3c1f   : > { %2030 = dma.done.wait (!%p1711_p4), %s1479_s2, 128  }
0x3c20   : > { %2032 = vsyncadd (!%p1711_p4), %s1479_s2, 4294967168  ;;  %s2864_s24 = sld [smem:[#allocation17_spill]]  ;;  %p24_p6 = scmp.ge.s32.totalorder %s2178_s30, 4  }
0x3c21   : > { %s2865_s18 = smov %s2039_s19  ;;  %s2866_s19 = smov %s2043_s20 }
0x3c22   : > { %s2868_s21 = smov %s2178_s30  ;;  %26 = sbr.rel (!%p24_p6) target bundleno = 12 (0xc), region = 126 }
0x3c26   : > { %s2867_s20 = smov %s2864_s24 }
0x3c29   :  { %1484 = vsyncpa [#allocation3], 1 }
0x3c2a   :  { %1486 = vsyncpa [#allocation3 + $0x1], 1 }
0x3c2b   :  { %1487 = vsyncpa [#allocation6], 1 }
0x3c2c   :  { %1489 = vsyncpa [#allocation6 + $0x1], 1 }
0x3c2d   :  { %1490 = vsyncpa [#allocation9], 1 }
0x3c2e   :  { %1492 = vsyncpa [#allocation9 + $0x1], 1 }
0x3c2f   :  { %1493 = vsyncpa [#allocation4], 1 }
0x3c30   :  { %1495 = vsyncpa [#allocation4 + $0x1], 1 }

</bundles_post_ra>
